<compile_context>
chip_gen: v7x
topology: tpu7x:2x2x1
jax: 0.10.0
libtpu: 0.0.40
codegen_flags: <defaults>
</compile_context>

<pallas_src>
import functools

import jax
import jax.numpy as jnp
from jax.experimental import pallas as pl
from jax.experimental.pallas import tpu as pltpu  # noqa: F401  (TPU backend)

NUM_CLASSES = 10
BN_EPS = 1e-5
CIN_PAD = 8          # input channels padded 5 -> 8
LOGIT_PAD = 128      # lane-dense padded logits width
SHIFT_WIDTH = 1024   # lane width of the packed shift slab
SHIFT_ROWS = 8       # sublane-aligned row count of the packed shift slab


# ---------------------------------------------------------------------------
# Fused kernel
# ---------------------------------------------------------------------------
def _fused_pointnet_kernel(B, P,
                           x_ref,
                           w1_ref, w2_ref, w3_ref, w4_ref,
                           wf1_ref, wf2_ref, wf3_ref,
                           sh_ref,
                           logits_ref, feat_ref):
    # x_ref: (B*P, 8) f32.  w*: bf16 with BN scale folded in.
    # sh_ref: (8, 1024) f32 packed shifts; rows = [sh1, sh2, sh3, sh4, shf1,
    #         shf2, bf3, 0], each zero-padded to 1024 lanes.
    # Outputs: logits (B, 128) f32 (cols >= num_classes are 0), feat (B, 256) f32.

    def layer(h_bf16, w_ref, shift):
        y = jnp.dot(h_bf16, w_ref[...], preferred_element_type=jnp.float32)
        # add + ReLU in f32 (v5e has no bf16 VPU), single cast at the output.
        return jnp.maximum(y + shift, 0.0).astype(jnp.bfloat16)

    h = layer(x_ref[...].astype(jnp.bfloat16), w1_ref, sh_ref[0:1, 0:64])   # (B*P, 64)
    h = layer(h, w2_ref, sh_ref[1:2, 0:64])                                 # (B*P, 64)
    h = layer(h, w3_ref, sh_ref[2:3, 0:128])                                # (B*P, 128)
    h = layer(h, w4_ref, sh_ref[3:4, 0:1024])                               # (B*P, 1024)

    # Per-batch max over the P points: layout-free leading-dim reshape
    # (P is a multiple of the sublane/packing granule) + one fused reduction,
    # run on the bf16 slab (half the reduce bandwidth).
    pooled = jnp.max(h.reshape(B, P, 1024), axis=1)                         # (B, 1024)

    # FC head.  Dropout(p=0.4)/Dropout(p=0.5) are identity in eval mode.
    h = layer(pooled, wf1_ref, sh_ref[4:5, 0:512])                          # (B, 512)
    y = jnp.dot(h, wf2_ref[...], preferred_element_type=jnp.float32)
    feat = jnp.maximum(y + sh_ref[5:6, 0:256], 0.0)                         # (B, 256) f32
    feat_ref[...] = feat
    logits_ref[...] = (jnp.dot(feat.astype(jnp.bfloat16), wf3_ref[...],
                               preferred_element_type=jnp.float32)
                       + sh_ref[6:7, 0:128])                                # (B, 128)


# ---------------------------------------------------------------------------
# Full forward (thin JAX wrapper around one pallas_call)
# ---------------------------------------------------------------------------
def pointnet_forward(points, params, num_classes=NUM_CLASSES):
    weights, shifts = params
    B, F, N, C = points.shape
    P = F * N
    M = B * P

    pts = points.astype(jnp.float32).reshape(M, C)
    if C == CIN_PAD:
        # W1 rows 5..7 are zero, so channels 5..7 are ignored inside the kernel
        # (matches the reference's points[:, :, :5]) -- no wrapper pad op.
        x = pts
    else:
        x = jnp.pad(pts[:, :5], ((0, 0), (0, CIN_PAD - 5)))

    flops = 2 * (M * (CIN_PAD * 64 + 64 * 64 + 64 * 128 + 128 * 1024)
                 + B * (1024 * 512 + 512 * 256 + 256 * LOGIT_PAD))
    bytes_accessed = (int(x.size) * 4
                      + sum(int(w.size) for w in weights) * 2
                      + int(shifts.size) * 4
                      + B * (LOGIT_PAD + 256) * 4)

    kernel = functools.partial(_fused_pointnet_kernel, B, P)
    logits_pad, feat = pl.pallas_call(
        kernel,
        out_shape=(jax.ShapeDtypeStruct((B, LOGIT_PAD), jnp.float32),
                   jax.ShapeDtypeStruct((B, 256), jnp.float32)),
        cost_estimate=pl.CostEstimate(flops=flops, transcendentals=0,
                                      bytes_accessed=bytes_accessed),
    )(x, *weights, shifts)

    return logits_pad[:, :num_classes], feat


# ---------------------------------------------------------------------------
# Deterministic parameter construction
# (conv/linear bias + BatchNorm running stats folded into W / shift)
# ---------------------------------------------------------------------------
def _folded_layer(key, cin, cout, cin_pad=None):
    k1, k2, k3, k4, k5, k6 = jax.random.split(key, 6)
    w = jax.random.normal(k1, (cin, cout), jnp.float32) * (1.0 / float(cin) ** 0.5)
    b = 0.1 * jax.random.normal(k2, (cout,), jnp.float32)
    gamma = 1.0 + 0.1 * jax.random.normal(k3, (cout,), jnp.float32)
    beta = 0.1 * jax.random.normal(k4, (cout,), jnp.float32)
    mean = 0.1 * jax.random.normal(k5, (cout,), jnp.float32)
    var = jnp.abs(jax.random.normal(k6, (cout,), jnp.float32)) + 0.5
    scale = gamma / jnp.sqrt(var + BN_EPS)              # BN (eval mode)
    w_folded = w * scale[None, :]
    shift = beta + scale * (b - mean)
    if cin_pad is not None and cin_pad > cin:
        w_folded = jnp.pad(w_folded, ((0, cin_pad - cin), (0, 0)))
    return w_folded.astype(jnp.bfloat16), shift.astype(jnp.float32)


def _pack_shifts(vectors, width=SHIFT_WIDTH, rows=SHIFT_ROWS):
    packed = [jnp.pad(v, (0, width - v.shape[0])) for v in vectors]
    packed += [jnp.zeros((width,), jnp.float32)] * (rows - len(packed))
    return jnp.stack(packed, axis=0).astype(jnp.float32)   # (8, 1024) -> single DMA


def init_params(key, num_classes=NUM_CLASSES):
    keys = jax.random.split(key, 7)
    w1, sh1 = _folded_layer(keys[0], 5, 64, cin_pad=CIN_PAD)
    w2, sh2 = _folded_layer(keys[1], 64, 64)
    w3, sh3 = _folded_layer(keys[2], 64, 128)
    w4, sh4 = _folded_layer(keys[3], 128, 1024)
    wf1, shf1 = _folded_layer(keys[4], 1024, 512)
    wf2, shf2 = _folded_layer(keys[5], 512, 256)
    k1, k2 = jax.random.split(keys[6])
    wf3 = jax.random.normal(k1, (256, num_classes), jnp.float32) * (1.0 / 16.0)
    bf3 = 0.1 * jax.random.normal(k2, (num_classes,), jnp.float32)
    wf3 = jnp.pad(wf3, ((0, 0), (0, LOGIT_PAD - num_classes))).astype(jnp.bfloat16)
    bf3 = jnp.pad(bf3, (0, LOGIT_PAD - num_classes)).astype(jnp.float32)

    weights = (w1, w2, w3, w4, wf1, wf2, wf3)
    shifts = _pack_shifts([sh1, sh2, sh3, sh4, shf1, shf2, bf3])
    # TODO(synk): att1/att2 exist in __init__ but are unused in forward -> not built.
    return weights, shifts


if __name__ == "__main__":
    key = jax.random.PRNGKey(0)
    kp, kx = jax.random.split(key)
    params = init_params(kp, NUM_CLASSES)

    # points: (B, F, N, C) = (2, 4, 16, 8) -> P = F*N = 64 points, first 5 channels used.
    B, F, N, C = 2, 4, 16, 8
    points = jax.random.normal(kx, (B, F, N, C), jnp.float32)

    fwd = jax.jit(functools.partial(pointnet_forward, params=params))
    out, feat = fwd(points)
    jax.block_until_ready((out, feat))
    assert out.shape == (B, NUM_CLASSES) and feat.shape == (B, 256)
    assert bool(jnp.all(jnp.isfinite(out))) and bool(jnp.all(jnp.isfinite(feat)))
    print("KERNEL_OK")
</pallas_src>

<mosaic_0001>
module attributes {stable_mosaic.version = 11 : i64} {
  func.func @_fused_pointnet_kernel(%arg0: memref<128x8xf32, #tpu.memory_space<vmem>>, %arg1: memref<8x64xbf16, #tpu.memory_space<vmem>>, %arg2: memref<64x64xbf16, #tpu.memory_space<vmem>>, %arg3: memref<64x128xbf16, #tpu.memory_space<vmem>>, %arg4: memref<128x1024xbf16, #tpu.memory_space<vmem>>, %arg5: memref<1024x512xbf16, #tpu.memory_space<vmem>>, %arg6: memref<512x256xbf16, #tpu.memory_space<vmem>>, %arg7: memref<256x128xbf16, #tpu.memory_space<vmem>>, %arg8: memref<8x1024xf32, #tpu.memory_space<vmem>>, %arg9: memref<2x128xf32, #tpu.memory_space<vmem>>, %arg10: memref<2x256xf32, #tpu.memory_space<vmem>>) attributes {dimension_semantics = [], scalar_prefetch = 0 : i64, scratch_operands = 0 : i64, tpu.core_type = #tpu.core_type<tc>} {
    %c0 = arith.constant 0 : index
    %c0_0 = arith.constant 0 : index
    %0 = vector.load %arg0[%c0, %c0_0] : memref<128x8xf32, #tpu.memory_space<vmem>>, vector<128x8xf32>
    %1 = arith.truncf %0 : vector<128x8xf32> to vector<128x8xbf16>
    %c0_1 = arith.constant 0 : index
    %c0_2 = arith.constant 0 : index
    %2 = vector.load %arg8[%c0_1, %c0_2] : memref<8x1024xf32, #tpu.memory_space<vmem>>, vector<1x64xf32>
    %c0_3 = arith.constant 0 : index
    %c0_4 = arith.constant 0 : index
    %3 = vector.load %arg1[%c0_3, %c0_4] : memref<8x64xbf16, #tpu.memory_space<vmem>>, vector<8x64xbf16>
    %cst = arith.constant dense<0.000000e+00> : vector<128x64xf32>
    %4 = tpu.matmul %1, %3, %cst {dimension_numbers = #tpu.dot_dimension_numbers<[1], [0], [0], [1], [0, 0, 1, 1], [], []>} : vector<128x8xbf16>, vector<8x64xbf16>, vector<128x64xf32> -> vector<128x64xf32>
    %5 = vector.broadcast %2 : vector<1x64xf32> to vector<128x64xf32>
    %6 = arith.addf %4, %5 : vector<128x64xf32>
    %cst_5 = arith.constant 0.000000e+00 : f32
    %7 = vector.broadcast %cst_5 : f32 to vector<128x64xf32>
    %8 = arith.maximumf %6, %7 : vector<128x64xf32>
    %9 = arith.truncf %8 : vector<128x64xf32> to vector<128x64xbf16>
    %c1 = arith.constant 1 : index
    %c0_6 = arith.constant 0 : index
    %10 = vector.load %arg8[%c1, %c0_6] : memref<8x1024xf32, #tpu.memory_space<vmem>>, vector<1x64xf32>
    %c0_7 = arith.constant 0 : index
    %c0_8 = arith.constant 0 : index
    %11 = vector.load %arg2[%c0_7, %c0_8] : memref<64x64xbf16, #tpu.memory_space<vmem>>, vector<64x64xbf16>
    %cst_9 = arith.constant dense<0.000000e+00> : vector<128x64xf32>
    %12 = tpu.matmul %9, %11, %cst_9 {dimension_numbers = #tpu.dot_dimension_numbers<[1], [0], [0], [1], [0, 0, 1, 1], [], []>} : vector<128x64xbf16>, vector<64x64xbf16>, vector<128x64xf32> -> vector<128x64xf32>
    %13 = vector.broadcast %10 : vector<1x64xf32> to vector<128x64xf32>
    %14 = arith.addf %12, %13 : vector<128x64xf32>
    %cst_10 = arith.constant 0.000000e+00 : f32
    %15 = vector.broadcast %cst_10 : f32 to vector<128x64xf32>
    %16 = arith.maximumf %14, %15 : vector<128x64xf32>
    %17 = arith.truncf %16 : vector<128x64xf32> to vector<128x64xbf16>
    %c2 = arith.constant 2 : index
    %c0_11 = arith.constant 0 : index
    %18 = vector.load %arg8[%c2, %c0_11] : memref<8x1024xf32, #tpu.memory_space<vmem>>, vector<1x128xf32>
    %c0_12 = arith.constant 0 : index
    %c0_13 = arith.constant 0 : index
    %19 = vector.load %arg3[%c0_12, %c0_13] : memref<64x128xbf16, #tpu.memory_space<vmem>>, vector<64x128xbf16>
    %cst_14 = arith.constant dense<0.000000e+00> : vector<128x128xf32>
    %20 = tpu.matmul %17, %19, %cst_14 {dimension_numbers = #tpu.dot_dimension_numbers<[1], [0], [0], [1], [0, 0, 1, 1], [], []>} : vector<128x64xbf16>, vector<64x128xbf16>, vector<128x128xf32> -> vector<128x128xf32>
    %21 = vector.broadcast %18 : vector<1x128xf32> to vector<128x128xf32>
    %22 = arith.addf %20, %21 : vector<128x128xf32>
    %cst_15 = arith.constant 0.000000e+00 : f32
    %23 = vector.broadcast %cst_15 : f32 to vector<128x128xf32>
    %24 = arith.maximumf %22, %23 : vector<128x128xf32>
    %25 = arith.truncf %24 : vector<128x128xf32> to vector<128x128xbf16>
    %c3 = arith.constant 3 : index
    %c0_16 = arith.constant 0 : index
    %26 = vector.load %arg8[%c3, %c0_16] : memref<8x1024xf32, #tpu.memory_space<vmem>>, vector<1x1024xf32>
    %c0_17 = arith.constant 0 : index
    %c0_18 = arith.constant 0 : index
    %27 = vector.load %arg4[%c0_17, %c0_18] : memref<128x1024xbf16, #tpu.memory_space<vmem>>, vector<128x1024xbf16>
    %cst_19 = arith.constant dense<0.000000e+00> : vector<128x1024xf32>
    %28 = tpu.matmul %25, %27, %cst_19 {dimension_numbers = #tpu.dot_dimension_numbers<[1], [0], [0], [1], [0, 0, 1, 1], [], []>} : vector<128x128xbf16>, vector<128x1024xbf16>, vector<128x1024xf32> -> vector<128x1024xf32>
    %29 = vector.broadcast %26 : vector<1x1024xf32> to vector<128x1024xf32>
    %30 = arith.addf %28, %29 : vector<128x1024xf32>
    %cst_20 = arith.constant 0.000000e+00 : f32
    %31 = vector.broadcast %cst_20 : f32 to vector<128x1024xf32>
    %32 = arith.maximumf %30, %31 : vector<128x1024xf32>
    %33 = arith.truncf %32 : vector<128x1024xf32> to vector<128x1024xbf16>
    %34 = vector.shape_cast %33 : vector<128x1024xbf16> to vector<2x64x1024xbf16>
    %cst_21 = arith.constant dense<0xFF80> : vector<2x1024xbf16>
    %35 = vector.multi_reduction <maximumf>, %34, %cst_21 [1] : vector<2x64x1024xbf16> to vector<2x1024xbf16>
    %c4 = arith.constant 4 : index
    %c0_22 = arith.constant 0 : index
    %36 = vector.load %arg8[%c4, %c0_22] : memref<8x1024xf32, #tpu.memory_space<vmem>>, vector<1x512xf32>
    %c0_23 = arith.constant 0 : index
    %c0_24 = arith.constant 0 : index
    %37 = vector.load %arg5[%c0_23, %c0_24] : memref<1024x512xbf16, #tpu.memory_space<vmem>>, vector<1024x512xbf16>
    %cst_25 = arith.constant dense<0.000000e+00> : vector<2x512xf32>
    %38 = tpu.matmul %35, %37, %cst_25 {dimension_numbers = #tpu.dot_dimension_numbers<[1], [0], [0], [1], [0, 0, 1, 1], [], []>} : vector<2x1024xbf16>, vector<1024x512xbf16>, vector<2x512xf32> -> vector<2x512xf32>
    %39 = vector.broadcast %36 : vector<1x512xf32> to vector<2x512xf32>
    %40 = arith.addf %38, %39 : vector<2x512xf32>
    %cst_26 = arith.constant 0.000000e+00 : f32
    %41 = vector.broadcast %cst_26 : f32 to vector<2x512xf32>
    %42 = arith.maximumf %40, %41 : vector<2x512xf32>
    %43 = arith.truncf %42 : vector<2x512xf32> to vector<2x512xbf16>
    %c0_27 = arith.constant 0 : index
    %c0_28 = arith.constant 0 : index
    %44 = vector.load %arg6[%c0_27, %c0_28] : memref<512x256xbf16, #tpu.memory_space<vmem>>, vector<512x256xbf16>
    %cst_29 = arith.constant dense<0.000000e+00> : vector<2x256xf32>
    %45 = tpu.matmul %43, %44, %cst_29 {dimension_numbers = #tpu.dot_dimension_numbers<[1], [0], [0], [1], [0, 0, 1, 1], [], []>} : vector<2x512xbf16>, vector<512x256xbf16>, vector<2x256xf32> -> vector<2x256xf32>
    %c5 = arith.constant 5 : index
    %c0_30 = arith.constant 0 : index
    %46 = vector.load %arg8[%c5, %c0_30] : memref<8x1024xf32, #tpu.memory_space<vmem>>, vector<1x256xf32>
    %47 = vector.broadcast %46 : vector<1x256xf32> to vector<2x256xf32>
    %48 = arith.addf %45, %47 : vector<2x256xf32>
    %cst_31 = arith.constant 0.000000e+00 : f32
    %49 = vector.broadcast %cst_31 : f32 to vector<2x256xf32>
    %50 = arith.maximumf %48, %49 : vector<2x256xf32>
    %c0_32 = arith.constant 0 : index
    %c0_33 = arith.constant 0 : index
    %51 = vector.load %arg10[%c0_32, %c0_33] : memref<2x256xf32, #tpu.memory_space<vmem>>, vector<2x256xf32>
    tpu.vector_store %arg10[%c0_32, %c0_33], %50 {strides = array<i32>} : memref<2x256xf32, #tpu.memory_space<vmem>>, vector<2x256xf32>,
    %52 = arith.truncf %50 : vector<2x256xf32> to vector<2x256xbf16>
    %c0_34 = arith.constant 0 : index
    %c0_35 = arith.constant 0 : index
    %53 = vector.load %arg7[%c0_34, %c0_35] : memref<256x128xbf16, #tpu.memory_space<vmem>>, vector<256x128xbf16>
    %cst_36 = arith.constant dense<0.000000e+00> : vector<2x128xf32>
    %54 = tpu.matmul %52, %53, %cst_36 {dimension_numbers = #tpu.dot_dimension_numbers<[1], [0], [0], [1], [0, 0, 1, 1], [], []>} : vector<2x256xbf16>, vector<256x128xbf16>, vector<2x128xf32> -> vector<2x128xf32>
    %c6 = arith.constant 6 : index
    %c0_37 = arith.constant 0 : index
    %55 = vector.load %arg8[%c6, %c0_37] : memref<8x1024xf32, #tpu.memory_space<vmem>>, vector<1x128xf32>
    %56 = vector.broadcast %55 : vector<1x128xf32> to vector<2x128xf32>
    %57 = arith.addf %54, %56 : vector<2x128xf32>
    %c0_38 = arith.constant 0 : index
    %c0_39 = arith.constant 0 : index
    %58 = vector.load %arg9[%c0_38, %c0_39] : memref<2x128xf32, #tpu.memory_space<vmem>>, vector<2x128xf32>
    tpu.vector_store %arg9[%c0_38, %c0_39], %57 {strides = array<i32>} : memref<2x128xf32, #tpu.memory_space<vmem>>, vector<2x128xf32>,
    return
  }
}

</mosaic_0001>

<bundles_post_ra>
// kernel: pointnet_forward.1
= control target key start
LH: loop header
LB: loop body
LE: loop exit
PB: predicated region body
PF: predicated region fallthrough
CT: control target
= control target key end

     0   :  { %16 = vsyncpa [#allocation3], 0  ;;  %vm88_vm0 = vcmask 1043456   ;;  %vm63_vm1 = vcmask 64512   ;;  %s7555_s0 = inlined_call_operand.vmem [shape: f32[128,8], index: 0, kind: input, shape index: {}]   ;;  %s7556_s1 = inlined_call_operand.vmem [shape: bf16[8,64], index: 1, kind: input, shape index: {}]   ;;  %s7557_s2 = inlined_call_operand.vmem [shape: bf16[64,64], index: 2, kind: input, shape index: {}]   ;;  %s7558_s3 = inlined_call_operand.vmem [shape: bf16[64,128], index: 3, kind: input, shape index: {}]   ;;  %s7559_s4 = inlined_call_operand.vmem [shape: bf16[128,1024], index: 4, kind: input, shape index: {}]   ;;  %s7560_s5 = inlined_call_operand.vmem [shape: bf16[1024,512], index: 5, kind: input, shape index: {}]   ;;  %s7561_s6 = inlined_call_operand.vmem [shape: bf16[512,256], index: 6, kind: input, shape index: {}]   ;;  %s7562_s7 = inlined_call_operand.vmem [shape: bf16[256,128], index: 7, kind: input, shape index: {}]   ;;  %s7563_s8 = inlined_call_operand.vmem [shape: f32[8,1024], index: 8, kind: input, shape index: {}]   ;;  %s7564_s9 = inlined_call_operand.hbm [shape: f32[2,128], index: 9, kind: output, shape index: {0}]   ;;  %s7565_s10 = inlined_call_operand.hbm [shape: f32[2,256], index: 10, kind: output, shape index: {1}]  }
   0x1   :  { %v62_v0 = vld [vmem:[%s7556_s1] sm:$0xf]  ;;  %v38_v2 = vld [vmem:[%s7555_s0 + $0x8] sm:$0xff]  ;;  %v39_v5 = vld [vmem:[%s7555_s0 + $0x10] sm:$0xff] }
   0x2   :  { %v37_v1 = vld [vmem:[%s7555_s0] sm:$0xff]  ;;  %5104 = vmatprep.subr.msk.bf16.mxu0 %vm88_vm0, %v62_v0  ;;  %v90_v3 = vsel %vm88_vm0, %v62_v0, 0  ;;  %v40_v6 = vld [vmem:[%s7555_s0 + $0x18] sm:$0xff]  ;;  %v42_v9 = vld [vmem:[%s7555_s0 + $0x28] sm:$0xff] }
   0x3   :  { %v53_v4 = vpack.c.bf16 %v38_v2, %v37_v1  ;;  %v41_v7 = vld [vmem:[%s7555_s0 + $0x20] sm:$0xff]  ;;  %4989 = vmatpush3.bf16.msra.mxu0 %v90_v3  ;;  %v54_v8 = vpack.c.bf16 %v40_v6, %v39_v5  ;;  %v43_v11 = vld [vmem:[%s7555_s0 + $0x30] sm:$0xff]  ;;  %v44_v12 = vld [vmem:[%s7555_s0 + $0x38] sm:$0xff] }
   0x4   :  { %v55_v10 = vpack.c.bf16 %v42_v9, %v41_v7  ;;  %v45_v13 = vld [vmem:[%s7555_s0 + $0x40] sm:$0xff]  ;;  %v46_v14 = vld [vmem:[%s7555_s0 + $0x48] sm:$0xff]  ;;  %v56_v17 = vpack.c.bf16 %v44_v12, %v43_v11  ;;  %v47_v19 = vld [vmem:[%s7555_s0 + $0x50] sm:$0xff] }
   0x5   :  { %4990 = vmatprep.mubr.msk.bf16.mxu0 %vm63_vm1, %v53_v4  ;;  %v5108_v15 = vld [vmem:[%s7557_s2] sm:$0xff]   ;;  %v5109_v16 = vld [vmem:[%s7557_s2 + $0x8] sm:$0xff]   ;;  %v57_v18 = vpack.c.bf16 %v46_v14, %v45_v13  ;;  %v48_v20 = vld [vmem:[%s7555_s0 + $0x58] sm:$0xff] }
   0x6   :  { %4991 = vmatmul.mubr.msk.bf16.vlgmr.msra.gmra.mrb[0].mxu0 %vm63_vm1, %v54_v8  ;;  %5006 = vmatprep.subr.bf16.mxu1 %v5108_v15  ;;  %v49_v21 = vld [vmem:[%s7555_s0 + $0x60] sm:$0xff]  ;;  %v50_v22 = vld [vmem:[%s7555_s0 + $0x68] sm:$0xff]  ;;  %v58_v23 = vpack.c.bf16 %v48_v20, %v47_v19  ;;  %v51_v25 = vld [vmem:[%s7555_s0 + $0x70] sm:$0xff] }
   0x7   :  { %4994 = vmatprep.mubr.msk.bf16.mxu0 %vm63_vm1, %v55_v10  ;;  %5007 = vmatpush3.bf16.msra.mxu1 %v5108_v15  ;;  %v59_v24 = vpack.c.bf16 %v50_v22, %v49_v21  ;;  %v52_v26 = vld [vmem:[%s7555_s0 + $0x78] sm:$0xff]  ;;  %v5110_v28 = vld [vmem:[%s7557_s2 + $0x10] sm:$0xff]   ;;  %v5112_v30 = vld [vmem:[%s7558_s3] sm:$0xff]  }
   0x8   :  { %5008 = vmatprep.subr.bf16.mxu1 %v5109_v16  ;;  %v60_v27 = vpack.c.bf16 %v52_v26, %v51_v25  ;;  %v5111_v29 = vld [vmem:[%s7557_s2 + $0x18] sm:$0xff]   ;;  %v5113_v31 = vld [vmem:[%s7558_s3 + $0x8] sm:$0xff]   ;;  %5030 = vmatprep.subr.bf16.mxu0 %v5112_v30  ;;  %v5114_v32 = vld [vmem:[%s7558_s3 + $0x10] sm:$0xff]  }
   0x9   :  { %5031 = vmatpush3.bf16.msra.mxu0 %v5112_v30 }
   0xa   :  { %5032 = vmatprep.subr.bf16.mxu0 %v5113_v31 }
   0xb   :  { %5009 = vmatpush3.bf16.msra.mxu1 %v5109_v16 }
   0xc   :  { %5010 = vmatprep.subr.bf16.mxu1 %v5110_v28 }
   0xd   :  { %5033 = vmatpush3.bf16.msra.mxu0 %v5113_v31 }
   0xe   :  { %4995 = vmatmul.mubr.msk.bf16.gmra.mrb[4].mxu0 %vm63_vm1, %v56_v17  ;;  %5034 = vmatprep.subr.bf16.mxu0 %v5114_v32 }
   0xf   :  { %4998 = vmatprep.mubr.msk.bf16.mxu0 %vm63_vm1, %v57_v18  ;;  %5011 = vmatpush3.bf16.msra.mxu1 %v5110_v28 }
  0x10   :  { %5012 = vmatprep.subr.bf16.mxu1 %v5111_v29 }
  0x13   :  { %5013 = vmatpush3.bf16.msra.mxu1 %v5111_v29 }
  0x16   :  { %4999 = vmatmul.mubr.msk.bf16.gmra.mrb[8].mxu0 %vm63_vm1, %v58_v23 }
  0x17   :  { %5002 = vmatprep.mubr.msk.bf16.mxu0 %vm63_vm1, %v59_v24 }
  0x1e   :  { %5003 = vmatmul.mubr.msk.bf16.gmra.mrb[12].mxu0 %vm63_vm1, %v60_v27 }
  0x1f   :  { %17 = vsyncpa [#allocation5], 0  ;;  %5035 = vmatpush3.bf16.msra.mxu0 %v5114_v32  ;;  %v61_v33 = vld [vmem:[%s7563_s8] ss:$0 sm:$0xff]  ;;  %vm246_vm2 = vcmask 523264   ;;  %v5115_v26 = vld [vmem:[%s7558_s3 + $0x18] sm:$0xff]  }
  0x20   :  { %5036 = vmatprep.subr.bf16.mxu0 %v5115_v26  ;;  %v574_v27 = vld [vmem:[%s7559_s4] sm:$0xff]  ;;  %vm2162_vm3 = vcmask 1041409  }
  0x21   :  { %v578_v28 = vld [vmem:[%s7559_s4 + $0x20] sm:$0xff] }
  0x22   :  { %v582_v29 = vld [vmem:[%s7559_s4 + $0x40] sm:$0xff]  ;;  %v4531_v30 = vcombine.high %v574_v27, %v578_v28  ;;  %v4530_v32 = vcombine.low %v574_v27, %v578_v28 }
  0x23   :  { %5037 = vmatpush3.bf16.msra.mxu0 %v5115_v26  ;;  %v586_v31 = vld [vmem:[%s7559_s4 + $0x60] sm:$0xff] }
  0x24   :  { %999 = vmatprep.subr.bf16.mxu0 %v4531_v30  ;;  %5054 = vmatprep.subr.bf16.mxu1 %v4531_v30 }
  0xd9   :  { %v4992_v34 = vpop.f32.mrb[0].mxu0 }
  0xda   :  { %v135_v35 = vadd.f32 %v4992_v34, %v61_v33  ;;  %v126_v36 = vpop.f32.mrb[1].mxu0  ;;  %v590_v34 = vld [vmem:[%s7559_s4 + $0x80] sm:$0xff] }
  0xdb   :  { %v127_v37 = vadd.f32 %v126_v36, %v61_v33  ;;  %v4993_v38 = vpop.f32.mrb[2].mxu0  ;;  %v4538_v36 = vcombine.low %v582_v29, %v586_v31 }
  0xdc   :  { %v138_v39 = vadd.f32 %v4993_v38, %v61_v33  ;;  %v129_v40 = vpop.f32.mrb[3].mxu0  ;;  %v191_v42 = vmax.f32 %v135_v35, 0.0  ;;  %v594_v35 = vld [vmem:[%s7559_s4 + $0xa0] sm:$0xff] }
  0xdd   :  { %v130_v41 = vadd.f32 %v129_v40, %v61_v33  ;;  %v189_v44 = vmax.f32 %v127_v37, 0.0  ;;  %v4547_v37 = vcombine.high %v590_v34, %v594_v35  ;;  %v598_v38 = vld [vmem:[%s7559_s4 + $0xc0] sm:$0xff]  ;;  %v5836_v40 = vcombine.low %v590_v34, %v594_v35 }
  0xde   :  { %v192_v43 = vmax.f32 %v138_v39, 0.0  ;;  %v602_v39 = vld [vmem:[%s7559_s4 + $0xe0] sm:$0xff] }
  0xdf   :  { %v190_v45 = vmax.f32 %v130_v41, 0.0  ;;  %v5838_v41 = vcombine.high %v598_v38, %v602_v39 }
  0xe0   :  { %v206_v46 = vpack.c.bf16 %v192_v43, %v191_v42  ;;  %v606_v42 = vld [vmem:[%s7559_s4 + $0x100] sm:$0xff] }
  0xe1   :  { %v4996_v47 = vpop.f32.mrb[4].mxu0  ;;  %v205_v48 = vpack.c.bf16 %v190_v45, %v189_v44  ;;  %v610_v43 = vld [vmem:[%s7559_s4 + $0x120] sm:$0xff]  ;;  %v5848_v44 = vcombine.low %v598_v38, %v602_v39 }
  0xe2   :  { %v151_v49 = vadd.f32 %v4996_v47, %v61_v33  ;;  %v142_v50 = vpop.f32.mrb[5].mxu0  ;;  %v5850_v45 = vcombine.high %v606_v42, %v610_v43  ;;  %v618_v47 = vld [vmem:[%s7559_s4 + $0x160] sm:$0xff] }
  0xe3   :  { %v143_v51 = vadd.f32 %v142_v50, %v61_v33  ;;  %v4997_v52 = vpop.f32.mrb[6].mxu0  ;;  %5014 = vmatprep.mubr.msk.bf16.mxu1 %vm246_vm2, %v205_v48  ;;  %v5860_v48 = vcombine.low %v606_v42, %v610_v43 }
  0xe4   :  { %v154_v53 = vadd.f32 %v4997_v52, %v61_v33  ;;  %v145_v54 = vpop.f32.mrb[7].mxu0  ;;  %5015 = vmatmul.mubr.msk.bf16.vlgmr.msra.gmra.mrb[0].mxu1 %vm246_vm2, %v206_v46  ;;  %v195_v56 = vmax.f32 %v151_v49, 0.0  ;;  %v614_v46 = vld [vmem:[%s7559_s4 + $0x140] sm:$0xff] }
  0xe5   :  { %v146_v55 = vadd.f32 %v145_v54, %v61_v33  ;;  %v193_v58 = vmax.f32 %v143_v51, 0.0  ;;  %5062 = vmatpush1.bf16.msra.mxu1 %v4530_v32  ;;  %v5862_v49 = vcombine.high %v614_v46, %v618_v47  ;;  %v5866_v50 = vcombine.low %v614_v46, %v618_v47  ;;  %v5872_v51 = vld [vmem:[%s7563_s8 + $0x1] ss:$0 sm:$0xff] }
  0xe6   :  { %v196_v57 = vmax.f32 %v154_v53, 0.0 }
  0xe7   :  { %v194_v59 = vmax.f32 %v146_v55, 0.0 }
  0xe8   :  { %v208_v60 = vpack.c.bf16 %v196_v57, %v195_v56 }
  0xe9   :  { %v207_v61 = vpack.c.bf16 %v194_v59, %v193_v58  ;;  %v5000_v62 = vpop.f32.mrb[8].mxu0 }
  0xea   :  { %v167_v63 = vadd.f32 %v5000_v62, %v61_v33  ;;  %v158_v0 = vpop.f32.mrb[9].mxu0 }
  0xeb   :  { %v159_v1 = vadd.f32 %v158_v0, %v61_v33  ;;  %v5001_v2 = vpop.f32.mrb[10].mxu0  ;;  %5018 = vmatprep.mubr.msk.bf16.mxu1 %vm246_vm2, %v207_v61 }
  0xec   :  { %v170_v3 = vadd.f32 %v5001_v2, %v61_v33  ;;  %v161_v4 = vpop.f32.mrb[11].mxu0  ;;  %5019 = vmatmul.mubr.msk.bf16.gmra.mrb[4].mxu1 %vm246_vm2, %v208_v60  ;;  %v199_v6 = vmax.f32 %v167_v63, 0.0 }
  0xed   :  { %v162_v5 = vadd.f32 %v161_v4, %v61_v33  ;;  %v197_v8 = vmax.f32 %v159_v1, 0.0 }
  0xee   :  { %v200_v7 = vmax.f32 %v170_v3, 0.0 }
  0xef   :  { %v198_v9 = vmax.f32 %v162_v5, 0.0 }
  0xf0   :  { %v210_v10 = vpack.c.bf16 %v200_v7, %v199_v6 }
  0xf1   :  { %v209_v11 = vpack.c.bf16 %v198_v9, %v197_v8  ;;  %v5004_v12 = vpop.f32.mrb[12].mxu0 }
  0xf2   :  { %v183_v13 = vadd.f32 %v5004_v12, %v61_v33  ;;  %v174_v14 = vpop.f32.mrb[13].mxu0 }
  0xf3   :  { %v175_v15 = vadd.f32 %v174_v14, %v61_v33  ;;  %v5005_v16 = vpop.f32.mrb[14].mxu0  ;;  %5022 = vmatprep.mubr.msk.bf16.mxu1 %vm246_vm2, %v209_v11 }
  0xf4   :  { %v203_v17 = vmax.f32 %v183_v13, 0.0  ;;  %v186_v18 = vadd.f32 %v5005_v16, %v61_v33  ;;  %v177_v19 = vpop.f32.mrb[15].mxu0  ;;  %5023 = vmatmul.mubr.msk.bf16.gmra.mrb[8].mxu1 %vm246_vm2, %v210_v10 }
  0xf5   :  { %v201_v20 = vmax.f32 %v175_v15, 0.0  ;;  %v178_v21 = vadd.f32 %v177_v19, %v61_v33  ;;  %v4539_v33 = vcombine.high %v582_v29, %v586_v31 }
  0xf6   :  { %v204_v22 = vmax.f32 %v186_v18, 0.0 }
  0xf7   :  { %v202_v23 = vmax.f32 %v178_v21, 0.0  ;;  %5055 = vmatprep.subr.bf16.mxu1 %v4539_v33 }
  0xf8   :  { %v212_v24 = vpack.c.bf16 %v204_v22, %v203_v17  ;;  %5063 = vmatpush1.bf16.msra.mxu1 %v4538_v36 }
  0xf9   :  { %v211_v25 = vpack.c.bf16 %v202_v23, %v201_v20  ;;  %5056 = vmatprep.subr.bf16.mxu1 %v4547_v37 }
  0xfb   :  { %5026 = vmatprep.mubr.msk.bf16.mxu1 %vm246_vm2, %v211_v25 }
  0xfc   :  { %5027 = vmatmul.mubr.msk.bf16.gmra.mrb[12].mxu1 %vm246_vm2, %v212_v24 }
  0xfd   :  { %5064 = vmatpush1.bf16.msra.mxu1 %v5836_v40 }
  0xfe   :  { %5057 = vmatprep.subr.bf16.mxu1 %v5838_v41 }
 0x101   :  { %5065 = vmatpush1.bf16.msra.mxu1 %v5848_v44 }
 0x102   :  { %5058 = vmatprep.subr.bf16.mxu1 %v5850_v45 }
 0x105   :  { %5066 = vmatpush1.bf16.msra.mxu1 %v5860_v48 }
 0x106   :  { %5059 = vmatprep.subr.bf16.mxu1 %v5862_v49 }
 0x109   :  { %5067 = vmatpush1.bf16.msra.mxu1 %v5866_v50 }
 0x1b7   :  { %v5016_v52 = vpop.f32.mrb[0].mxu1 }
 0x1b8   :  { %v314_v53 = vadd.f32 %v5016_v52, %v5872_v51  ;;  %v305_v54 = vpop.f32.mrb[1].mxu1  ;;  %v575_v52 = vld [vmem:[%s7559_s4 + $0x8] sm:$0xff] }
 0x1b9   :  { %v306_v55 = vadd.f32 %v305_v54, %v5872_v51  ;;  %v5017_v56 = vpop.f32.mrb[2].mxu1 }
 0x1ba   :  { %v317_v57 = vadd.f32 %v5017_v56, %v5872_v51  ;;  %v308_v58 = vpop.f32.mrb[3].mxu1  ;;  %v370_v60 = vmax.f32 %v314_v53, 0.0  ;;  %v579_v53 = vld [vmem:[%s7559_s4 + $0x28] sm:$0xff] }
 0x1bb   :  { %v309_v59 = vadd.f32 %v308_v58, %v5872_v51  ;;  %v368_v62 = vmax.f32 %v306_v55, 0.0  ;;  %v4533_v54 = vcombine.high %v575_v52, %v579_v53  ;;  %v5660_v55 = vmov 0   ;;  %v5933_v58 = vld [vmem:[%s7559_s4 + $0x30] sm:$0xff] }
 0x1bc   :  { %v371_v61 = vmax.f32 %v317_v57, 0.0  ;;  %v4532_v56 = vcombine.low %v575_v52, %v579_v53  ;;  %1071 = vmatprep.mubr.bf16.mxu1 %v5660_v55  ;;  %v5928_v57 = vld [vmem:[%s7559_s4 + $0x10] sm:$0xff]  ;;  %v619_v52 = vld [vmem:[%s7559_s4 + $0x168] sm:$0xff] }
 0x1bd   :  { %v369_v63 = vmax.f32 %v309_v59, 0.0  ;;  %v4534_v59 = vcombine.low %v5928_v57, %v5933_v58  ;;  %v584_v53 = vld [vmem:[%s7559_s4 + $0x50] sm:$0xff] }
 0x1be   :  { %v385_v0 = vpack.c.bf16 %v371_v61, %v370_v60  ;;  %v4535_v60 = vcombine.high %v5928_v57, %v5933_v58  ;;  %v5942_v61 = vld [vmem:[%s7563_s8 + $0x2] ss:$0 sm:$0xff]  ;;  %v635_v57 = vld [vmem:[%s7559_s4 + $0x1e8] sm:$0xff]  ;;  %v600_v58 = vld [vmem:[%s7559_s4 + $0xd0] sm:$0xff] }
 0x1bf   :  { %v384_v1 = vpack.c.bf16 %v369_v63, %v368_v62  ;;  %v5020_v2 = vpop.f32.mrb[4].mxu1 }
 0x1c0   :  { %v330_v3 = vadd.f32 %v5020_v2, %v5872_v51  ;;  %v321_v4 = vpop.f32.mrb[5].mxu1 }
 0x1c1   :  { %v322_v5 = vadd.f32 %v321_v4, %v5872_v51  ;;  %v5021_v6 = vpop.f32.mrb[6].mxu1  ;;  %5038 = vmatprep.mubr.msk.bf16.mxu0 %vm246_vm2, %v384_v1 }
 0x1c2   :  { %v333_v7 = vadd.f32 %v5021_v6, %v5872_v51  ;;  %v324_v8 = vpop.f32.mrb[7].mxu1  ;;  %5039 = vmatmul.mubr.msk.bf16.vlgmr.msra.gmra.mrb[16].mxu0 %vm246_vm2, %v385_v0  ;;  %v374_v10 = vmax.f32 %v330_v3, 0.0 }
 0x1c3   :  { %v325_v9 = vadd.f32 %v324_v8, %v5872_v51  ;;  %1000 = vmatpush1.bf16.msra.mxu0 %v4530_v32  ;;  %v372_v12 = vmax.f32 %v322_v5, 0.0  ;;  %v583_v8 = vld [vmem:[%s7559_s4 + $0x48] sm:$0xff] }
 0x1c4   :  { %v375_v11 = vmax.f32 %v333_v7, 0.0  ;;  %1001 = vmatprep.subr.bf16.mxu0 %v4539_v33 }
 0x1c5   :  { %v373_v13 = vmax.f32 %v325_v9, 0.0  ;;  %v587_v9 = vld [vmem:[%s7559_s4 + $0x68] sm:$0xff] }
 0x1c6   :  { %v387_v14 = vpack.c.bf16 %v375_v11, %v374_v10 }
 0x1c7   :  { %v386_v15 = vpack.c.bf16 %v373_v13, %v372_v12  ;;  %v5024_v16 = vpop.f32.mrb[8].mxu1  ;;  %1002 = vmatpush1.bf16.msra.mxu0 %v4538_v36 }
 0x1c8   :  { %v346_v17 = vadd.f32 %v5024_v16, %v5872_v51  ;;  %v337_v18 = vpop.f32.mrb[9].mxu1  ;;  %1003 = vmatprep.subr.bf16.mxu0 %v4547_v37 }
 0x1c9   :  { %v338_v19 = vadd.f32 %v337_v18, %v5872_v51  ;;  %v5025_v20 = vpop.f32.mrb[10].mxu1  ;;  %5042 = vmatprep.mubr.msk.bf16.mxu0 %vm246_vm2, %v386_v15  ;;  %v4541_v15 = vcombine.high %v583_v8, %v587_v9  ;;  %v591_v18 = vld [vmem:[%s7559_s4 + $0x88] sm:$0xff] }
 0x1ca   :  { %v349_v21 = vadd.f32 %v5025_v20, %v5872_v51  ;;  %v340_v22 = vpop.f32.mrb[11].mxu1  ;;  %5043 = vmatmul.mubr.msk.bf16.gmra.mrb[20].mxu0 %vm246_vm2, %v387_v14  ;;  %v378_v24 = vmax.f32 %v346_v17, 0.0 }
 0x1cb   :  { %v341_v23 = vadd.f32 %v340_v22, %v5872_v51  ;;  %1004 = vmatpush1.bf16.msra.mxu0 %v5836_v40  ;;  %v376_v26 = vmax.f32 %v338_v19, 0.0  ;;  %v595_v19 = vld [vmem:[%s7559_s4 + $0xa8] sm:$0xff] }
 0x1cc   :  { %v379_v25 = vmax.f32 %v349_v21, 0.0  ;;  %1005 = vmatprep.subr.bf16.mxu0 %v5838_v41 }
 0x1cd   :  { %v377_v27 = vmax.f32 %v341_v23, 0.0 }
 0x1ce   :  { %v389_v28 = vpack.c.bf16 %v379_v25, %v378_v24  ;;  %v4540_v24 = vcombine.low %v583_v8, %v587_v9  ;;  %v592_v8 = vld [vmem:[%s7559_s4 + $0x90] sm:$0xff] }
 0x1cf   :  { %v388_v29 = vpack.c.bf16 %v377_v27, %v376_v26  ;;  %v5028_v30 = vpop.f32.mrb[12].mxu1  ;;  %1006 = vmatpush1.bf16.msra.mxu0 %v5848_v44  ;;  %v622_v44 = vld [vmem:[%s7559_s4 + $0x180] sm:$0xff]  ;;  %v4549_v26 = vcombine.high %v591_v18, %v595_v19  ;;  %v596_v9 = vld [vmem:[%s7559_s4 + $0xb0] sm:$0xff] }
 0x1d0   :  { %v362_v31 = vadd.f32 %v5028_v30, %v5872_v51  ;;  %v353_v32 = vpop.f32.mrb[13].mxu1  ;;  %1007 = vmatprep.subr.bf16.mxu0 %v5850_v45  ;;  %v626_v45 = vld [vmem:[%s7559_s4 + $0x1a0] sm:$0xff]  ;;  %v603_v30 = vld [vmem:[%s7559_s4 + $0xe8] sm:$0xff] }
 0x1d1   :  { %v354_v33 = vadd.f32 %v353_v32, %v5872_v51  ;;  %v5029_v34 = vpop.f32.mrb[14].mxu1  ;;  %5046 = vmatprep.mubr.msk.bf16.mxu0 %vm246_vm2, %v388_v29  ;;  %v4579_v46 = vcombine.high %v622_v44, %v626_v45  ;;  %v4578_v47 = vcombine.low %v622_v44, %v626_v45  ;;  %v599_v29 = vld [vmem:[%s7559_s4 + $0xc8] sm:$0xff] }
 0x1d2   :  { %v382_v35 = vmax.f32 %v362_v31, 0.0  ;;  %v365_v36 = vadd.f32 %v5029_v34, %v5872_v51  ;;  %v356_v37 = vpop.f32.mrb[15].mxu1  ;;  %5047 = vmatmul.mubr.msk.bf16.gmra.mrb[24].mxu0 %vm246_vm2, %v389_v28  ;;  %v4548_v34 = vcombine.low %v591_v18, %v595_v19 }
 0x1d3   :  { %v380_v38 = vmax.f32 %v354_v33, 0.0  ;;  %v357_v39 = vadd.f32 %v356_v37, %v5872_v51  ;;  %1008 = vmatpush1.bf16.msra.mxu0 %v5860_v48  ;;  %5060 = vmatprep.subr.bf16.mxu1 %v4579_v46  ;;  %v630_v48 = vld [vmem:[%s7559_s4 + $0x1c0] sm:$0xff]  ;;  %v4557_v37 = vcombine.high %v599_v29, %v603_v30 }
 0x1d4   :  { %v383_v40 = vmax.f32 %v365_v36, 0.0  ;;  %1009 = vmatprep.subr.bf16.mxu0 %v5862_v49  ;;  %v634_v49 = vld [vmem:[%s7559_s4 + $0x1e0] sm:$0xff]  ;;  %5068 = vmatpush1.bf16.msra.mxu1 %v4578_v47 }
 0x1d5   :  { %v381_v41 = vmax.f32 %v357_v39, 0.0  ;;  %v4586_v51 = vcombine.low %v630_v48, %v634_v49 }
 0x1d6   :  { %v391_v42 = vpack.c.bf16 %v383_v40, %v382_v35  ;;  %v607_v40 = vld [vmem:[%s7559_s4 + $0x108] sm:$0xff] }
 0x1d7   :  { %v390_v43 = vpack.c.bf16 %v381_v41, %v380_v38  ;;  %1010 = vmatpush1.bf16.msra.mxu0 %v5866_v50  ;;  %v4587_v50 = vcombine.high %v630_v48, %v634_v49  ;;  %v611_v41 = vld [vmem:[%s7559_s4 + $0x128] sm:$0xff] }
 0x1d8   :  { %1011 = vmatprep.subr.bf16.mxu0 %v4579_v46  ;;  %v4556_v46 = vcombine.low %v599_v29, %v603_v30  ;;  %v4565_v48 = vcombine.high %v607_v40, %v611_v41  ;;  %v615_v49 = vld [vmem:[%s7559_s4 + $0x148] sm:$0xff] }
 0x1d9   :  { %5050 = vmatprep.mubr.msk.bf16.mxu0 %vm246_vm2, %v390_v43  ;;  %5061 = vmatprep.subr.bf16.mxu1 %v4587_v50 }
 0x1da   :  { %5051 = vmatmul.mubr.msk.bf16.gmra.mrb[28].mxu0 %vm246_vm2, %v391_v42  ;;  %5069 = vmatpush1.bf16.msra.mxu1 %v4586_v51 }
 0x1db   :  { %1012 = vmatpush1.bf16.msra.mxu0 %v4578_v47  ;;  %1031 = vmatprep.mubr.bf16.mxu0 %v5660_v55 }
 0x1dc   :  { %1013 = vmatprep.subr.bf16.mxu0 %v4587_v50  ;;  %1225 = vmatprep.subr.bf16.mxu1 %v4535_v60 }
 0x1df   :  { %1014 = vmatpush1.bf16.msra.mxu0 %v4586_v51 }
 0x1e0   :  { %1112 = vmatprep.subr.bf16.mxu0 %v4533_v54  ;;  %v588_v54 = vld [vmem:[%s7559_s4 + $0x70] sm:$0xff] }
 0x295   :  { %v5040_v62 = vpop.f32.mrb[16].mxu0 }
 0x296   :  { %v492_v63 = vadd.f32 %v5040_v62, %v5942_v61  ;;  %v483_v0 = vpop.f32.mrb[17].mxu0 }
 0x297   :  { %v484_v1 = vadd.f32 %v483_v0, %v5942_v61  ;;  %v5041_v2 = vpop.f32.mrb[18].mxu0 }
 0x298   :  { %v495_v3 = vadd.f32 %v5041_v2, %v5942_v61  ;;  %v486_v4 = vpop.f32.mrb[19].mxu0  ;;  %v548_v6 = vmax.f32 %v492_v63, 0.0  ;;  %v4564_v63 = vcombine.low %v607_v40, %v611_v41  ;;  %v4573_v2 = vcombine.high %v615_v49, %v619_v52  ;;  %v616_v41 = vld [vmem:[%s7559_s4 + $0x150] sm:$0xff] }
 0x299   :  { %v487_v5 = vadd.f32 %v486_v4, %v5942_v61  ;;  %v546_v10 = vmax.f32 %v484_v1, 0.0  ;;  %v623_v4 = vld [vmem:[%s7559_s4 + $0x188] sm:$0xff] }
 0x29a   :  { %v549_v7 = vmax.f32 %v495_v3, 0.0  ;;  %v4543_v3 = vcombine.high %v584_v53, %v588_v54 }
 0x29b   :  { %v547_v11 = vmax.f32 %v487_v5, 0.0 }
 0x29c   :  { %v5954_v12 = vpack.c.bf16 %v549_v7, %v548_v6  ;;  %v627_v7 = vld [vmem:[%s7559_s4 + $0x1a8] sm:$0xff] }
 0x29d   :  { %v5956_v13 = vpack.c.bf16 %v547_v11, %v546_v10  ;;  %v5044_v14 = vpop.f32.mrb[20].mxu0  ;;  %v4581_v19 = vcombine.high %v623_v4, %v627_v7 }
 0x29e   :  { %v508_v16 = vadd.f32 %v5044_v14, %v5942_v61  ;;  %v499_v17 = vpop.f32.mrb[21].mxu0 }
 0x29f   :  { %v500_v20 = vadd.f32 %v499_v17, %v5942_v61  ;;  %v5045_v21 = vpop.f32.mrb[22].mxu0  ;;  %1032 = vmatmul.mubr.bf16.vlgmr.msra.gmra.mrb[32].mxu0 %v5956_v13  ;;  %v4542_v17 = vcombine.low %v584_v53, %v588_v54  ;;  %v632_v53 = vld [vmem:[%s7559_s4 + $0x1d0] sm:$0xff] }
 0x2a0   :  { %v511_v22 = vadd.f32 %v5045_v21, %v5942_v61  ;;  %v502_v23 = vpop.f32.mrb[23].mxu0  ;;  %1113 = vmatpush1.bf16.msra.mxu0 %v4532_v56  ;;  %1041 = vmatprep.mubr.bf16.mxu0 %v5660_v55  ;;  %v552_v27 = vmax.f32 %v508_v16, 0.0  ;;  %v4572_v16 = vcombine.low %v615_v49, %v619_v52  ;;  %v631_v21 = vld [vmem:[%s7559_s4 + $0x1c8] sm:$0xff]  ;;  %v636_v54 = vld [vmem:[%s7559_s4 + $0x1f0] sm:$0xff] }
 0x2a1   :  { %v503_v25 = vadd.f32 %v502_v23, %v5942_v61  ;;  %1114 = vmatprep.subr.bf16.mxu0 %v4541_v15  ;;  %v550_v31 = vmax.f32 %v500_v20, 0.0  ;;  %v4551_v20 = vcombine.high %v592_v8, %v596_v9  ;;  %v4589_v29 = vcombine.high %v631_v21, %v635_v57 }
 0x2a2   :  { %v553_v28 = vmax.f32 %v511_v22, 0.0 }
 0x2a3   :  { %v551_v32 = vmax.f32 %v503_v25, 0.0 }
 0x2a4   :  { %v5976_v33 = vpack.c.bf16 %v553_v28, %v552_v27  ;;  %1115 = vmatpush1.bf16.msra.mxu0 %v4540_v24  ;;  %v4550_v27 = vcombine.low %v592_v8, %v596_v9  ;;  %v609_v9 = vld [vmem:[%s7559_s4 + $0x118] sm:$0xff] }
 0x2a5   :  { %v5978_v35 = vpack.c.bf16 %v551_v32, %v550_v31  ;;  %v5048_v36 = vpop.f32.mrb[24].mxu0  ;;  %1116 = vmatprep.subr.bf16.mxu0 %v4549_v26  ;;  %v4580_v26 = vcombine.low %v623_v4, %v627_v7  ;;  %v608_v31 = vld [vmem:[%s7559_s4 + $0x110] sm:$0xff]  ;;  %v605_v4 = vld [vmem:[%s7559_s4 + $0xf8] sm:$0xff]  ;;  %v4590_v7 = vcombine.low %v632_v53, %v636_v54 }
 0x2a6   :  { %v524_v38 = vadd.f32 %v5048_v36, %v5942_v61  ;;  %v515_v39 = vpop.f32.mrb[25].mxu0  ;;  %v612_v32 = vld [vmem:[%s7559_s4 + $0x130] sm:$0xff]  ;;  %v581_v36 = vld [vmem:[%s7559_s4 + $0x38] sm:$0xff] }
 0x2a7   :  { %v516_v42 = vadd.f32 %v515_v39, %v5942_v61  ;;  %v5049_v43 = vpop.f32.mrb[26].mxu0  ;;  %1042 = vmatmul.mubr.bf16.gmra.mrb[36].mxu0 %v5954_v12  ;;  %v4567_v39 = vcombine.high %v608_v31, %v612_v32 }
 0x2a8   :  { %v527_v44 = vadd.f32 %v5049_v43, %v5942_v61  ;;  %v518_v45 = vpop.f32.mrb[27].mxu0  ;;  %1117 = vmatpush1.bf16.msra.mxu0 %v4548_v34  ;;  %1051 = vmatprep.mubr.bf16.mxu0 %v5660_v55  ;;  %v556_v50 = vmax.f32 %v524_v38, 0.0  ;;  %v577_v34 = vld [vmem:[%s7559_s4 + $0x18] sm:$0xff]  ;;  %v4566_v43 = vcombine.low %v608_v31, %v612_v32  ;;  %v5122_v32 = vld [vmem:[%s7560_s5 + $0x20] ss:$16 sps:$4 sm:$0xff]  }
 0x2a9   :  { %v519_v47 = vadd.f32 %v518_v45, %v5942_v61  ;;  %1118 = vmatprep.subr.bf16.mxu0 %v4557_v37  ;;  %v554_v56 = vmax.f32 %v516_v42, 0.0  ;;  %v4588_v37 = vcombine.low %v631_v21, %v635_v57  ;;  %v4537_v40 = vcombine.high %v577_v34, %v581_v36  ;;  %v620_v42 = vld [vmem:[%s7559_s4 + $0x170] sm:$0xff]  ;;  %v589_v45 = vld [vmem:[%s7559_s4 + $0x78] sm:$0xff] }
 0x2aa   :  { %v557_v51 = vmax.f32 %v527_v44, 0.0  ;;  %v585_v44 = vld [vmem:[%s7559_s4 + $0x58] sm:$0xff]  ;;  %v4536_v49 = vcombine.low %v577_v34, %v581_v36  ;;  %v5130_v34 = vld [vmem:[%s7560_s5 + $0x44] ss:$16 sps:$4 sm:$0xff]  }
 0x2ab   :  { %v555_v60 = vmax.f32 %v519_v47, 0.0  ;;  %v624_v47 = vld [vmem:[%s7559_s4 + $0x190] sm:$0xff]  ;;  %v637_v57 = vld [vmem:[%s7559_s4 + $0x1f8] sm:$0xff] }
 0x2ac   :  { %v6004_v62 = vpack.c.bf16 %v557_v51, %v556_v50  ;;  %1119 = vmatpush1.bf16.msra.mxu0 %v4556_v46  ;;  %v4575_v46 = vcombine.high %v616_v41, %v620_v42  ;;  %v4545_v50 = vcombine.high %v585_v44, %v589_v45  ;;  %v4574_v51 = vcombine.low %v616_v41, %v620_v42  ;;  %v5127_v31 = vld [vmem:[%s7560_s5 + $0x2c] ss:$16 sps:$4 sm:$0xff]   ;;  %v5134_v41 = vld [vmem:[%s7560_s5 + $0x60] ss:$16 sps:$4 sm:$0xff]   ;;  %v5142_v42 = vld [vmem:[%s7560_s5 + $0x84] ss:$16 sps:$4 sm:$0xff]  }
 0x2ad   :  { %v6006_v0 = vpack.c.bf16 %v555_v60, %v554_v56  ;;  %v5052_v1 = vpop.f32.mrb[28].mxu0  ;;  %1120 = vmatprep.subr.bf16.mxu0 %v4565_v48  ;;  %v628_v48 = vld [vmem:[%s7559_s4 + $0x1b0] sm:$0xff]  ;;  %v4544_v56 = vcombine.low %v585_v44, %v589_v45  ;;  %v593_v60 = vld [vmem:[%s7559_s4 + $0x98] sm:$0xff] }
 0x2ae   :  { %v540_v5 = vadd.f32 %v5052_v1, %v5942_v61  ;;  %v531_v6 = vpop.f32.mrb[29].mxu0  ;;  %v4583_v52 = vcombine.high %v624_v47, %v628_v48  ;;  %v4582_v1 = vcombine.low %v624_v47, %v628_v48  ;;  %v5133_v36 = vld [vmem:[%s7560_s5 + $0x4c] ss:$16 sps:$4 sm:$0xff]   ;;  %v5140_v44 = vld [vmem:[%s7560_s5 + $0x80] ss:$16 sps:$4 sm:$0xff]  }
 0x2af   :  { %v532_v10 = vadd.f32 %v531_v6, %v5942_v61  ;;  %v5053_v11 = vpop.f32.mrb[30].mxu0  ;;  %1052 = vmatmul.mubr.bf16.gmra.mrb[40].mxu0 %v5978_v35  ;;  %1072 = vmatmul.mubr.bf16.vlgmr.msra.gmra.mrb[16].mxu1 %v6006_v0  ;;  %v5143_v45 = vld [vmem:[%s7560_s5 + $0x88] ss:$16 sps:$4 sm:$0xff]   ;;  %v5151_v47 = vld [vmem:[%s7560_s5 + $0xac] ss:$16 sps:$4 sm:$0xff]  }
 0x2b0   :  { %v543_v14 = vadd.f32 %v5053_v11, %v5942_v61  ;;  %v534_v15 = vpop.f32.mrb[31].mxu0  ;;  %1121 = vmatpush1.bf16.msra.mxu0 %v4564_v63  ;;  %1226 = vmatpush1.bf16.msra.mxu1 %v4534_v59  ;;  %v560_v22 = vmax.f32 %v540_v5, 0.0  ;;  %v604_v59 = vld [vmem:[%s7559_s4 + $0xf0] sm:$0xff]  ;;  %v597_v63 = vld [vmem:[%s7559_s4 + $0xb8] sm:$0xff] }
 0x2b1   :  { %v535_v18 = vadd.f32 %v534_v15, %v5942_v61  ;;  %1122 = vmatprep.subr.bf16.mxu0 %v4573_v2  ;;  %1227 = vmatprep.subr.bf16.mxu1 %v4543_v3  ;;  %v558_v61 = vmax.f32 %v532_v10, 0.0  ;;  %v4559_v30 = vcombine.high %v600_v58, %v604_v59  ;;  %v4558_v38 = vcombine.low %v600_v58, %v604_v59  ;;  %v601_v3 = vld [vmem:[%s7559_s4 + $0xd8] sm:$0xff]  ;;  %v5146_v48 = vld [vmem:[%s7560_s5 + $0xa0] ss:$16 sps:$4 sm:$0xff]  }
 0x2b2   :  { %v561_v23 = vmax.f32 %v543_v14, 0.0  ;;  %1061 = vmatprep.mubr.bf16.mxu0 %v5660_v55  ;;  %1081 = vmatprep.mubr.bf16.mxu1 %v5660_v55  ;;  %v4591_v2 = vcombine.high %v632_v53, %v636_v54  ;;  %v4553_v5 = vcombine.high %v593_v60, %v597_v63  ;;  %v4552_v6 = vcombine.low %v593_v60, %v597_v63  ;;  %v613_v10 = vld [vmem:[%s7559_s4 + $0x138] sm:$0xff]  ;;  %v5160_v53 = vld [vmem:[%s7560_s5 + $0xe4] ss:$16 sps:$4 sm:$0xff]  }
 0x2b3   :  { %v559_v24 = vmax.f32 %v535_v18, 0.0  ;;  %v4561_v8 = vcombine.high %v601_v3, %v605_v4  ;;  %v4560_v11 = vcombine.low %v601_v3, %v605_v4  ;;  %v4569_v14 = vcombine.high %v609_v9, %v613_v10  ;;  %v617_v15 = vld [vmem:[%s7559_s4 + $0x158] sm:$0xff]  ;;  %v5166_v60 = vld [vmem:[%s7560_s5 + $0x104] ss:$16 sps:$4 sm:$0xff]  }
 0x2b4   :  { %v6043_v25 = vpack.c.bf16 %v561_v23, %v560_v22  ;;  %1123 = vmatpush1.bf16.msra.mxu0 %v4572_v16  ;;  %1228 = vmatpush1.bf16.msra.mxu1 %v4542_v17  ;;  %v621_v16 = vld [vmem:[%s7559_s4 + $0x178] sm:$0xff]  ;;  %v4568_v17 = vcombine.low %v609_v9, %v613_v10  ;;  %v5172_v3 = vld [vmem:[%s7560_s5 + $0x124] ss:$16 sps:$4 sm:$0xff]  }
 0x2b5   :  { %v6045_v28 = vpack.c.bf16 %v559_v24, %v558_v61  ;;  %1124 = vmatprep.subr.bf16.mxu0 %v4581_v19  ;;  %1229 = vmatprep.subr.bf16.mxu1 %v4551_v20  ;;  %v4577_v18 = vcombine.high %v617_v15, %v621_v16  ;;  %v625_v19 = vld [vmem:[%s7559_s4 + $0x198] sm:$0xff]  ;;  %v4576_v21 = vcombine.low %v617_v15, %v621_v16  ;;  %v5118_v24 = vld [vmem:[%s7560_s5 + $0x4] ss:$16 sps:$4 sm:$0xff]  }
 0x2b6   :  { %v629_v20 = vld [vmem:[%s7559_s4 + $0x1b8] sm:$0xff]  ;;  %v5184_v10 = vld [vmem:[%s7560_s5 + $0x164] ss:$16 sps:$4 sm:$0xff]  }
 0x2b7   :  { %1062 = vmatmul.mubr.bf16.gmra.mrb[44].mxu0 %v5976_v33  ;;  %1082 = vmatmul.mubr.bf16.gmra.mrb[20].mxu1 %v6004_v62  ;;  %v4585_v22 = vcombine.high %v625_v19, %v629_v20  ;;  %v633_v23 = vld [vmem:[%s7559_s4 + $0x1d8] sm:$0xff]  ;;  %v4584_v58 = vcombine.low %v625_v19, %v629_v20  ;;  %v5190_v15 = vld [vmem:[%s7560_s5 + $0x184] ss:$16 sps:$4 sm:$0xff]   ;;  %v5194_v20 = vld [vmem:[%s7560_s5 + $0x1a0] ss:$16 sps:$4 sm:$0xff]  }
 0x2b8   :  { %1125 = vmatpush1.bf16.msra.mxu0 %v4580_v26  ;;  %1230 = vmatpush1.bf16.msra.mxu1 %v4550_v27  ;;  %v4593_v59 = vcombine.high %v633_v23, %v637_v57  ;;  %v4592_v61 = vcombine.low %v633_v23, %v637_v57  ;;  %v5121_v26 = vld [vmem:[%s7560_s5 + $0xc] ss:$16 sps:$4 sm:$0xff]   ;;  %v5116_v27 = vld [vmem:[%s7560_s5] ss:$16 sps:$4 sm:$0xff]   ;;  %v5179_v9 = vld [vmem:[%s7560_s5 + $0x148] ss:$16 sps:$4 sm:$0xff]  }
 0x2b9   :  { %1126 = vmatprep.subr.bf16.mxu0 %v4589_v29  ;;  %1231 = vmatprep.subr.bf16.mxu1 %v4559_v30  ;;  %v5119_v29 = vld [vmem:[%s7560_s5 + $0x8] ss:$16 sps:$4 sm:$0xff]   ;;  %v5124_v30 = vld [vmem:[%s7560_s5 + $0x24] ss:$16 sps:$4 sm:$0xff]   ;;  %v5163_v54 = vld [vmem:[%s7560_s5 + $0xec] ss:$16 sps:$4 sm:$0xff]  }
 0x2ba   :  { %1091 = vmatprep.mubr.bf16.mxu1 %v5660_v55  ;;  %1144 = vmatprep.mubr.bf16.mxu0 %v5660_v55  ;;  %v5169_v63 = vld [vmem:[%s7560_s5 + $0x10c] ss:$16 sps:$4 sm:$0xff]   ;;  %v5196_v19 = vld [vmem:[%s7560_s5 + $0x1a4] ss:$16 sps:$4 sm:$0xff]   ;;  %v5200_v23 = vld [vmem:[%s7560_s5 + $0x1c0] ss:$16 sps:$4 sm:$0xff]  }
 0x2bb   :  { %v5175_v4 = vld [vmem:[%s7560_s5 + $0x12c] ss:$16 sps:$4 sm:$0xff]   ;;  %v5203_v57 = vld [vmem:[%s7560_s5 + $0x1c8] ss:$16 sps:$4 sm:$0xff]  }
 0x2bc   :  { %1127 = vmatpush1.bf16.msra.mxu0 %v4588_v37  ;;  %1232 = vmatpush1.bf16.msra.mxu1 %v4558_v38  ;;  %v5128_v37 = vld [vmem:[%s7560_s5 + $0x40] ss:$16 sps:$4 sm:$0xff]   ;;  %v5131_v38 = vld [vmem:[%s7560_s5 + $0x48] ss:$16 sps:$4 sm:$0xff]   ;;  %v5193_v16 = vld [vmem:[%s7560_s5 + $0x18c] ss:$16 sps:$4 sm:$0xff]  }
 0x2bd   :  { %1233 = vmatprep.subr.bf16.mxu1 %v4567_v39  ;;  %1338 = vmatprep.subr.bf16.mxu0 %v4537_v40  ;;  %v5136_v39 = vld [vmem:[%s7560_s5 + $0x64] ss:$16 sps:$4 sm:$0xff]   ;;  %v5139_v40 = vld [vmem:[%s7560_s5 + $0x6c] ss:$16 sps:$4 sm:$0xff]  }
 0x2bf   :  { %1092 = vmatmul.mubr.bf16.gmra.mrb[24].mxu1 %v6045_v28  ;;  %1145 = vmatmul.mubr.bf16.vlgmr.msra.gmra.mrb[48].mxu0 %v5956_v13 }
 0x2c0   :  { %1234 = vmatpush1.bf16.msra.mxu1 %v4566_v43  ;;  %1101 = vmatprep.mubr.bf16.mxu1 %v5660_v55  ;;  %v5145_v43 = vld [vmem:[%s7560_s5 + $0x8c] ss:$16 sps:$4 sm:$0xff]  }
 0x2c1   :  { %1235 = vmatprep.subr.bf16.mxu1 %v4575_v46  ;;  %1154 = vmatprep.mubr.bf16.mxu0 %v5660_v55  ;;  %v5148_v46 = vld [vmem:[%s7560_s5 + $0xa4] ss:$16 sps:$4 sm:$0xff]  }
 0x2c2   :  { %1339 = vmatpush1.bf16.msra.mxu0 %v4536_v49  ;;  %v5154_v49 = vld [vmem:[%s7560_s5 + $0xc4] ss:$16 sps:$4 sm:$0xff]  }
 0x2c3   :  { %1340 = vmatprep.subr.bf16.mxu0 %v4545_v50  ;;  %v5157_v50 = vld [vmem:[%s7560_s5 + $0xcc] ss:$16 sps:$4 sm:$0xff]  }
 0x2c4   :  { %1236 = vmatpush1.bf16.msra.mxu1 %v4574_v51  ;;  %v5152_v51 = vld [vmem:[%s7560_s5 + $0xc0] ss:$16 sps:$4 sm:$0xff]  }
 0x2c5   :  { %1237 = vmatprep.subr.bf16.mxu1 %v4583_v52  ;;  %v5155_v52 = vld [vmem:[%s7560_s5 + $0xc8] ss:$16 sps:$4 sm:$0xff]  }
 0x2c6   :  { %1341 = vmatpush1.bf16.msra.mxu0 %v4544_v56  ;;  %v5158_v56 = vld [vmem:[%s7560_s5 + $0xe0] ss:$16 sps:$4 sm:$0xff]  }
 0x2c7   :  { %1102 = vmatmul.mubr.bf16.gmra.mrb[28].mxu1 %v6043_v25  ;;  %1155 = vmatmul.mubr.bf16.gmra.mrb[52].mxu0 %v5954_v12 }
 0x2c8   :  { %1238 = vmatpush1.bf16.msra.mxu1 %v4582_v1  ;;  %1164 = vmatprep.mubr.bf16.mxu0 %v5660_v55  ;;  %v5164_v1 = vld [vmem:[%s7560_s5 + $0x100] ss:$16 sps:$4 sm:$0xff]  }
 0x2c9   :  { %1239 = vmatprep.subr.bf16.mxu1 %v4591_v2  ;;  %1257 = vmatprep.mubr.bf16.mxu1 %v5660_v55  ;;  %v5167_v2 = vld [vmem:[%s7560_s5 + $0x108] ss:$16 sps:$4 sm:$0xff]  }
 0x2ca   :  { %1342 = vmatprep.subr.bf16.mxu0 %v4553_v5  ;;  %v5170_v5 = vld [vmem:[%s7560_s5 + $0x120] ss:$16 sps:$4 sm:$0xff]  }
 0x2cb   :  { %1343 = vmatpush1.bf16.msra.mxu0 %v4552_v6  ;;  %v5178_v6 = vld [vmem:[%s7560_s5 + $0x144] ss:$16 sps:$4 sm:$0xff]  }
 0x2cc   :  { %1240 = vmatpush1.bf16.msra.mxu1 %v4590_v7  ;;  %1344 = vmatprep.subr.bf16.mxu0 %v4561_v8  ;;  %v5181_v7 = vld [vmem:[%s7560_s5 + $0x14c] ss:$16 sps:$4 sm:$0xff]   ;;  %v5176_v8 = vld [vmem:[%s7560_s5 + $0x140] ss:$16 sps:$4 sm:$0xff]  }
 0x2cd   :  { %3467 = vmatprep.subr.bf16.mxu1 %v5118_v24  ;;  %v5214_v24 = vld [vmem:[%s7560_s5 + $0x204] ss:$16 sps:$4 sm:$0xff]  }
 0x2cf   :  { %1165 = vmatmul.mubr.bf16.gmra.mrb[56].mxu0 %v5978_v35  ;;  %1258 = vmatmul.mubr.bf16.vlgmr.msra.gmra.mrb[32].mxu1 %v5956_v13 }
 0x2d0   :  { %1174 = vmatprep.mubr.bf16.mxu0 %v5660_v55  ;;  %1267 = vmatprep.mubr.bf16.mxu1 %v5660_v55 }
 0x2d1   :  { %1345 = vmatpush1.bf16.msra.mxu0 %v4560_v11  ;;  %3468 = vmatpush1.bf16.msra.mxu1 %v5116_v27  ;;  %v5182_v11 = vld [vmem:[%s7560_s5 + $0x160] ss:$16 sps:$4 sm:$0xff]   ;;  %v639_v27 = vlaneseq }
 0x2d2   :  { %1346 = vmatprep.subr.bf16.mxu0 %v4569_v14  ;;  %3469 = vmatprep.subr.bf16.mxu1 %v5124_v30  ;;  %v5185_v14 = vld [vmem:[%s7560_s5 + $0x168] ss:$16 sps:$4 sm:$0xff]  }
 0x2d3   :  { %v4528_v30 = vld [vmem:[%s7563_s8 + $0x3] ss:$8 sm:$0xf] }
 0x2d5   :  { %1347 = vmatpush1.bf16.msra.mxu0 %v4568_v17  ;;  %3470 = vmatpush1.bf16.msra.mxu1 %v5122_v32  ;;  %v5188_v17 = vld [vmem:[%s7560_s5 + $0x180] ss:$16 sps:$4 sm:$0xff]  }
 0x2d6   :  { %1348 = vmatprep.subr.bf16.mxu0 %v4577_v18  ;;  %3471 = vmatprep.subr.bf16.mxu1 %v5130_v34  ;;  %v5191_v18 = vld [vmem:[%s7560_s5 + $0x188] ss:$16 sps:$4 sm:$0xff]  }
 0x2d7   :  { %1175 = vmatmul.mubr.bf16.gmra.mrb[60].mxu0 %v5976_v33  ;;  %1268 = vmatmul.mubr.bf16.gmra.mrb[36].mxu1 %v5954_v12 }
 0x2d8   :  { %1184 = vmatprep.mubr.bf16.mxu0 %v5660_v55  ;;  %1277 = vmatprep.mubr.bf16.mxu1 %v5660_v55 }
 0x2d9   :  { %1349 = vmatpush1.bf16.msra.mxu0 %v4576_v21  ;;  %3472 = vmatpush1.bf16.msra.mxu1 %v5128_v37  ;;  %v5202_v21 = vld [vmem:[%s7560_s5 + $0x1c4] ss:$16 sps:$4 sm:$0xff]  }
 0x2da   :  { %1350 = vmatprep.subr.bf16.mxu0 %v4585_v22  ;;  %3473 = vmatprep.subr.bf16.mxu1 %v5136_v39  ;;  %v5205_v22 = vld [vmem:[%s7560_s5 + $0x1cc] ss:$16 sps:$4 sm:$0xff]  }
 0x2dd   :  { %1351 = vmatpush1.bf16.msra.mxu0 %v4584_v58  ;;  %3474 = vmatpush1.bf16.msra.mxu1 %v5134_v41  ;;  %v5211_v58 = vld [vmem:[%s7560_s5 + $0x1ec] ss:$16 sps:$4 sm:$0xff]  }
 0x2de   :  { %1352 = vmatprep.subr.bf16.mxu0 %v4593_v59  ;;  %3475 = vmatprep.subr.bf16.mxu1 %v5142_v42  ;;  %v5206_v59 = vld [vmem:[%s7560_s5 + $0x1e0] ss:$16 sps:$4 sm:$0xff]  }
 0x2df   :  { %1185 = vmatmul.mubr.bf16.gmra.mrb[64].mxu0 %v6006_v0  ;;  %1278 = vmatmul.mubr.bf16.gmra.mrb[40].mxu1 %v5978_v35 }
 0x2e0   :  { %1194 = vmatprep.mubr.bf16.mxu0 %v5660_v55  ;;  %1287 = vmatprep.mubr.bf16.mxu1 %v5660_v55 }
 0x2e1   :  { %1353 = vmatpush1.bf16.msra.mxu0 %v4592_v61  ;;  %3476 = vmatpush1.bf16.msra.mxu1 %v5140_v44  ;;  %v5209_v61 = vld [vmem:[%s7560_s5 + $0x1e8] ss:$16 sps:$4 sm:$0xff]  }
 0x2e2   :  { %3631 = vmatprep.subr.bf16.mxu0 %v5121_v26  ;;  %3477 = vmatprep.subr.bf16.mxu1 %v5148_v46  ;;  %v5217_v26 = vld [vmem:[%s7560_s5 + $0x20c] ss:$16 sps:$4 sm:$0xff]  }
 0x2e5   :  { %3478 = vmatpush1.bf16.msra.mxu1 %v5146_v48 }
 0x2e6   :  { %3479 = vmatprep.subr.bf16.mxu1 %v5154_v49 }
 0x2e7   :  { %1195 = vmatmul.mubr.bf16.gmra.mrb[68].mxu0 %v6004_v62  ;;  %1288 = vmatmul.mubr.bf16.gmra.mrb[44].mxu1 %v5976_v33 }
 0x2e8   :  { %1204 = vmatprep.mubr.bf16.mxu0 %v5660_v55  ;;  %1297 = vmatprep.mubr.bf16.mxu1 %v5660_v55 }
 0x2e9   :  { %3480 = vmatpush1.bf16.msra.mxu1 %v5152_v51 }
 0x2ea   :  { %3481 = vmatprep.subr.bf16.mxu1 %v5160_v53 }
 0x2ed   :  { %3482 = vmatpush1.bf16.msra.mxu1 %v5158_v56 }
 0x2ee   :  { %3483 = vmatprep.subr.bf16.mxu1 %v5166_v60 }
 0x2ef   :  { %1205 = vmatmul.mubr.bf16.gmra.mrb[72].mxu0 %v6045_v28  ;;  %1298 = vmatmul.mubr.bf16.gmra.mrb[48].mxu1 %v6006_v0 }
 0x2f0   :  { %1214 = vmatprep.mubr.bf16.mxu0 %v5660_v55  ;;  %1307 = vmatprep.mubr.bf16.mxu1 %v5660_v55 }
 0x2f1   :  { %3484 = vmatpush1.bf16.msra.mxu1 %v5164_v1 }
 0x2f2   :  { %3485 = vmatprep.subr.bf16.mxu1 %v5172_v3 }
 0x2f5   :  { %3486 = vmatpush1.bf16.msra.mxu1 %v5170_v5 }
 0x2f6   :  { %3487 = vmatprep.subr.bf16.mxu1 %v5178_v6 }
 0x2f7   :  { %1215 = vmatmul.mubr.bf16.gmra.mrb[76].mxu0 %v6043_v25  ;;  %1308 = vmatmul.mubr.bf16.gmra.mrb[52].mxu1 %v6004_v62 }
 0x2f8   :  { %1317 = vmatprep.mubr.bf16.mxu1 %v5660_v55  ;;  %1370 = vmatprep.mubr.bf16.mxu0 %v5660_v55 }
 0x2f9   :  { %3488 = vmatpush1.bf16.msra.mxu1 %v5176_v8 }
 0x2fa   :  { %3489 = vmatprep.subr.bf16.mxu1 %v5184_v10 }
 0x2fd   :  { %3490 = vmatpush1.bf16.msra.mxu1 %v5182_v11 }
 0x2fe   :  { %3491 = vmatprep.subr.bf16.mxu1 %v5190_v15 }
 0x2ff   :  { %1318 = vmatmul.mubr.bf16.gmra.mrb[56].mxu1 %v6045_v28  ;;  %1371 = vmatmul.mubr.bf16.vlgmr.msra.gmra.mrb[80].mxu0 %v5956_v13  ;;  %v5125_v13 = vld [vmem:[%s7560_s5 + $0x28] ss:$16 sps:$4 sm:$0xff]  }
 0x300   :  { %1327 = vmatprep.mubr.bf16.mxu1 %v5660_v55  ;;  %1380 = vmatprep.mubr.bf16.mxu0 %v5660_v55 }
 0x301   :  { %3632 = vmatpush1.bf16.msra.mxu0 %v5119_v29  ;;  %3492 = vmatpush1.bf16.msra.mxu1 %v5188_v17  ;;  %v6371_v29 = vshrl.u32 %v639_v27, 7 }
 0x302   :  { %3633 = vmatprep.subr.bf16.mxu0 %v5127_v31  ;;  %3493 = vmatprep.subr.bf16.mxu1 %v5196_v19  ;;  %v4529_v31 = vld [vmem:[%s7563_s8 + $0x3] ss:$8 sm:$0xf0] }
 0x303   :  { %v6379_v32 = vor.u32 %v4529_v31, %v4528_v30  ;;  %v6385_v34 = vsub.s32 1, %v6371_v29 }
 0x305   :  { %3634 = vmatpush1.bf16.msra.mxu0 %v5125_v13  ;;  %3494 = vmatpush1.bf16.msra.mxu1 %v5194_v20  ;;  %v6382_v13 = vsub.s32 0, %v6371_v29  ;;  %v6393_v37 = vrot.slane %v6379_v32, %v6385_v34 }
 0x306   :  { %3635 = vmatprep.subr.bf16.mxu0 %v5133_v36  ;;  %3495 = vmatprep.subr.bf16.mxu1 %v5202_v21 }
 0x307   :  { %1328 = vmatmul.mubr.bf16.gmra.mrb[60].mxu1 %v6043_v25  ;;  %1381 = vmatmul.mubr.bf16.gmra.mrb[84].mxu0 %v5954_v12  ;;  %v5137_v12 = vld [vmem:[%s7560_s5 + $0x68] ss:$16 sps:$4 sm:$0xff]   ;;  %v6389_v36 = vrot.slane %v6379_v32, %v6382_v13 }
 0x308   :  { %1390 = vmatprep.mubr.bf16.mxu0 %v5660_v55 }
 0x309   :  { %3636 = vmatpush1.bf16.msra.mxu0 %v5131_v38  ;;  %3496 = vmatpush1.bf16.msra.mxu1 %v5200_v23 }
 0x30a   :  { %3637 = vmatprep.subr.bf16.mxu0 %v5139_v40 }
 0x30d   :  { %3638 = vmatpush1.bf16.msra.mxu0 %v5137_v12 }
 0x30e   :  { %3639 = vmatprep.subr.bf16.mxu0 %v5145_v43 }
 0x30f   :  { %1391 = vmatmul.mubr.bf16.gmra.mrb[88].mxu0 %v5978_v35  ;;  %v5149_v35 = vld [vmem:[%s7560_s5 + $0xa8] ss:$16 sps:$4 sm:$0xff]  }
 0x310   :  { %1400 = vmatprep.mubr.bf16.mxu0 %v5660_v55 }
 0x311   :  { %3640 = vmatpush1.bf16.msra.mxu0 %v5143_v45 }
 0x312   :  { %3641 = vmatprep.subr.bf16.mxu0 %v5151_v47 }
 0x315   :  { %3642 = vmatpush1.bf16.msra.mxu0 %v5149_v35 }
 0x316   :  { %3643 = vmatprep.subr.bf16.mxu0 %v5157_v50 }
 0x317   :  { %1401 = vmatmul.mubr.bf16.gmra.mrb[92].mxu0 %v5976_v33  ;;  %v5161_v33 = vld [vmem:[%s7560_s5 + $0xe8] ss:$16 sps:$4 sm:$0xff]  }
 0x318   :  { %1410 = vmatprep.mubr.bf16.mxu0 %v5660_v55 }
 0x319   :  { %3644 = vmatpush1.bf16.msra.mxu0 %v5155_v52 }
 0x31a   :  { %3645 = vmatprep.subr.bf16.mxu0 %v5163_v54 }
 0x31d   :  { %3646 = vmatpush1.bf16.msra.mxu0 %v5161_v33 }
 0x31e   :  { %3647 = vmatprep.subr.bf16.mxu0 %v5169_v63 }
 0x31f   :  { %1411 = vmatmul.mubr.bf16.gmra.mrb[96].mxu0 %v6006_v0  ;;  %v5173_v0 = vld [vmem:[%s7560_s5 + $0x128] ss:$16 sps:$4 sm:$0xff]  }
 0x320   :  { %1420 = vmatprep.mubr.bf16.mxu0 %v5660_v55 }
 0x321   :  { %3648 = vmatpush1.bf16.msra.mxu0 %v5167_v2 }
 0x322   :  { %3649 = vmatprep.subr.bf16.mxu0 %v5175_v4 }
 0x325   :  { %3650 = vmatpush1.bf16.msra.mxu0 %v5173_v0 }
 0x326   :  { %3651 = vmatprep.subr.bf16.mxu0 %v5181_v7 }
 0x327   :  { %1421 = vmatmul.mubr.bf16.gmra.mrb[100].mxu0 %v6004_v62  ;;  %v5187_v62 = vld [vmem:[%s7560_s5 + $0x16c] ss:$16 sps:$4 sm:$0xff]  }
 0x328   :  { %1430 = vmatprep.mubr.bf16.mxu0 %v5660_v55 }
 0x329   :  { %3652 = vmatpush1.bf16.msra.mxu0 %v5179_v9 }
 0x32a   :  { %3653 = vmatprep.subr.bf16.mxu0 %v5187_v62 }
 0x32d   :  { %3654 = vmatpush1.bf16.msra.mxu0 %v5185_v14 }
 0x32e   :  { %3655 = vmatprep.subr.bf16.mxu0 %v5193_v16 }
 0x32f   :  { %1431 = vmatmul.mubr.bf16.gmra.mrb[104].mxu0 %v6045_v28  ;;  %v5199_v28 = vld [vmem:[%s7560_s5 + $0x1ac] ss:$16 sps:$4 sm:$0xff]  }
 0x330   :  { %1440 = vmatprep.mubr.bf16.mxu0 %v5660_v55  ;;  %v5197_v55 = vld [vmem:[%s7560_s5 + $0x1a8] ss:$16 sps:$4 sm:$0xff]  }
 0x331   :  { %3656 = vmatpush1.bf16.msra.mxu0 %v5191_v18 }
 0x332   :  { %3657 = vmatprep.subr.bf16.mxu0 %v5199_v28 }
 0x335   :  { %3658 = vmatpush1.bf16.msra.mxu0 %v5197_v55 }
 0x336   :  { %3659 = vmatprep.subr.bf16.mxu0 %v5205_v22 }
 0x337   :  { %1441 = vmatmul.mubr.bf16.gmra.mrb[108].mxu0 %v6043_v25  ;;  %v5208_v25 = vld [vmem:[%s7560_s5 + $0x1e4] ss:$16 sps:$4 sm:$0xff]  }
 0x338   :  { %3497 = vmatprep.subr.bf16.mxu1 %v5208_v25 }
 0x339   :  { %3660 = vmatpush1.bf16.msra.mxu0 %v5203_v57  ;;  %3498 = vmatpush1.bf16.msra.mxu1 %v5206_v59 }
 0x33a   :  { %3661 = vmatprep.subr.bf16.mxu0 %v5211_v58  ;;  %3508 = vmatprep.subr.bf16.mxu1 %v5214_v24 }
 0x33d   :  { %3662 = vmatpush1.bf16.msra.mxu0 %v5209_v61 }
 0x33e   :  { %3672 = vmatprep.subr.bf16.mxu0 %v5217_v26 }
 0x372   :  { %v1033_v38 = vpop.f32.mrb[32].mxu0 }
 0x373   :  { %v1034_v39 = vadd.f32 %v1033_v38, %v6389_v36  ;;  %v1035_v40 = vpop.f32.mrb[33].mxu0 }
 0x374   :  { %v1036_v41 = vadd.f32 %v1035_v40, %v6393_v37  ;;  %v1037_v12 = vpop.f32.mrb[34].mxu0  ;;  %v649_v40 = vsub.s32 2, %v6371_v29 }
 0x375   :  { %v1038_v42 = vadd.f32 %v1037_v12, %v6389_v36  ;;  %v1039_v43 = vpop.f32.mrb[35].mxu0  ;;  %v1451_v45 = vmax.f32 %v1034_v39, 0.0 }
 0x376   :  { %v1040_v44 = vadd.f32 %v1039_v43, %v6393_v37  ;;  %v1452_v47 = vmax.f32 %v1036_v41, 0.0 }
 0x377   :  { %v1459_v46 = vmax.f32 %v1038_v42, 0.0 }
 0x378   :  { %v1460_v48 = vmax.f32 %v1040_v44, 0.0 }
 0x379   :  { %v1579_v35 = vpack.c.bf16 %v1459_v46, %v1451_v45 }
 0x37a   :  { %v1580_v49 = vpack.c.bf16 %v1460_v48, %v1452_v47  ;;  %v1043_v50 = vpop.f32.mrb[36].mxu0 }
 0x37b   :  { %v1044_v51 = vadd.f32 %v1043_v50, %v6389_v36  ;;  %v1045_v52 = vpop.f32.mrb[37].mxu0 }
 0x37c   :  { %v1046_v53 = vadd.f32 %v1045_v52, %v6393_v37  ;;  %v1047_v54 = vpop.f32.mrb[38].mxu0 }
 0x37d   :  { %v1048_v56 = vadd.f32 %v1047_v54, %v6389_v36  ;;  %v1049_v33 = vpop.f32.mrb[39].mxu0  ;;  %v1467_v63 = vmax.f32 %v1044_v51, 0.0 }
 0x37e   :  { %v1050_v60 = vadd.f32 %v1049_v33, %v6393_v37  ;;  %v1468_v2 = vmax.f32 %v1046_v53, 0.0  ;;  %v653_v33 = vsub.s32 3, %v6371_v29 }
 0x37f   :  { %v1475_v1 = vmax.f32 %v1048_v56, 0.0  ;;  %v6427_v56 = vrot.slane %v6379_v32, %v649_v40 }
 0x380   :  { %v1476_v3 = vmax.f32 %v1050_v60, 0.0 }
 0x381   :  { %v1587_v4 = vpack.c.bf16 %v1475_v1, %v1467_v63 }
 0x382   :  { %v1588_v5 = vpack.c.bf16 %v1476_v3, %v1468_v2  ;;  %v1053_v0 = vpop.f32.mrb[40].mxu0  ;;  %v1073_v6 = vpop.f32.mrb[16].mxu1 }
 0x383   :  { %v1643_v7 = vmax.bf16 %v1587_v4, %v1579_v35  ;;  %v1054_v8 = vadd.f32 %v1053_v0, %v6389_v36  ;;  %v1074_v9 = vadd.f32 %v1073_v6, %v6389_v36  ;;  %v1055_v10 = vpop.f32.mrb[41].mxu0  ;;  %v1075_v62 = vpop.f32.mrb[17].mxu1 }
 0x384   :  { %v1656_v11 = vmax.bf16 %v1588_v5, %v1580_v49  ;;  %v1056_v14 = vadd.f32 %v1055_v10, %v6393_v37  ;;  %v1076_v15 = vadd.f32 %v1075_v62, %v6393_v37  ;;  %v1057_v16 = vpop.f32.mrb[42].mxu0  ;;  %v1077_v17 = vpop.f32.mrb[18].mxu1 }
 0x385   :  { %v1058_v18 = vadd.f32 %v1057_v16, %v6389_v36  ;;  %v1078_v19 = vadd.f32 %v1077_v17, %v6389_v36  ;;  %v1059_v28 = vpop.f32.mrb[43].mxu0  ;;  %v1079_v20 = vpop.f32.mrb[19].mxu1  ;;  %v1483_v22 = vmax.f32 %v1054_v8, 0.0  ;;  %v1515_v23 = vmax.f32 %v1074_v9, 0.0 }
 0x386   :  { %v1060_v55 = vadd.f32 %v1059_v28, %v6393_v37  ;;  %v1080_v21 = vadd.f32 %v1079_v20, %v6393_v37  ;;  %v1484_v58 = vmax.f32 %v1056_v14, 0.0  ;;  %v1516_v59 = vmax.f32 %v1076_v15, 0.0 }
 0x387   :  { %v1491_v57 = vmax.f32 %v1058_v18, 0.0  ;;  %v1523_v25 = vmax.f32 %v1078_v19, 0.0 }
 0x388   :  { %v1492_v61 = vmax.f32 %v1060_v55, 0.0  ;;  %v1524_v24 = vmax.f32 %v1080_v21, 0.0 }
 0x389   :  { %v1595_v26 = vpack.c.bf16 %v1491_v57, %v1483_v22  ;;  %v6411_v27 = vpack.c.bf16 %v1523_v25, %v1515_v23 }
 0x38a   :  { %v1596_v30 = vpack.c.bf16 %v1492_v61, %v1484_v58  ;;  %v6413_v31 = vpack.c.bf16 %v1524_v24, %v1516_v59  ;;  %v1063_v38 = vpop.f32.mrb[44].mxu0  ;;  %v1083_v39 = vpop.f32.mrb[20].mxu1 }
 0x38b   :  { %v1644_v41 = vmax.bf16 %v1643_v7, %v1595_v26  ;;  %v1064_v12 = vadd.f32 %v1063_v38, %v6389_v36  ;;  %v1084_v42 = vadd.f32 %v1083_v39, %v6389_v36  ;;  %v1065_v43 = vpop.f32.mrb[45].mxu0  ;;  %v1085_v44 = vpop.f32.mrb[21].mxu1 }
 0x38c   :  { %v1657_v45 = vmax.bf16 %v1656_v11, %v1596_v30  ;;  %v1066_v46 = vadd.f32 %v1065_v43, %v6393_v37  ;;  %v1086_v47 = vadd.f32 %v1085_v44, %v6393_v37  ;;  %v1067_v48 = vpop.f32.mrb[46].mxu0  ;;  %v1087_v35 = vpop.f32.mrb[22].mxu1  ;;  %v6433_v11 = vrot.slane %v6379_v32, %v653_v33 }
 0x38d   :  { %v1068_v49 = vadd.f32 %v1067_v48, %v6389_v36  ;;  %v1088_v50 = vadd.f32 %v1087_v35, %v6389_v36  ;;  %v1069_v51 = vpop.f32.mrb[47].mxu0  ;;  %v1089_v52 = vpop.f32.mrb[23].mxu1  ;;  %v1499_v60 = vmax.f32 %v1064_v12, 0.0  ;;  %v1531_v63 = vmax.f32 %v1084_v42, 0.0 }
 0x38e   :  { %v1070_v53 = vadd.f32 %v1069_v51, %v6393_v37  ;;  %v1090_v54 = vadd.f32 %v1089_v52, %v6393_v37  ;;  %v1500_v3 = vmax.f32 %v1066_v46, 0.0  ;;  %v1532_v4 = vmax.f32 %v1086_v47, 0.0 }
 0x38f   :  { %v1507_v1 = vmax.f32 %v1068_v49, 0.0  ;;  %v1539_v2 = vmax.f32 %v1088_v50, 0.0  ;;  %v657_v51 = vsub.s32 4, %v6371_v29 }
 0x390   :  { %v1508_v5 = vmax.f32 %v1070_v53, 0.0  ;;  %v1540_v0 = vmax.f32 %v1090_v54, 0.0 }
 0x391   :  { %v1603_v6 = vpack.c.bf16 %v1507_v1, %v1499_v60  ;;  %v1619_v7 = vpack.c.bf16 %v1539_v2, %v1531_v63 }
 0x392   :  { %v1604_v8 = vpack.c.bf16 %v1508_v5, %v1500_v3  ;;  %v1620_v9 = vpack.c.bf16 %v1540_v0, %v1532_v4  ;;  %v1093_v10 = vpop.f32.mrb[24].mxu1  ;;  %v1146_v62 = vpop.f32.mrb[48].mxu0 }
 0x393   :  { %v1645_v14 = vmax.bf16 %v1644_v41, %v1603_v6  ;;  %v1747_v15 = vmax.bf16 %v1619_v7, %v6411_v27  ;;  %v1094_v16 = vadd.f32 %v1093_v10, %v6389_v36  ;;  %v1095_v17 = vpop.f32.mrb[25].mxu1  ;;  %v1148_v18 = vpop.f32.mrb[49].mxu0  ;;  %v1147_v20 = vadd.f32 %v1146_v62, %v6427_v56 }
 0x394   :  { %v1658_v19 = vmax.bf16 %v1657_v45, %v1604_v8  ;;  %v1760_v28 = vmax.bf16 %v1620_v9, %v6413_v31  ;;  %v1096_v55 = vadd.f32 %v1095_v17, %v6393_v37  ;;  %v1097_v21 = vpop.f32.mrb[26].mxu1  ;;  %v1150_v22 = vpop.f32.mrb[50].mxu0  ;;  %v1149_v26 = vadd.f32 %v1148_v18, %v6433_v11 }
 0x395   :  { %v1646_v23 = vunpack.i.l.bf16 %v1645_v14  ;;  %v1647_v57 = vunpack.i.h.bf16 %v1645_v14  ;;  %v1099_v25 = vpop.f32.mrb[27].mxu1  ;;  %v1152_v58 = vpop.f32.mrb[51].mxu0  ;;  %v1547_v24 = vmax.f32 %v1094_v16, 0.0  ;;  %v1098_v30 = vadd.f32 %v1097_v21, %v6389_v36 }
 0x396   :  { %v1659_v59 = vunpack.i.l.bf16 %v1658_v19  ;;  %v1660_v61 = vunpack.i.h.bf16 %v1658_v19  ;;  %v1151_v31 = vadd.f32 %v1150_v22, %v6427_v56  ;;  %v1100_v38 = vadd.f32 %v1099_v25, %v6393_v37 }
 0x397   :  { %v1648_v27 = vmax.f32 %v1646_v23, %v1647_v57  ;;  %v1453_v41 = vmax.f32 %v1147_v20, 0.0  ;;  %v1548_v12 = vmax.f32 %v1096_v55, 0.0  ;;  %v1153_v42 = vadd.f32 %v1152_v58, %v6433_v11 }
 0x398   :  { %v1661_v39 = vmax.f32 %v1659_v59, %v1660_v61  ;;  %v1555_v44 = vmax.f32 %v1098_v30, 0.0  ;;  %v1461_v45 = vmax.f32 %v1151_v31, 0.0  ;;  %v1556_v46 = vmax.f32 %v1100_v38, 0.0 }
 0x399   :  { %v1649_v43 = vrot.slane %v1648_v27, 4  ;;  %v1454_v48 = vmax.f32 %v1149_v26, 0.0  ;;  %v1462_v35 = vmax.f32 %v1153_v42, 0.0  ;;  %v6455_v17 = vrot.slane %v6379_v32, %v657_v51 }
 0x39a   :  { %v1662_v47 = vrot.slane %v1661_v39, 4  ;;  %v1103_v49 = vpop.f32.mrb[28].mxu1  ;;  %v1156_v50 = vpop.f32.mrb[52].mxu0  ;;  %v1627_v53 = vpack.c.bf16 %v1555_v44, %v1547_v24  ;;  %v6446_v54 = vpack.c.bf16 %v1461_v45, %v1453_v41  ;;  %v1628_v60 = vpack.c.bf16 %v1556_v46, %v1548_v12 }
 0x39b   :  { %v1650_v52 = vmax.f32 %v1648_v27, %v1649_v43  ;;  %v1105_v63 = vpop.f32.mrb[29].mxu1  ;;  %v1158_v1 = vpop.f32.mrb[53].mxu0  ;;  %v6448_v3 = vpack.c.bf16 %v1462_v35, %v1454_v48  ;;  %v1104_v4 = vadd.f32 %v1103_v49, %v6389_v36  ;;  %v1157_v9 = vadd.f32 %v1156_v50, %v6427_v56 }
 0x39c   :  { %v1663_v2 = vmax.f32 %v1661_v39, %v1662_v47  ;;  %v1107_v5 = vpop.f32.mrb[30].mxu1  ;;  %v1160_v0 = vpop.f32.mrb[54].mxu0  ;;  %v1748_v7 = vmax.bf16 %v1747_v15, %v1627_v53  ;;  %v1761_v8 = vmax.bf16 %v1760_v28, %v1628_v60  ;;  %v1106_v14 = vadd.f32 %v1105_v63, %v6393_v37 }
 0x39d   :  { %v1651_v6 = vrot.slane %v1650_v52, 2  ;;  %v1109_v10 = vpop.f32.mrb[31].mxu1  ;;  %v1162_v62 = vpop.f32.mrb[55].mxu0  ;;  %v1159_v16 = vadd.f32 %v1158_v1, %v6433_v11  ;;  %v661_v18 = vsub.s32 5, %v6371_v29  ;;  %v1108_v19 = vadd.f32 %v1107_v5, %v6389_v36 }
 0x39e   :  { %v1161_v20 = vadd.f32 %v1160_v0, %v6427_v56  ;;  %v665_v15 = vsub.s32 6, %v6371_v29  ;;  %v669_v28 = vsub.s32 7, %v6371_v29  ;;  %v1664_v55 = vrot.slane %v1663_v2, 2  ;;  %v5593_v29 = vld [vmem:[%s7561_s6 + $0x1f0] ss:$8 sps:$4 sm:$0xff]  }
 0x39f   :  { %v1563_v21 = vmax.f32 %v1104_v4, 0.0  ;;  %v1110_v22 = vadd.f32 %v1109_v10, %v6393_v37  ;;  %v1163_v23 = vadd.f32 %v1162_v62, %v6433_v11  ;;  %v1652_v57 = vmax.f32 %v1650_v52, %v1651_v6 }
 0x3a0   :  { %v1469_v25 = vmax.f32 %v1157_v9, 0.0  ;;  %v1571_v58 = vmax.f32 %v1108_v19, 0.0  ;;  %v1477_v59 = vmax.f32 %v1161_v20, 0.0  ;;  %v1564_v61 = vmax.f32 %v1106_v14, 0.0 }
 0x3a1   :  { %v1470_v24 = vmax.f32 %v1159_v16, 0.0  ;;  %v1572_v26 = vmax.f32 %v1110_v22, 0.0  ;;  %v1478_v36 = vmax.f32 %v1163_v23, 0.0  ;;  %v6466_v12 = vrot.slane %v6379_v32, %v661_v18 }
 0x3a2   :  { %v1166_v27 = vpop.f32.mrb[56].mxu0  ;;  %v1259_v30 = vpop.f32.mrb[32].mxu1  ;;  %v1635_v31 = vpack.c.bf16 %v1571_v58, %v1563_v21  ;;  %v1589_v38 = vpack.c.bf16 %v1477_v59, %v1469_v25  ;;  %v6469_v46 = vrot.slane %v6379_v32, %v665_v15  ;;  %v6472_v47 = vrot.slane %v6379_v32, %v669_v28 }
 0x3a3   :  { %v1167_v39 = vadd.f32 %v1166_v27, %v6427_v56  ;;  %v1168_v41 = vpop.f32.mrb[57].mxu0  ;;  %v1261_v37 = vpop.f32.mrb[33].mxu1  ;;  %v1636_v42 = vpack.c.bf16 %v1572_v26, %v1564_v61  ;;  %v1590_v43 = vpack.c.bf16 %v1478_v36, %v1470_v24  ;;  %v1260_v49 = vadd.f32 %v1259_v30, %v6455_v17 }
 0x3a4   :  { %v1170_v44 = vpop.f32.mrb[58].mxu0  ;;  %v1263_v45 = vpop.f32.mrb[34].mxu1  ;;  %v1749_v48 = vmax.bf16 %v1748_v7, %v1635_v31  ;;  %v1669_v35 = vmax.bf16 %v1589_v38, %v6446_v54  ;;  %v6476_v52 = vmax.f32 %v1663_v2, %v1664_v55  ;;  %v1653_v53 = vrot.slane %v1652_v57, 1 }
 0x3a5   :  { %v1172_v50 = vpop.f32.mrb[59].mxu0  ;;  %v1265_v51 = vpop.f32.mrb[35].mxu1  ;;  %v1762_v60 = vmax.bf16 %v1761_v8, %v1636_v42  ;;  %v1682_v63 = vmax.bf16 %v1590_v43, %v6448_v3  ;;  %v1169_v1 = vadd.f32 %v1168_v41, %v6433_v11  ;;  %v1485_v0 = vmax.f32 %v1167_v39, 0.0 }
 0x3a6   :  { %v1750_v4 = vunpack.i.l.bf16 %v1749_v48  ;;  %v1751_v5 = vunpack.i.h.bf16 %v1749_v48  ;;  %v1262_v32 = vadd.f32 %v1261_v37, %v6466_v12  ;;  %v1171_v54 = vadd.f32 %v1170_v44, %v6427_v56 }
 0x3a7   :  { %v1763_v6 = vunpack.i.l.bf16 %v1762_v60  ;;  %v1764_v7 = vunpack.i.h.bf16 %v1762_v60  ;;  %v1264_v9 = vadd.f32 %v1263_v45, %v6455_v17  ;;  %v1455_v2 = vmax.f32 %v1260_v49, 0.0 }
 0x3a8   :  { %v1752_v10 = vmax.f32 %v1750_v4, %v1751_v5  ;;  %v1173_v62 = vadd.f32 %v1172_v50, %v6433_v11  ;;  %v1266_v8 = vadd.f32 %v1265_v51, %v6466_v12  ;;  %v1486_v14 = vmax.f32 %v1169_v1, 0.0 }
 0x3a9   :  { %v1765_v3 = vmax.f32 %v1763_v6, %v1764_v7  ;;  %v1493_v16 = vmax.f32 %v1171_v54, 0.0  ;;  %v1463_v18 = vmax.f32 %v1264_v9, 0.0  ;;  %v1456_v28 = vmax.f32 %v1262_v32, 0.0 }
 0x3aa   :  { %v1176_v19 = vpop.f32.mrb[60].mxu0  ;;  %v1269_v20 = vpop.f32.mrb[36].mxu1  ;;  %v1753_v15 = vrot.slane %v1752_v10, 4  ;;  %v1494_v55 = vmax.f32 %v1173_v62, 0.0  ;;  %v1464_v21 = vmax.f32 %v1266_v8, 0.0  ;;  %v1654_v25 = vmax.f32 %v1652_v57, %v1653_v53 }
 0x3ab   :  { %v1178_v22 = vpop.f32.mrb[61].mxu0  ;;  %v1271_v23 = vpop.f32.mrb[37].mxu1  ;;  %v1597_v58 = vpack.c.bf16 %v1493_v16, %v1485_v0  ;;  %v6485_v59 = vpack.c.bf16 %v1463_v18, %v1455_v2  ;;  %v1177_v61 = vadd.f32 %v1176_v19, %v6427_v56  ;;  %v1766_v27 = vrot.slane %v1765_v3, 4 }
 0x3ac   :  { %v1180_v24 = vpop.f32.mrb[62].mxu0  ;;  %v1273_v26 = vpop.f32.mrb[38].mxu1  ;;  %v1754_v36 = vmax.f32 %v1752_v10, %v1753_v15  ;;  %v1598_v30 = vpack.c.bf16 %v1494_v55, %v1486_v14  ;;  %v6488_v31 = vpack.c.bf16 %v1464_v21, %v1456_v28  ;;  %v1270_v37 = vadd.f32 %v1269_v20, %v6455_v17 }
 0x3ad   :  { %v1182_v38 = vpop.f32.mrb[63].mxu0  ;;  %v1275_v39 = vpop.f32.mrb[39].mxu1  ;;  %v1670_v41 = vmax.bf16 %v1669_v35, %v1597_v58  ;;  %v1179_v42 = vadd.f32 %v1178_v22, %v6433_v11  ;;  %v1666_v57 = vrot.slane %v6476_v52, 1  ;;  %v1272_v45 = vadd.f32 %v1271_v23, %v6466_v12 }
 0x3ae   :  { %v1755_v43 = vrot.slane %v1754_v36, 2  ;;  %v1683_v44 = vmax.bf16 %v1682_v63, %v1598_v30  ;;  %v1181_v48 = vadd.f32 %v1180_v24, %v6427_v56  ;;  %v1655_v49 = vpack.i.bf16 %v1654_v25, %v1654_v25 }
 0x3af   :  { %v1501_v50 = vmax.f32 %v1177_v61, 0.0  ;;  %v1274_v51 = vadd.f32 %v1273_v26, %v6455_v17  ;;  %v1183_v53 = vadd.f32 %v1182_v38, %v6433_v11  ;;  %v6497_v35 = vmax.f32 %v1765_v3, %v1766_v27 }
 0x3b0   :  { %v1756_v60 = vmax.f32 %v1754_v36, %v1755_v43  ;;  %v1509_v1 = vmax.f32 %v1181_v48, 0.0  ;;  %v1276_v4 = vadd.f32 %v1275_v39, %v6466_v12  ;;  %v1471_v5 = vmax.f32 %v1270_v37, 0.0 }
 0x3b1   :  { %v1502_v0 = vmax.f32 %v1179_v42, 0.0  ;;  %v1479_v32 = vmax.f32 %v1274_v51, 0.0  ;;  %v1510_v63 = vmax.f32 %v1183_v53, 0.0  ;;  %v1472_v9 = vmax.f32 %v1272_v45, 0.0 }
 0x3b2   :  { %v1186_v6 = vpop.f32.mrb[64].mxu0  ;;  %v1279_v7 = vpop.f32.mrb[40].mxu1  ;;  %v1757_v54 = vrot.slane %v1756_v60, 1  ;;  %v1605_v10 = vpack.c.bf16 %v1509_v1, %v1501_v50  ;;  %v1480_v2 = vmax.f32 %v1276_v4, 0.0  ;;  %v6500_v14 = vunpack.c.l.b16 %v1655_v49 }
 0x3b3   :  { %v1188_v62 = vpop.f32.mrb[65].mxu0  ;;  %v1281_v8 = vpop.f32.mrb[41].mxu1  ;;  %v1591_v16 = vpack.c.bf16 %v1479_v32, %v1471_v5  ;;  %v1606_v3 = vpack.c.bf16 %v1510_v63, %v1502_v0  ;;  %v6503_v20 = vmax.f32 %v6476_v52, %v1666_v57  ;;  %v1768_v15 = vrot.slane %v6497_v35, 2 }
 0x3b4   :  { %v1190_v18 = vpop.f32.mrb[66].mxu0  ;;  %v1283_v19 = vpop.f32.mrb[42].mxu1  ;;  %v1671_v28 = vmax.bf16 %v1670_v41, %v1605_v10  ;;  %v1592_v55 = vpack.c.bf16 %v1480_v2, %v1472_v9  ;;  %v1187_v21 = vadd.f32 %v1186_v6, %v6427_v56  ;;  %v1280_v61 = vadd.f32 %v1279_v7, %v6455_v17 }
 0x3b5   :  { %v1192_v22 = vpop.f32.mrb[67].mxu0  ;;  %v1285_v23 = vpop.f32.mrb[43].mxu1  ;;  %v1695_v25 = vmax.bf16 %v1591_v16, %v6485_v59  ;;  %v1684_v58 = vmax.bf16 %v1683_v44, %v1606_v3  ;;  %v1189_v24 = vadd.f32 %v1188_v62, %v6433_v11  ;;  %v1758_v26 = vmax.f32 %v1756_v60, %v1757_v54 }
 0x3b6   :  { %v1672_v36 = vunpack.i.l.bf16 %v1671_v28  ;;  %v1673_v27 = vunpack.i.h.bf16 %v1671_v28  ;;  %v1708_v52 = vmax.bf16 %v1592_v55, %v6488_v31  ;;  %v1282_v39 = vadd.f32 %v1281_v8, %v6466_v12 }
 0x3b7   :  { %v1685_v30 = vunpack.i.l.bf16 %v1684_v58  ;;  %v1686_v38 = vunpack.i.h.bf16 %v1684_v58  ;;  %v1191_v41 = vadd.f32 %v1190_v18, %v6427_v56  ;;  %v1517_v42 = vmax.f32 %v1187_v21, 0.0 }
 0x3b8   :  { %v1674_v37 = vmax.f32 %v1672_v36, %v1673_v27  ;;  %v1284_v59 = vadd.f32 %v1283_v19, %v6455_v17  ;;  %v1193_v57 = vadd.f32 %v1192_v22, %v6433_v11  ;;  %v1487_v44 = vmax.f32 %v1280_v61, 0.0 }
 0x3b9   :  { %v1687_v43 = vmax.f32 %v1685_v30, %v1686_v38  ;;  %v1525_v45 = vmax.f32 %v1191_v41, 0.0  ;;  %v1286_v48 = vadd.f32 %v1285_v23, %v6466_v12  ;;  %v1759_v50 = vpack.i.bf16 %v1758_v26, %v1758_v26 }
 0x3ba   :  { %v1196_v49 = vpop.f32.mrb[68].mxu0  ;;  %v1289_v31 = vpop.f32.mrb[44].mxu1  ;;  %v1518_v51 = vmax.f32 %v1189_v24, 0.0  ;;  %v1495_v53 = vmax.f32 %v1284_v59, 0.0  ;;  %v1526_v60 = vmax.f32 %v1193_v57, 0.0  ;;  %v1675_v5 = vrot.slane %v1674_v37, 4 }
 0x3bb   :  { %v1198_v1 = vpop.f32.mrb[69].mxu0  ;;  %v1291_v4 = vpop.f32.mrb[45].mxu1  ;;  %v1488_v0 = vmax.f32 %v1282_v39, 0.0  ;;  %v6516_v32 = vpack.c.bf16 %v1525_v45, %v1517_v42  ;;  %v1496_v63 = vmax.f32 %v1286_v48, 0.0  ;;  %v1688_v54 = vrot.slane %v1687_v43, 4 }
 0x3bc   :  { %v1200_v6 = vpop.f32.mrb[70].mxu0  ;;  %v1293_v7 = vpop.f32.mrb[46].mxu1  ;;  %v1599_v9 = vpack.c.bf16 %v1495_v53, %v1487_v44  ;;  %v6518_v10 = vpack.c.bf16 %v1526_v60, %v1518_v51  ;;  %v1197_v2 = vadd.f32 %v1196_v49, %v6427_v56  ;;  %v1290_v3 = vadd.f32 %v1289_v31, %v6455_v17 }
 0x3bd   :  { %v1202_v62 = vpop.f32.mrb[71].mxu0  ;;  %v1295_v8 = vpop.f32.mrb[47].mxu1  ;;  %v1600_v16 = vpack.c.bf16 %v1496_v63, %v1488_v0  ;;  %v1668_v18 = vpack.i.bf16 %v6503_v20, %v6503_v20  ;;  %v1769_v19 = vmax.f32 %v6497_v35, %v1768_v15  ;;  %v2154_v28 = vunpack.c.l.b16 %v1759_v50 }
 0x3be   :  { %v1696_v55 = vmax.bf16 %v1695_v25, %v1599_v9  ;;  %v1199_v21 = vadd.f32 %v1198_v1, %v6433_v11  ;;  %v1201_v22 = vadd.f32 %v1200_v6, %v6427_v56  ;;  %v6527_v23 = vmax.f32 %v1674_v37, %v1675_v5 }
 0x3bf   :  { %v1709_v58 = vmax.bf16 %v1708_v52, %v1600_v16  ;;  %v1292_v61 = vadd.f32 %v1291_v4, %v6466_v12  ;;  %v1294_v24 = vadd.f32 %v1293_v7, %v6455_v17  ;;  %v6531_v26 = vmax.f32 %v1687_v43, %v1688_v54 }
 0x3c0   :  { %v1533_v36 = vmax.f32 %v1197_v2, 0.0  ;;  %v1541_v27 = vmax.f32 %v1201_v22, 0.0  ;;  %v1203_v20 = vadd.f32 %v1202_v62, %v6433_v11  ;;  %v1503_v35 = vmax.f32 %v1290_v3, 0.0 }
 0x3c1   :  { %v1511_v15 = vmax.f32 %v1294_v24, 0.0  ;;  %v1296_v25 = vadd.f32 %v1295_v8, %v6466_v12  ;;  %v1770_v30 = vrot.slane %v1769_v19, 1  ;;  %v1534_v41 = vmax.f32 %v1199_v21, 0.0 }
 0x3c2   :  { %v1206_v38 = vpop.f32.mrb[72].mxu0  ;;  %v1299_v39 = vpop.f32.mrb[48].mxu1  ;;  %v6535_v37 = vpack.c.bf16 %v1541_v27, %v1533_v36  ;;  %v1542_v52 = vmax.f32 %v1203_v20, 0.0  ;;  %v2163_v42 = vsel %vm2162_vm3, %v2154_v28, %v6500_v14  ;;  %v1504_v43 = vmax.f32 %v1292_v61, 0.0  ;;  %v5220_v20 = vld [vmem:[%s7560_s5 + $0x224] ss:$16 sps:$4 sm:$0xff]  }
 0x3c3   :  { %v1208_v59 = vpop.f32.mrb[73].mxu0  ;;  %v1301_v57 = vpop.f32.mrb[49].mxu1  ;;  %v1607_v44 = vpack.c.bf16 %v1511_v15, %v1503_v35  ;;  %v1512_v45 = vmax.f32 %v1296_v25, 0.0  ;;  %v1771_v48 = vmax.f32 %v1769_v19, %v1770_v30  ;;  %v1207_v53 = vadd.f32 %v1206_v38, %v6427_v56 }
 0x3c4   :  { %v1210_v49 = vpop.f32.mrb[74].mxu0  ;;  %v1303_v31 = vpop.f32.mrb[50].mxu1  ;;  %v1773_v50 = vmax.bf16 %v6535_v37, %v6516_v32  ;;  %v6541_v51 = vpack.c.bf16 %v1542_v52, %v1534_v41  ;;  %v1300_v60 = vadd.f32 %v1299_v39, %v6455_v17  ;;  %v1677_v14 = vrot.slane %v6527_v23, 2  ;;  %v5223_v52 = vld [vmem:[%s7560_s5 + $0x22c] ss:$16 sps:$4 sm:$0xff]  }
 0x3c5   :  { %v1212_v1 = vpop.f32.mrb[75].mxu0  ;;  %v1305_v4 = vpop.f32.mrb[51].mxu1  ;;  %v1697_v5 = vmax.bf16 %v1696_v55, %v1607_v44  ;;  %v1608_v0 = vpack.c.bf16 %v1512_v45, %v1504_v43  ;;  %v1772_v63 = vpack.i.bf16 %v1771_v48, %v1771_v48  ;;  %v2147_v7 = vunpack.c.l.b16 %v1668_v18  ;;  %v5212_v18 = vld [vmem:[%s7560_s5 + $0x200] ss:$16 sps:$4 sm:$0xff]   ;;  %v5227_v37 = vld [vmem:[%s7560_s5 + $0x248] ss:$16 sps:$4 sm:$0xff]  }
 0x3c6   :  { %v1786_v6 = vmax.bf16 %v6541_v51, %v6518_v10  ;;  %v1549_v54 = vmax.f32 %v1207_v53, 0.0  ;;  %v1209_v9 = vadd.f32 %v1208_v59, %v6433_v11  ;;  %v1519_v3 = vmax.f32 %v1300_v60, 0.0  ;;  %v5224_v32 = vld [vmem:[%s7560_s5 + $0x240] ss:$16 sps:$4 sm:$0xff]  }
 0x3c7   :  { %v1698_v2 = vunpack.i.l.bf16 %v1697_v5  ;;  %v1699_v62 = vunpack.i.h.bf16 %v1697_v5  ;;  %v1710_v8 = vmax.bf16 %v1709_v58, %v1608_v0  ;;  %v2155_v16 = vunpack.c.l.b16 %v1772_v63  ;;  %v5215_v58 = vld [vmem:[%s7560_s5 + $0x208] ss:$16 sps:$4 sm:$0xff]   ;;  %v5218_v0 = vld [vmem:[%s7560_s5 + $0x220] ss:$16 sps:$4 sm:$0xff]  }
 0x3c8   :  { %v1302_v19 = vadd.f32 %v1301_v57, %v6466_v12  ;;  %v1211_v28 = vadd.f32 %v1210_v49, %v6427_v56  ;;  %v1304_v55 = vadd.f32 %v1303_v31, %v6455_v17  ;;  %v1213_v25 = vadd.f32 %v1212_v1, %v6433_v11  ;;  %v5221_v63 = vld [vmem:[%s7560_s5 + $0x228] ss:$16 sps:$4 sm:$0xff]  }
 0x3c9   :  { %v1700_v21 = vmax.f32 %v1698_v2, %v1699_v62  ;;  %v1711_v22 = vunpack.i.l.bf16 %v1710_v8  ;;  %v1712_v61 = vunpack.i.h.bf16 %v1710_v8  ;;  %v2164_v10 = vsel %vm2162_vm3, %v2155_v16, %v2147_v7  ;;  %v5229_v2 = vld [vmem:[%s7560_s5 + $0x24c] ss:$16 sps:$4 sm:$0xff]  }
 0x3ca   :  { %v1216_v24 = vpop.f32.mrb[76].mxu0  ;;  %v1309_v36 = vpop.f32.mrb[52].mxu1  ;;  %v2172_v27 = vpack.c.b16 %v2164_v10, %v2164_v10  ;;  %v1557_v35 = vmax.f32 %v1211_v28, 0.0  ;;  %v1527_v15 = vmax.f32 %v1304_v55, 0.0  ;;  %v2171_v41 = vpack.c.b16 %v2163_v42, %v2163_v42 }
 0x3cb   :  { %v1218_v30 = vpop.f32.mrb[77].mxu0  ;;  %v1311_v38 = vpop.f32.mrb[53].mxu1  ;;  %v1701_v39 = vrot.slane %v1700_v21, 4  ;;  %v1550_v59 = vmax.f32 %v1209_v9, 0.0  ;;  %v1306_v57 = vadd.f32 %v1305_v4, %v6466_v12  ;;  %v1520_v45 = vmax.f32 %v1302_v19, 0.0 }
 0x3cc   :  { %v1220_v43 = vpop.f32.mrb[78].mxu0  ;;  %v1313_v44 = vpop.f32.mrb[54].mxu1  ;;  %3499 = vmatprep.mubr.bf16.mxu1 %v2172_v27  ;;  %3663 = vmatprep.mubr.bf16.mxu0 %v2172_v27  ;;  %v1629_v48 = vpack.c.bf16 %v1557_v35, %v1549_v54  ;;  %v6567_v49 = vpack.c.bf16 %v1527_v15, %v1519_v3  ;;  %v1558_v31 = vmax.f32 %v1213_v25, 0.0  ;;  %v1713_v60 = vmax.f32 %v1711_v22, %v1712_v61  ;;  %v5232_v61 = vld [vmem:[%s7560_s5 + $0x264] ss:$16 sps:$4 sm:$0xff]  }
 0x3cd   :  { %v1222_v51 = vpop.f32.mrb[79].mxu0  ;;  %v1315_v53 = vpop.f32.mrb[55].mxu1  ;;  %3500 = vmatmul.mubr.bf16.vlgmr.msra.gmra.mrb[64].mxu1 %v2171_v41  ;;  %3664 = vmatmul.mubr.bf16.vlgmr.msra.gmra.mrb[112].mxu0 %v2171_v41  ;;  %v1528_v42 = vmax.f32 %v1306_v57, 0.0  ;;  %v1217_v1 = vadd.f32 %v1216_v24, %v6427_v56  ;;  %v1310_v5 = vadd.f32 %v1309_v36, %v6455_v17  ;;  %v6572_v4 = vmax.f32 %v6527_v23, %v1677_v14  ;;  %v5226_v14 = vld [vmem:[%s7560_s5 + $0x244] ss:$16 sps:$4 sm:$0xff]  }
 0x3ce   :  { %3509 = vmatpush1.bf16.msra.mxu1 %v5212_v18  ;;  %3673 = vmatpush1.bf16.msra.mxu0 %v5215_v58  ;;  %v1774_v7 = vmax.bf16 %v1773_v50, %v1629_v48  ;;  %v1630_v54 = vpack.c.bf16 %v1558_v31, %v1550_v59  ;;  %v6583_v9 = vmax.f32 %v1700_v21, %v1701_v39  ;;  %v1714_v19 = vrot.slane %v1713_v60, 4  ;;  %v5230_v31 = vld [vmem:[%s7560_s5 + $0x260] ss:$16 sps:$4 sm:$0xff]  }
 0x3cf   :  { %3510 = vmatprep.subr.bf16.mxu1 %v5220_v20  ;;  %3674 = vmatprep.subr.bf16.mxu0 %v5223_v52  ;;  %v6585_v23 = vpack.c.bf16 %v1528_v42, %v1520_v45  ;;  %v1219_v62 = vadd.f32 %v1218_v30, %v6433_v11  ;;  %v1312_v50 = vadd.f32 %v1311_v38, %v6466_v12  ;;  %v1565_v28 = vmax.f32 %v1217_v1, 0.0 }
 0x3d0   :  { %v1787_v8 = vmax.bf16 %v1786_v6, %v1630_v54  ;;  %v1221_v16 = vadd.f32 %v1220_v43, %v6427_v56  ;;  %v1314_v3 = vadd.f32 %v1313_v44, %v6455_v17  ;;  %v1535_v55 = vmax.f32 %v1310_v5, 0.0 }
 0x3d1   :  { %v1223_v21 = vadd.f32 %v1222_v51, %v6433_v11  ;;  %v1316_v58 = vadd.f32 %v1315_v53, %v6466_v12  ;;  %v5235_v11 = vld [vmem:[%s7560_s5 + $0x26c] ss:$16 sps:$4 sm:$0xff]   ;;  %v1566_v27 = vmax.f32 %v1219_v62, 0.0  ;;  %v1536_v38 = vmax.f32 %v1312_v50, 0.0  ;;  %v5233_v51 = vld [vmem:[%s7560_s5 + $0x268] ss:$16 sps:$4 sm:$0xff]  }
 0x3d2   :  { %v1319_v6 = vpop.f32.mrb[56].mxu1  ;;  %v1372_v22 = vpop.f32.mrb[80].mxu0  ;;  %3511 = vmatpush1.bf16.msra.mxu1 %v5218_v0  ;;  %3675 = vmatpush1.bf16.msra.mxu0 %v5221_v63  ;;  %v1573_v10 = vmax.f32 %v1221_v16, 0.0  ;;  %v1543_v18 = vmax.f32 %v1314_v3, 0.0  ;;  %v6618_v43 = vmax.f32 %v1713_v60, %v1714_v19  ;;  %v5238_v0 = vld [vmem:[%s7560_s5 + $0x284] ss:$16 sps:$4 sm:$0xff]  }
 0x3d3   :  { %v6609_v56 = vadd.f32 %v1319_v6, %v6455_v17  ;;  %v1321_v24 = vpop.f32.mrb[57].mxu1  ;;  %v1374_v36 = vpop.f32.mrb[81].mxu0  ;;  %3512 = vmatprep.subr.bf16.mxu1 %v5226_v14  ;;  %3676 = vmatprep.subr.bf16.mxu0 %v5229_v2  ;;  %v1574_v20 = vmax.f32 %v1223_v21, 0.0  ;;  %v1373_v35 = vadd.f32 %v1372_v22, %v6469_v46  ;;  %v1544_v52 = vmax.f32 %v1316_v58, 0.0  ;;  %v5241_v63 = vld [vmem:[%s7560_s5 + $0x28c] ss:$16 sps:$4 sm:$0xff]  }
 0x3d4   :  { %v1322_v15 = vadd.f32 %v1321_v24, %v6466_v12  ;;  %v1323_v25 = vpop.f32.mrb[58].mxu1  ;;  %v1376_v30 = vpop.f32.mrb[82].mxu0  ;;  %v1637_v39 = vpack.c.bf16 %v1573_v10, %v1565_v28  ;;  %v6616_v41 = vpack.c.bf16 %v1543_v18, %v1535_v55  ;;  %v6622_v48 = vadd.f32 %v1374_v36, %v6472_v47  ;;  %v5239_v16 = vld [vmem:[%s7560_s5 + $0x288] ss:$16 sps:$4 sm:$0xff]   ;;  %v5247_v24 = vld [vmem:[%s7560_s5 + $0x2ac] ss:$16 sps:$4 sm:$0xff]  }
 0x3d5   :  { %v1325_v59 = vpop.f32.mrb[59].mxu1  ;;  %v1378_v57 = vpop.f32.mrb[83].mxu0  ;;  %v1638_v44 = vpack.c.bf16 %v1574_v20, %v1566_v27  ;;  %v1551_v45 = vmax.f32 %v6609_v56, 0.0  ;;  %v1624_v42 = vpack.c.bf16 %v1544_v52, %v1536_v38  ;;  %v1457_v1 = vmax.f32 %v1373_v35, 0.0  ;;  %v5242_v52 = vld [vmem:[%s7560_s5 + $0x2a0] ss:$16 sps:$4 sm:$0xff]  }
 0x3d6   :  { %3513 = vmatpush1.bf16.msra.mxu1 %v5224_v32  ;;  %3677 = vmatpush1.bf16.msra.mxu0 %v5227_v37  ;;  %v1775_v53 = vmax.bf16 %v1774_v7, %v1637_v39  ;;  %v1799_v60 = vmax.bf16 %v6616_v41, %v6567_v49  ;;  %v1552_v54 = vmax.f32 %v1322_v15, 0.0  ;;  %v1324_v14 = vadd.f32 %v1323_v25, %v6455_v17 }
 0x3d7   :  { %3514 = vmatprep.subr.bf16.mxu1 %v5232_v61  ;;  %3678 = vmatprep.subr.bf16.mxu0 %v5235_v11  ;;  %v1788_v5 = vmax.bf16 %v1787_v8, %v1638_v44  ;;  %v1377_v7 = vadd.f32 %v1376_v30, %v6469_v46  ;;  %v1812_v62 = vmax.bf16 %v1624_v42, %v6585_v23  ;;  %v5236_v8 = vld [vmem:[%s7560_s5 + $0x280] ss:$16 sps:$4 sm:$0xff]   ;;  %v5244_v23 = vld [vmem:[%s7560_s5 + $0x2a4] ss:$16 sps:$4 sm:$0xff]   ;;  %v1690_v58 = vrot.slane %v6531_v26, 2 }
 0x3d8   :  { %v1776_v2 = vunpack.i.l.bf16 %v1775_v53  ;;  %v1777_v49 = vunpack.i.h.bf16 %v1775_v53  ;;  %v1326_v32 = vadd.f32 %v1325_v59, %v6466_v12  ;;  %v1559_v3 = vmax.f32 %v1324_v14, 0.0  ;;  %v5248_v14 = vld [vmem:[%s7560_s5 + $0x2c0] ss:$16 sps:$4 sm:$0xff]  }
 0x3d9   :  { %v1789_v37 = vunpack.i.l.bf16 %v1788_v5  ;;  %v1790_v50 = vunpack.i.h.bf16 %v1788_v5  ;;  %v1465_v19 = vmax.f32 %v1377_v7, 0.0  ;;  %v1379_v22 = vadd.f32 %v1378_v57, %v6472_v47  ;;  %v5253_v5 = vld [vmem:[%s7560_s5 + $0x2cc] ss:$16 sps:$4 sm:$0xff]   ;;  %v5251_v7 = vld [vmem:[%s7560_s5 + $0x2c8] ss:$16 sps:$4 sm:$0xff]  }
 0x3da   :  { %v1329_v28 = vpop.f32.mrb[60].mxu1  ;;  %v1382_v55 = vpop.f32.mrb[84].mxu0  ;;  %3515 = vmatpush1.bf16.msra.mxu1 %v5230_v31  ;;  %3679 = vmatpush1.bf16.msra.mxu0 %v5233_v51  ;;  %v1778_v21 = vmax.f32 %v1776_v2, %v1777_v49  ;;  %v1560_v6 = vmax.f32 %v1326_v32, 0.0  ;;  %v1631_v36 = vpack.c.bf16 %v1559_v3, %v1551_v45  ;;  %v1458_v15 = vmax.f32 %v6622_v48, 0.0  ;;  %v5245_v48 = vld [vmem:[%s7560_s5 + $0x2a8] ss:$16 sps:$4 sm:$0xff]  }
 0x3db   :  { %v6653_v61 = vadd.f32 %v1329_v28, %v6455_v17  ;;  %v1331_v10 = vpop.f32.mrb[61].mxu1  ;;  %v1384_v18 = vpop.f32.mrb[85].mxu0  ;;  %v1791_v56 = vmax.f32 %v1789_v37, %v1790_v50  ;;  %3516 = vmatprep.subr.bf16.mxu1 %v5238_v0  ;;  %3680 = vmatprep.subr.bf16.mxu0 %v5241_v63  ;;  %v6659_v11 = vpack.c.bf16 %v1465_v19, %v1457_v1  ;;  %v1466_v30 = vmax.f32 %v1379_v22, 0.0  ;;  %v5256_v32 = vld [vmem:[%s7560_s5 + $0x2e4] ss:$16 sps:$4 sm:$0xff]  }
 0x3dc   :  { %v1333_v27 = vpop.f32.mrb[62].mxu1  ;;  %v1386_v20 = vpop.f32.mrb[86].mxu0  ;;  %v1779_v35 = vrot.slane %v1778_v21, 4  ;;  %v1632_v25 = vpack.c.bf16 %v1560_v6, %v1552_v54  ;;  %v1800_v59 = vmax.bf16 %v1799_v60, %v1631_v36  ;;  %v1383_v57 = vadd.f32 %v1382_v55, %v6469_v46  ;;  %v5250_v60 = vld [vmem:[%s7560_s5 + $0x2c4] ss:$16 sps:$4 sm:$0xff]  }
 0x3dd   :  { %v1335_v38 = vpop.f32.mrb[63].mxu1  ;;  %v1388_v39 = vpop.f32.mrb[87].mxu0  ;;  %v1792_v41 = vrot.slane %v1791_v56, 4  ;;  %v1332_v44 = vadd.f32 %v1331_v10, %v6466_v12  ;;  %v1679_v45 = vrot.slane %v6572_v4, 1  ;;  %v6671_v53 = vpack.c.bf16 %v1466_v30, %v1458_v15  ;;  %v5254_v15 = vld [vmem:[%s7560_s5 + $0x2e0] ss:$16 sps:$4 sm:$0xff]  }
 0x3de   :  { %v1780_v31 = vmax.f32 %v1778_v21, %v1779_v35  ;;  %3517 = vmatpush1.bf16.msra.mxu1 %v5236_v8  ;;  %3681 = vmatpush1.bf16.msra.mxu0 %v5239_v16  ;;  %v1813_v51 = vmax.bf16 %v1812_v62, %v1632_v25  ;;  %v1703_v42 = vrot.slane %v6583_v9, 2  ;;  %v1716_v1 = vrot.slane %v6618_v43, 2  ;;  %v5257_v25 = vld [vmem:[%s7560_s5 + $0x2e8] ss:$16 sps:$4 sm:$0xff]  }
 0x3df   :  { %3518 = vmatprep.subr.bf16.mxu1 %v5244_v23  ;;  %3682 = vmatprep.subr.bf16.mxu0 %v5247_v24  ;;  %v1567_v0 = vmax.f32 %v6653_v61, 0.0  ;;  %v1385_v63 = vadd.f32 %v1384_v18, %v6472_v47  ;;  %v1793_v54 = vmax.f32 %v1791_v56, %v1792_v41  ;;  %v1334_v2 = vadd.f32 %v1333_v27, %v6455_v17 }
 0x3e0   :  { %v1387_v49 = vadd.f32 %v1386_v20, %v6469_v46  ;;  %v1336_v62 = vadd.f32 %v1335_v38, %v6466_v12  ;;  %v1781_v8 = vrot.slane %v1780_v31, 2  ;;  %v1473_v37 = vmax.f32 %v1383_v57, 0.0  ;;  %v5259_v12 = vld [vmem:[%s7560_s5 + $0x2ec] ss:$16 sps:$4 sm:$0xff]   ;;  %v5262_v57 = vld [vmem:[%s7560_s5 + $0x304] ss:$16 sps:$4 sm:$0xff]  }
 0x3e1   :  { %v1389_v50 = vadd.f32 %v1388_v39, %v6472_v47  ;;  %v1691_v3 = vmax.f32 %v6531_v26, %v1690_v58  ;;  %v1568_v19 = vmax.f32 %v1332_v44, 0.0  ;;  %v1575_v28 = vmax.f32 %v1334_v2, 0.0  ;;  %v5265_v44 = vld [vmem:[%s7560_s5 + $0x30c] ss:$16 sps:$4 sm:$0xff]  }
 0x3e2   :  { %v1392_v16 = vpop.f32.mrb[88].mxu0  ;;  %3519 = vmatpush1.bf16.msra.mxu1 %v5242_v52  ;;  %3683 = vmatpush1.bf16.msra.mxu0 %v5245_v48  ;;  %v1481_v17 = vmax.f32 %v1387_v49, 0.0  ;;  %v1576_v55 = vmax.f32 %v1336_v62, 0.0  ;;  %v1474_v23 = vmax.f32 %v1385_v63, 0.0  ;;  %v1794_v26 = vrot.slane %v1793_v54, 2 }
 0x3e3   :  { %v1394_v21 = vpop.f32.mrb[89].mxu0  ;;  %3520 = vmatprep.subr.bf16.mxu1 %v5250_v60  ;;  %3684 = vmatprep.subr.bf16.mxu0 %v5253_v5  ;;  %v1482_v6 = vmax.f32 %v1389_v50, 0.0  ;;  %v1393_v22 = vadd.f32 %v1392_v16, %v6469_v46  ;;  %v1692_v10 = vrot.slane %v1691_v3, 1  ;;  %v1639_v18 = vpack.c.bf16 %v1575_v28, %v1567_v0  ;;  %v5271_v16 = vld [vmem:[%s7560_s5 + $0x32c] ss:$16 sps:$4 sm:$0xff]  }
 0x3e4   :  { %v1396_v61 = vpop.f32.mrb[90].mxu0  ;;  %v1593_v58 = vpack.c.bf16 %v1481_v17, %v1473_v37  ;;  %v1640_v56 = vpack.c.bf16 %v1576_v55, %v1568_v19  ;;  %v6701_v36 = vmax.f32 %v1780_v31, %v1781_v8  ;;  %v1395_v20 = vadd.f32 %v1394_v21, %v6472_v47  ;;  %v5260_v8 = vld [vmem:[%s7560_s5 + $0x300] ss:$16 sps:$4 sm:$0xff]  }
 0x3e5   :  { %v1398_v24 = vpop.f32.mrb[91].mxu0  ;;  %v1594_v27 = vpack.c.bf16 %v1482_v6, %v1474_v23  ;;  %v1397_v35 = vadd.f32 %v1396_v61, %v6469_v46  ;;  %v1801_v30 = vmax.bf16 %v1800_v59, %v1639_v18  ;;  %v1489_v41 = vmax.f32 %v1393_v22, 0.0 }
 0x3e6   :  { %3521 = vmatpush1.bf16.msra.mxu1 %v5248_v14  ;;  %3685 = vmatpush1.bf16.msra.mxu0 %v5251_v7  ;;  %v1721_v38 = vmax.bf16 %v1593_v58, %v6659_v11  ;;  %v1814_v39 = vmax.bf16 %v1813_v51, %v1640_v56  ;;  %v1399_v48 = vadd.f32 %v1398_v24, %v6472_v47  ;;  %v1490_v0 = vmax.f32 %v1395_v20, 0.0  ;;  %v5266_v24 = vld [vmem:[%s7560_s5 + $0x320] ss:$16 sps:$4 sm:$0xff]  }
 0x3e7   :  { %3522 = vmatprep.subr.bf16.mxu1 %v5256_v32  ;;  %3686 = vmatprep.subr.bf16.mxu0 %v5259_v12  ;;  %v1734_v52 = vmax.bf16 %v1594_v27, %v6671_v53  ;;  %v1497_v31 = vmax.f32 %v1397_v35, 0.0  ;;  %v1693_v59 = vmax.f32 %v1691_v3, %v1692_v10  ;;  %v1802_v60 = vunpack.i.l.bf16 %v1801_v30  ;;  %v5263_v32 = vld [vmem:[%s7560_s5 + $0x308] ss:$16 sps:$4 sm:$0xff]  }
 0x3e8   :  { %v1803_v11 = vunpack.i.h.bf16 %v1801_v30  ;;  %v1815_v51 = vunpack.i.l.bf16 %v1814_v39  ;;  %v1816_v5 = vunpack.i.h.bf16 %v1814_v39  ;;  %v1498_v14 = vmax.f32 %v1399_v48, 0.0  ;;  %v5269_v27 = vld [vmem:[%s7560_s5 + $0x328] ss:$16 sps:$4 sm:$0xff]  }
 0x3e9   :  { %v1601_v63 = vpack.c.bf16 %v1497_v31, %v1489_v41  ;;  %v1795_v7 = vmax.f32 %v1793_v54, %v1794_v26  ;;  %v1783_v2 = vrot.slane %v6701_v36, 1  ;;  %v5268_v54 = vld [vmem:[%s7560_s5 + $0x324] ss:$16 sps:$4 sm:$0xff]   ;;  %v1694_v22 = vpack.i.bf16 %v1693_v59, %v1693_v59 }
 0x3ea   :  { %v1402_v53 = vpop.f32.mrb[92].mxu0  ;;  %3523 = vmatpush1.bf16.msra.mxu1 %v5254_v15  ;;  %3687 = vmatpush1.bf16.msra.mxu0 %v5257_v25  ;;  %v1804_v49 = vmax.f32 %v1802_v60, %v1803_v11  ;;  %v1817_v62 = vmax.f32 %v1815_v51, %v1816_v5  ;;  %v1602_v19 = vpack.c.bf16 %v1498_v14, %v1490_v0  ;;  %v5274_v15 = vld [vmem:[%s7560_s5 + $0x344] ss:$16 sps:$4 sm:$0xff]   ;;  %v5277_v25 = vld [vmem:[%s7560_s5 + $0x34c] ss:$16 sps:$4 sm:$0xff]  }
 0x3eb   :  { %v1403_v37 = vadd.f32 %v1402_v53, %v6469_v46  ;;  %v1404_v50 = vpop.f32.mrb[93].mxu0  ;;  %3524 = vmatprep.subr.bf16.mxu1 %v5262_v57  ;;  %3688 = vmatprep.subr.bf16.mxu0 %v5265_v44  ;;  %v1722_v3 = vmax.bf16 %v1721_v38, %v1601_v63  ;;  %v1796_v55 = vrot.slane %v1795_v7, 1  ;;  %v1680_v39 = vmax.f32 %v6572_v4, %v1679_v45  ;;  %v5272_v4 = vld [vmem:[%s7560_s5 + $0x340] ss:$16 sps:$4 sm:$0xff]   ;;  %v5280_v5 = vld [vmem:[%s7560_s5 + $0x364] ss:$16 sps:$4 sm:$0xff]  }
 0x3ec   :  { %v1405_v28 = vadd.f32 %v1404_v50, %v6472_v47  ;;  %v1406_v17 = vpop.f32.mrb[94].mxu0  ;;  %v1805_v21 = vrot.slane %v1804_v49, 4  ;;  %v1818_v12 = vrot.slane %v1817_v62, 4  ;;  %v1735_v61 = vmax.bf16 %v1734_v52, %v1602_v19  ;;  %v5283_v0 = vld [vmem:[%s7560_s5 + $0x36c] ss:$16 sps:$4 sm:$0xff]  }
 0x3ed   :  { %v1407_v23 = vadd.f32 %v1406_v17, %v6469_v46  ;;  %v1408_v6 = vpop.f32.mrb[95].mxu0  ;;  %v1505_v10 = vmax.f32 %v1403_v37, 0.0  ;;  %v1797_v18 = vmax.f32 %v1795_v7, %v1796_v55  ;;  %v1784_v41 = vmax.f32 %v6701_v36, %v1783_v2  ;;  %v5281_v37 = vld [vmem:[%s7560_s5 + $0x368] ss:$16 sps:$4 sm:$0xff]   ;;  %v5289_v17 = vld [vmem:[%s7560_s5 + $0x38c] ss:$16 sps:$4 sm:$0xff]  }
 0x3ee   :  { %v1409_v26 = vadd.f32 %v1408_v6, %v6472_v47  ;;  %v1806_v58 = vmax.f32 %v1804_v49, %v1805_v21  ;;  %v1819_v56 = vmax.f32 %v1817_v62, %v1818_v12  ;;  %3525 = vmatpush1.bf16.msra.mxu1 %v5260_v8  ;;  %3689 = vmatpush1.bf16.msra.mxu0 %v5263_v32  ;;  %v1506_v20 = vmax.f32 %v1405_v28, 0.0  ;;  %v5278_v32 = vld [vmem:[%s7560_s5 + $0x360] ss:$16 sps:$4 sm:$0xff]   ;;  %v5286_v28 = vld [vmem:[%s7560_s5 + $0x384] ss:$16 sps:$4 sm:$0xff]  }
 0x3ef   :  { %v1513_v35 = vmax.f32 %v1407_v23, 0.0  ;;  %3526 = vmatprep.subr.bf16.mxu1 %v5268_v54  ;;  %3690 = vmatprep.subr.bf16.mxu0 %v5271_v16  ;;  %v1798_v38 = vpack.i.bf16 %v1797_v18, %v1797_v18  ;;  %v6756_v52 = vmax.f32 %v6583_v9, %v1703_v42  ;;  %v1717_v44 = vmax.f32 %v6618_v43, %v1716_v1  ;;  %v5275_v9 = vld [vmem:[%s7560_s5 + $0x348] ss:$16 sps:$4 sm:$0xff]   ;;  %v5284_v18 = vld [vmem:[%s7560_s5 + $0x380] ss:$16 sps:$4 sm:$0xff]  }
 0x3f0   :  { %v1514_v30 = vmax.f32 %v1409_v26, 0.0  ;;  %v2149_v48 = vunpack.c.l.b16 %v1694_v22  ;;  %v1681_v11 = vpack.i.bf16 %v1680_v39, %v1680_v39  ;;  %v1807_v51 = vrot.slane %v1806_v58, 2 }
 0x3f1   :  { %v1609_v57 = vpack.c.bf16 %v1513_v35, %v1505_v10  ;;  %v2157_v59 = vunpack.c.l.b16 %v1798_v38  ;;  %v1785_v1 = vpack.i.bf16 %v1784_v41, %v1784_v41  ;;  %v1820_v36 = vrot.slane %v1819_v56, 2  ;;  %v5292_v35 = vld [vmem:[%s7560_s5 + $0x3a4] ss:$16 sps:$4 sm:$0xff]  }
 0x3f2   :  { %v1610_v31 = vpack.c.bf16 %v1514_v30, %v1506_v20  ;;  %v1412_v60 = vpop.f32.mrb[96].mxu0  ;;  %3527 = vmatpush1.bf16.msra.mxu1 %v5266_v24  ;;  %3691 = vmatpush1.bf16.msra.mxu0 %v5269_v27  ;;  %v1718_v62 = vrot.slane %v1717_v44, 1  ;;  %v1705_v8 = vrot.slane %v6756_v52, 1  ;;  %v2148_v16 = vunpack.c.l.b16 %v1681_v11 }
 0x3f3   :  { %v6767_v45 = vmax.bf16 %v1722_v3, %v1609_v57  ;;  %v1413_v43 = vadd.f32 %v1412_v60, %v6469_v46  ;;  %v1414_v42 = vpop.f32.mrb[97].mxu0  ;;  %3528 = vmatprep.subr.bf16.mxu1 %v5274_v15  ;;  %3692 = vmatprep.subr.bf16.mxu0 %v5277_v25  ;;  %v2166_v14 = vsel %vm2162_vm3, %v2157_v59, %v2149_v48  ;;  %v2156_v3 = vunpack.c.l.b16 %v1785_v1  ;;  %v5295_v15 = vld [vmem:[%s7560_s5 + $0x3ac] ss:$16 sps:$4 sm:$0xff]   ;;  %v5290_v59 = vld [vmem:[%s7560_s5 + $0x3a0] ss:$16 sps:$4 sm:$0xff]  }
 0x3f4   :  { %v6776_v63 = vmax.bf16 %v1735_v61, %v1610_v31  ;;  %v1415_v53 = vadd.f32 %v1414_v42, %v6472_v47  ;;  %v1416_v7 = vpop.f32.mrb[98].mxu0  ;;  %v2174_v2 = vpack.c.b16 %v2166_v14, %v2166_v14  ;;  %v1808_v19 = vmax.f32 %v1806_v58, %v1807_v51  ;;  %v5287_v58 = vld [vmem:[%s7560_s5 + $0x388] ss:$16 sps:$4 sm:$0xff]  }
 0x3f5   :  { %v1418_v49 = vpop.f32.mrb[99].mxu0  ;;  %v1417_v50 = vadd.f32 %v1416_v7, %v6469_v46  ;;  %v1521_v55 = vmax.f32 %v1413_v43, 0.0  ;;  %v1821_v12 = vmax.f32 %v1819_v56, %v1820_v36  ;;  %v6796_v22 = vsel %vm2162_vm3, %v2156_v3, %v2148_v16  ;;  %v5293_v60 = vld [vmem:[%s7560_s5 + $0x3a8] ss:$16 sps:$4 sm:$0xff]  }
 0x3f6   :  { %3529 = vmatpush1.bf16.msra.mxu1 %v5272_v4  ;;  %3693 = vmatpush1.bf16.msra.mxu0 %v5275_v9  ;;  %v1419_v54 = vadd.f32 %v1418_v49, %v6472_v47  ;;  %v1522_v21 = vmax.f32 %v1415_v53, 0.0  ;;  %v1719_v61 = vmax.f32 %v1717_v44, %v1718_v62  ;;  %v1809_v20 = vrot.slane %v1808_v19, 1  ;;  %v5301_v9 = vld [vmem:[%s7560_s5 + $0x3cc] ss:$16 sps:$4 sm:$0xff]  }
 0x3f7   :  { %3530 = vmatprep.subr.bf16.mxu1 %v5280_v5  ;;  %3694 = vmatprep.subr.bf16.mxu0 %v5283_v0  ;;  %v1529_v23 = vmax.f32 %v1417_v50, 0.0  ;;  %v1822_v26 = vrot.slane %v1821_v12, 1  ;;  %v1706_v31 = vmax.f32 %v6756_v52, %v1705_v8  ;;  %v5298_v52 = vld [vmem:[%s7560_s5 + $0x3c4] ss:$16 sps:$4 sm:$0xff]   ;;  %v1724_v5 = vunpack.i.l.bf16 %v6767_v45  ;;  %v5299_v50 = vld [vmem:[%s7560_s5 + $0x3c8] ss:$16 sps:$4 sm:$0xff]  }
 0x3f8   :  { %3540 = vmatprep.mubr.bf16.mxu1 %v2174_v2  ;;  %3704 = vmatprep.mubr.bf16.mxu0 %v2174_v2  ;;  %v1530_v6 = vmax.f32 %v1419_v54, 0.0  ;;  %v1720_v57 = vpack.i.bf16 %v1719_v61, %v1719_v61  ;;  %v1810_v36 = vmax.f32 %v1808_v19, %v1809_v20  ;;  %v1725_v7 = vunpack.i.h.bf16 %v6767_v45  ;;  %v5307_v19 = vld [vmem:[%s7560_s5 + $0x3ec] ss:$16 sps:$4 sm:$0xff]   ;;  %v5310_v20 = vld [vmem:[%s7560_s5 + $0x404] ss:$16 sps:$4 sm:$0xff]  }
 0x3f9   :  { %v6804_v56 = vpack.c.bf16 %v1529_v23, %v1521_v55  ;;  %v1823_v44 = vmax.f32 %v1821_v12, %v1822_v26  ;;  %v1707_v1 = vpack.i.bf16 %v1706_v31, %v1706_v31  ;;  %v1737_v2 = vunpack.i.l.bf16 %v6776_v63 }
 0x3fa   :  { %v1422_v10 = vpop.f32.mrb[100].mxu0  ;;  %3531 = vmatpush1.bf16.msra.mxu1 %v5278_v32  ;;  %3695 = vmatpush1.bf16.msra.mxu0 %v5281_v37  ;;  %v6806_v24 = vpack.c.bf16 %v1530_v6, %v1522_v21  ;;  %v2151_v14 = vunpack.c.l.b16 %v1720_v57  ;;  %v1811_v8 = vpack.i.bf16 %v1810_v36, %v1810_v36  ;;  %v1738_v32 = vunpack.i.h.bf16 %v6776_v63  ;;  %v5296_v37 = vld [vmem:[%s7560_s5 + $0x3c0] ss:$16 sps:$4 sm:$0xff]   ;;  %v5304_v63 = vld [vmem:[%s7560_s5 + $0x3e4] ss:$16 sps:$4 sm:$0xff]  }
 0x3fb   :  { %v1424_v27 = vpop.f32.mrb[101].mxu0  ;;  %3532 = vmatprep.subr.bf16.mxu1 %v5286_v28  ;;  %3696 = vmatprep.subr.bf16.mxu0 %v5289_v17  ;;  %v1423_v25 = vadd.f32 %v1422_v10, %v6469_v46  ;;  %v1824_v4 = vpack.i.bf16 %v1823_v44, %v1823_v44  ;;  %v2150_v21 = vunpack.c.l.b16 %v1707_v1  ;;  %v1726_v26 = vmax.f32 %v1724_v5, %v1725_v7  ;;  %v5308_v57 = vld [vmem:[%s7560_s5 + $0x400] ss:$16 sps:$4 sm:$0xff]  }
 0x3fc   :  { %v1425_v30 = vadd.f32 %v1424_v27, %v6472_v47  ;;  %v1426_v38 = vpop.f32.mrb[102].mxu0  ;;  %v2158_v12 = vunpack.c.l.b16 %v1811_v8  ;;  %v1739_v27 = vmax.f32 %v1737_v2, %v1738_v32 }
 0x3fd   :  { %v1427_v39 = vadd.f32 %v1426_v38, %v6469_v46  ;;  %v1428_v41 = vpop.f32.mrb[103].mxu0  ;;  %v1537_v11 = vmax.f32 %v1423_v25, 0.0  ;;  %v2159_v53 = vunpack.c.l.b16 %v1824_v4 }
 0x3fe   :  { %v1429_v48 = vadd.f32 %v1428_v41, %v6472_v47  ;;  %3533 = vmatpush1.bf16.msra.mxu1 %v5284_v18  ;;  %3697 = vmatpush1.bf16.msra.mxu0 %v5287_v58  ;;  %v1538_v43 = vmax.f32 %v1425_v30, 0.0  ;;  %v6855_v10 = vsel %vm2162_vm3, %v2158_v12, %v2150_v21  ;;  %v5302_v18 = vld [vmem:[%s7560_s5 + $0x3e0] ss:$16 sps:$4 sm:$0xff]   ;;  %v5305_v58 = vld [vmem:[%s7560_s5 + $0x3e8] ss:$16 sps:$4 sm:$0xff]   ;;  %v1727_v41 = vrot.slane %v1726_v26, 4 }
 0x3ff   :  { %v1545_v51 = vmax.f32 %v1427_v39, 0.0  ;;  %3534 = vmatprep.subr.bf16.mxu1 %v5292_v35  ;;  %3698 = vmatprep.subr.bf16.mxu0 %v5295_v15  ;;  %v2168_v45 = vsel %vm2162_vm3, %v2159_v53, %v2151_v14  ;;  %v5313_v35 = vld [vmem:[%s7560_s5 + $0x40c] ss:$16 sps:$4 sm:$0xff]  }
 0x400   :  { %v1546_v42 = vmax.f32 %v1429_v48, 0.0  ;;  %v2176_v44 = vpack.c.b16 %v2168_v45, %v2168_v45  ;;  %v1728_v5 = vmax.f32 %v1726_v26, %v1727_v41 }
 0x401   :  { %v1625_v0 = vpack.c.bf16 %v1545_v51, %v1537_v11  ;;  %v2173_v11 = vpack.c.b16 %v6796_v22, %v6796_v22  ;;  %v5311_v51 = vld [vmem:[%s7560_s5 + $0x408] ss:$16 sps:$4 sm:$0xff]  }
 0x402   :  { %v1626_v49 = vpack.c.bf16 %v1546_v42, %v1538_v43  ;;  %v1432_v62 = vpop.f32.mrb[104].mxu0  ;;  %3535 = vmatpush1.bf16.msra.mxu1 %v5290_v59  ;;  %3699 = vmatpush1.bf16.msra.mxu0 %v5293_v60  ;;  %v1740_v60 = vrot.slane %v1739_v27, 4  ;;  %v5316_v43 = vld [vmem:[%s7560_s5 + $0x424] ss:$16 sps:$4 sm:$0xff]   ;;  %v5319_v42 = vld [vmem:[%s7560_s5 + $0x42c] ss:$16 sps:$4 sm:$0xff]  }
 0x403   :  { %v1825_v54 = vmax.bf16 %v1625_v0, %v6804_v56  ;;  %v1433_v16 = vadd.f32 %v1432_v62, %v6469_v46  ;;  %v1434_v3 = vpop.f32.mrb[105].mxu0  ;;  %3536 = vmatprep.subr.bf16.mxu1 %v5298_v52  ;;  %3700 = vmatprep.subr.bf16.mxu0 %v5301_v9  ;;  %v5314_v0 = vld [vmem:[%s7560_s5 + $0x420] ss:$16 sps:$4 sm:$0xff]   ;;  %v5325_v62 = vld [vmem:[%s7560_s5 + $0x44c] ss:$16 sps:$4 sm:$0xff]  }
 0x404   :  { %v1838_v28 = vmax.bf16 %v1626_v49, %v6806_v24  ;;  %v1435_v17 = vadd.f32 %v1434_v3, %v6472_v47  ;;  %v1436_v55 = vpop.f32.mrb[106].mxu0  ;;  %v1741_v7 = vmax.f32 %v1739_v27, %v1740_v60  ;;  %v5328_v3 = vld [vmem:[%s7560_s5 + $0x464] ss:$16 sps:$4 sm:$0xff]   ;;  %v5341_v60 = vld [vmem:[%s7560_s5 + $0x4a8] ss:$16 sps:$4 sm:$0xff]  }
 0x405   :  { %v1437_v23 = vadd.f32 %v1436_v55, %v6469_v46  ;;  %v1438_v6 = vpop.f32.mrb[107].mxu0  ;;  %v1553_v56 = vmax.f32 %v1433_v16, 0.0  ;;  %v5323_v16 = vld [vmem:[%s7560_s5 + $0x448] ss:$16 sps:$4 sm:$0xff]  }
 0x406   :  { %v1439_v61 = vadd.f32 %v1438_v6, %v6472_v47  ;;  %3537 = vmatpush1.bf16.msra.mxu1 %v5296_v37  ;;  %3701 = vmatpush1.bf16.msra.mxu0 %v5299_v50  ;;  %v1554_v15 = vmax.f32 %v1435_v17, 0.0  ;;  %v1729_v37 = vrot.slane %v1728_v5, 2  ;;  %v5320_v50 = vld [vmem:[%s7560_s5 + $0x440] ss:$16 sps:$4 sm:$0xff]   ;;  %v1742_v45 = vrot.slane %v1741_v7, 2 }
 0x407   :  { %v1561_v24 = vmax.f32 %v1437_v23, 0.0  ;;  %3538 = vmatprep.subr.bf16.mxu1 %v5304_v63  ;;  %3702 = vmatprep.subr.bf16.mxu0 %v5307_v19  ;;  %v5331_v19 = vld [vmem:[%s7560_s5 + $0x46c] ss:$16 sps:$4 sm:$0xff]   ;;  %v5326_v23 = vld [vmem:[%s7560_s5 + $0x460] ss:$16 sps:$4 sm:$0xff]  }
 0x408   :  { %v1562_v25 = vmax.f32 %v1439_v61, 0.0  ;;  %v1730_v12 = vmax.f32 %v1728_v5, %v1729_v37  ;;  %v5329_v61 = vld [vmem:[%s7560_s5 + $0x468] ss:$16 sps:$4 sm:$0xff]   ;;  %v5352_v5 = vld [vmem:[%s7560_s5 + $0x4e4] ss:$16 sps:$4 sm:$0xff]  }
 0x409   :  { %v1633_v30 = vpack.c.bf16 %v1561_v24, %v1553_v56  ;;  %v5337_v24 = vld [vmem:[%s7560_s5 + $0x48c] ss:$16 sps:$4 sm:$0xff]  }
 0x40a   :  { %v1634_v38 = vpack.c.bf16 %v1562_v25, %v1554_v15  ;;  %v1442_v39 = vpop.f32.mrb[108].mxu0  ;;  %3539 = vmatpush1.bf16.msra.mxu1 %v5302_v18  ;;  %3703 = vmatpush1.bf16.msra.mxu0 %v5305_v58  ;;  %v5334_v18 = vld [vmem:[%s7560_s5 + $0x484] ss:$16 sps:$4 sm:$0xff]   ;;  %v1743_v58 = vmax.f32 %v1741_v7, %v1742_v45  ;;  %v5332_v15 = vld [vmem:[%s7560_s5 + $0x480] ss:$16 sps:$4 sm:$0xff]  }
 0x40b   :  { %v1826_v31 = vmax.bf16 %v1825_v54, %v1633_v30  ;;  %v1443_v48 = vadd.f32 %v1442_v39, %v6469_v46  ;;  %v1444_v59 = vpop.f32.mrb[109].mxu0  ;;  %3549 = vmatprep.subr.bf16.mxu1 %v5310_v20  ;;  %3713 = vmatprep.subr.bf16.mxu0 %v5313_v35  ;;  %v1731_v20 = vrot.slane %v1730_v12, 1  ;;  %v5335_v30 = vld [vmem:[%s7560_s5 + $0x488] ss:$16 sps:$4 sm:$0xff]  }
 0x40c   :  { %v1839_v4 = vmax.bf16 %v1838_v28, %v1634_v38  ;;  %v1445_v52 = vadd.f32 %v1444_v59, %v6472_v47  ;;  %v1446_v9 = vpop.f32.mrb[110].mxu0  ;;  %v5340_v38 = vld [vmem:[%s7560_s5 + $0x4a4] ss:$16 sps:$4 sm:$0xff]   ;;  %v1744_v39 = vrot.slane %v1743_v58, 1 }
 0x40d   :  { %v1447_v22 = vadd.f32 %v1446_v9, %v6469_v46  ;;  %v1448_v1 = vpop.f32.mrb[111].mxu0  ;;  %3541 = vmatmul.mubr.bf16.vlgmr.msra.gmra.mrb[64].mxu1 %v2173_v11  ;;  %3705 = vmatmul.mubr.bf16.vlgmr.msra.gmra.mrb[112].mxu0 %v2173_v11  ;;  %v1569_v14 = vmax.f32 %v1443_v48, 0.0  ;;  %v5317_v46 = vld [vmem:[%s7560_s5 + $0x428] ss:$16 sps:$4 sm:$0xff]   ;;  %v5338_v48 = vld [vmem:[%s7560_s5 + $0x4a0] ss:$16 sps:$4 sm:$0xff]   ;;  %v1732_v59 = vmax.f32 %v1730_v12, %v1731_v20 }
 0x40e   :  { %v1449_v36 = vadd.f32 %v1448_v1, %v6472_v47  ;;  %3550 = vmatpush1.bf16.msra.mxu1 %v5308_v57  ;;  %3581 = vmatprep.mubr.bf16.mxu1 %v2176_v44  ;;  %v5322_v47 = vld [vmem:[%s7560_s5 + $0x444] ss:$16 sps:$4 sm:$0xff]   ;;  %v1570_v2 = vmax.f32 %v1445_v52, 0.0  ;;  %v5343_v57 = vld [vmem:[%s7560_s5 + $0x4ac] ss:$16 sps:$4 sm:$0xff]  }
 0x40f   :  { %v1577_v53 = vmax.f32 %v1447_v22, 0.0  ;;  %3714 = vmatpush1.bf16.msra.mxu0 %v5311_v51  ;;  %3745 = vmatprep.mubr.bf16.mxu0 %v2176_v44  ;;  %v5346_v11 = vld [vmem:[%s7560_s5 + $0x4c4] ss:$16 sps:$4 sm:$0xff]   ;;  %v1745_v51 = vmax.f32 %v1743_v58, %v1744_v39  ;;  %v5349_v9 = vld [vmem:[%s7560_s5 + $0x4cc] ss:$16 sps:$4 sm:$0xff]   ;;  %v1733_v22 = vpack.i.bf16 %v1732_v59, %v1732_v59 }
 0x410   :  { %v1578_v49 = vmax.f32 %v1449_v36, 0.0  ;;  %3551 = vmatprep.subr.bf16.mxu1 %v5316_v43  ;;  %3715 = vmatprep.subr.bf16.mxu0 %v5319_v42  ;;  %v5344_v42 = vld [vmem:[%s7560_s5 + $0x4c0] ss:$16 sps:$4 sm:$0xff]   ;;  %v5347_v36 = vld [vmem:[%s7560_s5 + $0x4c8] ss:$16 sps:$4 sm:$0xff]  }
 0x411   :  { %v1641_v8 = vpack.c.bf16 %v1577_v53, %v1569_v14  ;;  %v5355_v53 = vld [vmem:[%s7560_s5 + $0x4ec] ss:$16 sps:$4 sm:$0xff]   ;;  %v5368_v12 = vld [vmem:[%s7560_s5 + $0x540] ss:$16 sps:$4 sm:$0xff]   ;;  %v5382_v58 = vld [vmem:[%s7560_s5 + $0x584] ss:$16 sps:$4 sm:$0xff]  }
 0x412   :  { %v1642_v32 = vpack.c.bf16 %v1578_v49, %v1570_v2  ;;  %3552 = vmatpush1.bf16.msra.mxu1 %v5314_v0  ;;  %v1746_v0 = vpack.i.bf16 %v1745_v51, %v1745_v51  ;;  %v2152_v2 = vunpack.c.l.b16 %v1733_v22  ;;  %v5388_v20 = vld [vmem:[%s7560_s5 + $0x5a4] ss:$16 sps:$4 sm:$0xff]   ;;  %v5392_v39 = vld [vmem:[%s7560_s5 + $0x5c0] ss:$16 sps:$4 sm:$0xff]   ;;  %v2175_v51 = vpack.c.b16 %v6855_v10, %v6855_v10 }
 0x413   :  { %v1827_v54 = vmax.bf16 %v1826_v31, %v1641_v8  ;;  %3716 = vmatpush1.bf16.msra.mxu0 %v5317_v46  ;;  %3553 = vmatprep.subr.bf16.mxu1 %v5322_v47  ;;  %v5350_v47 = vld [vmem:[%s7560_s5 + $0x4e0] ss:$16 sps:$4 sm:$0xff]   ;;  %v5358_v8 = vld [vmem:[%s7560_s5 + $0x504] ss:$16 sps:$4 sm:$0xff]  }
 0x414   :  { %v1840_v63 = vmax.bf16 %v1839_v4, %v1642_v32  ;;  %3717 = vmatprep.subr.bf16.mxu0 %v5325_v62  ;;  %v5353_v62 = vld [vmem:[%s7560_s5 + $0x4e8] ss:$16 sps:$4 sm:$0xff]   ;;  %v2153_v32 = vunpack.c.l.b16 %v1746_v0  ;;  %v5406_v59 = vld [vmem:[%s7560_s5 + $0x604] ss:$16 sps:$4 sm:$0xff]   ;;  %v5410_v10 = vld [vmem:[%s7560_s5 + $0x620] ss:$16 sps:$4 sm:$0xff]  }
 0x415   :  { %v1828_v28 = vunpack.i.l.bf16 %v1827_v54  ;;  %v1829_v17 = vunpack.i.h.bf16 %v1827_v54  ;;  %v5418_v22 = vld [vmem:[%s7560_s5 + $0x644] ss:$16 sps:$4 sm:$0xff]  }
 0x416   :  { %v1841_v55 = vunpack.i.l.bf16 %v1840_v63  ;;  %v1842_v21 = vunpack.i.h.bf16 %v1840_v63  ;;  %3554 = vmatpush1.bf16.msra.mxu1 %v5320_v50  ;;  %v5361_v50 = vld [vmem:[%s7560_s5 + $0x50c] ss:$16 sps:$4 sm:$0xff]   ;;  %v5364_v63 = vld [vmem:[%s7560_s5 + $0x524] ss:$16 sps:$4 sm:$0xff]  }
 0x417   :  { %v1830_v6 = vmax.f32 %v1828_v28, %v1829_v17  ;;  %3718 = vmatpush1.bf16.msra.mxu0 %v5323_v16  ;;  %3555 = vmatprep.subr.bf16.mxu1 %v5328_v3  ;;  %v5356_v16 = vld [vmem:[%s7560_s5 + $0x500] ss:$16 sps:$4 sm:$0xff]   ;;  %v5359_v3 = vld [vmem:[%s7560_s5 + $0x508] ss:$16 sps:$4 sm:$0xff]   ;;  %v5424_v0 = vld [vmem:[%s7560_s5 + $0x664] ss:$16 sps:$4 sm:$0xff]  }
 0x418   :  { %v1843_v26 = vmax.f32 %v1841_v55, %v1842_v21  ;;  %3719 = vmatprep.subr.bf16.mxu0 %v5331_v19  ;;  %v5367_v19 = vld [vmem:[%s7560_s5 + $0x52c] ss:$16 sps:$4 sm:$0xff]   ;;  %v5362_v28 = vld [vmem:[%s7560_s5 + $0x520] ss:$16 sps:$4 sm:$0xff]   ;;  %v5365_v17 = vld [vmem:[%s7560_s5 + $0x528] ss:$16 sps:$4 sm:$0xff]  }
 0x419   :  { %v1831_v56 = vrot.slane %v1830_v6, 4  ;;  %v5370_v55 = vld [vmem:[%s7560_s5 + $0x544] ss:$16 sps:$4 sm:$0xff]   ;;  %v5373_v21 = vld [vmem:[%s7560_s5 + $0x54c] ss:$16 sps:$4 sm:$0xff]  }
 0x41a   :  { %v1844_v27 = vrot.slane %v1843_v26, 4  ;;  %3556 = vmatpush1.bf16.msra.mxu1 %v5326_v23  ;;  %v5371_v23 = vld [vmem:[%s7560_s5 + $0x548] ss:$16 sps:$4 sm:$0xff]  }
 0x41b   :  { %v1832_v35 = vmax.f32 %v1830_v6, %v1831_v56  ;;  %3720 = vmatpush1.bf16.msra.mxu0 %v5329_v61  ;;  %3557 = vmatprep.subr.bf16.mxu1 %v5334_v18  ;;  %v5376_v6 = vld [vmem:[%s7560_s5 + $0x564] ss:$16 sps:$4 sm:$0xff]   ;;  %v5379_v61 = vld [vmem:[%s7560_s5 + $0x56c] ss:$16 sps:$4 sm:$0xff]   ;;  %v5377_v18 = vld [vmem:[%s7560_s5 + $0x568] ss:$16 sps:$4 sm:$0xff]  }
 0x41c   :  { %v1845_v25 = vmax.f32 %v1843_v26, %v1844_v27  ;;  %3721 = vmatprep.subr.bf16.mxu0 %v5337_v24  ;;  %v5374_v26 = vld [vmem:[%s7560_s5 + $0x560] ss:$16 sps:$4 sm:$0xff]   ;;  %v5385_v56 = vld [vmem:[%s7560_s5 + $0x58c] ss:$16 sps:$4 sm:$0xff]   ;;  %v5383_v27 = vld [vmem:[%s7560_s5 + $0x588] ss:$16 sps:$4 sm:$0xff]  }
 0x41d   :  { %v1833_v41 = vrot.slane %v1832_v35, 2  ;;  %v5380_v24 = vld [vmem:[%s7560_s5 + $0x580] ss:$16 sps:$4 sm:$0xff]  }
 0x41e   :  { %v1846_v44 = vrot.slane %v1845_v25, 2  ;;  %3558 = vmatpush1.bf16.msra.mxu1 %v5332_v15  ;;  %v5386_v15 = vld [vmem:[%s7560_s5 + $0x5a0] ss:$16 sps:$4 sm:$0xff]  }
 0x41f   :  { %v1834_v31 = vmax.f32 %v1832_v35, %v1833_v41  ;;  %3722 = vmatpush1.bf16.msra.mxu0 %v5335_v30  ;;  %3559 = vmatprep.subr.bf16.mxu1 %v5340_v38  ;;  %v5391_v35 = vld [vmem:[%s7560_s5 + $0x5ac] ss:$16 sps:$4 sm:$0xff]   ;;  %v5394_v30 = vld [vmem:[%s7560_s5 + $0x5c4] ss:$16 sps:$4 sm:$0xff]   ;;  %v5395_v41 = vld [vmem:[%s7560_s5 + $0x5c8] ss:$16 sps:$4 sm:$0xff]  }
 0x420   :  { %v1847_v4 = vmax.f32 %v1845_v25, %v1846_v44  ;;  %3723 = vmatprep.subr.bf16.mxu0 %v5343_v57  ;;  %v5389_v25 = vld [vmem:[%s7560_s5 + $0x5a8] ss:$16 sps:$4 sm:$0xff]   ;;  %v5397_v38 = vld [vmem:[%s7560_s5 + $0x5cc] ss:$16 sps:$4 sm:$0xff]   ;;  %v5400_v57 = vld [vmem:[%s7560_s5 + $0x5e4] ss:$16 sps:$4 sm:$0xff]  }
 0x421   :  { %v1835_v52 = vrot.slane %v1834_v31, 1  ;;  %v5403_v44 = vld [vmem:[%s7560_s5 + $0x5ec] ss:$16 sps:$4 sm:$0xff]  }
 0x422   :  { %v1848_v43 = vrot.slane %v1847_v4, 1  ;;  %3560 = vmatpush1.bf16.msra.mxu1 %v5338_v48  ;;  %v5401_v48 = vld [vmem:[%s7560_s5 + $0x5e8] ss:$16 sps:$4 sm:$0xff]  }
 0x423   :  { %v1836_v1 = vmax.f32 %v1834_v31, %v1835_v52  ;;  %3724 = vmatpush1.bf16.msra.mxu0 %v5341_v60  ;;  %3561 = vmatprep.subr.bf16.mxu1 %v5346_v11  ;;  %v5398_v31 = vld [vmem:[%s7560_s5 + $0x5e0] ss:$16 sps:$4 sm:$0xff]   ;;  %v5409_v60 = vld [vmem:[%s7560_s5 + $0x60c] ss:$16 sps:$4 sm:$0xff]   ;;  %v5412_v52 = vld [vmem:[%s7560_s5 + $0x624] ss:$16 sps:$4 sm:$0xff]  }
 0x424   :  { %v1849_v14 = vmax.f32 %v1847_v4, %v1848_v43  ;;  %3725 = vmatprep.subr.bf16.mxu0 %v5349_v9  ;;  %v5404_v11 = vld [vmem:[%s7560_s5 + $0x600] ss:$16 sps:$4 sm:$0xff]   ;;  %v5407_v4 = vld [vmem:[%s7560_s5 + $0x608] ss:$16 sps:$4 sm:$0xff]   ;;  %v5415_v43 = vld [vmem:[%s7560_s5 + $0x62c] ss:$16 sps:$4 sm:$0xff]  }
 0x425   :  { %v1837_v7 = vpack.i.bf16 %v1836_v1, %v1836_v1  ;;  %v5421_v1 = vld [vmem:[%s7560_s5 + $0x64c] ss:$16 sps:$4 sm:$0xff]  }
 0x426   :  { %v1850_v46 = vpack.i.bf16 %v1849_v14, %v1849_v14  ;;  %3562 = vmatpush1.bf16.msra.mxu1 %v5344_v42  ;;  %v5413_v42 = vld [vmem:[%s7560_s5 + $0x628] ss:$16 sps:$4 sm:$0xff]   ;;  %v5427_v14 = vld [vmem:[%s7560_s5 + $0x66c] ss:$16 sps:$4 sm:$0xff]  }
 0x427   :  { %v2160_v49 = vunpack.c.l.b16 %v1837_v7  ;;  %3726 = vmatpush1.bf16.msra.mxu0 %v5347_v36  ;;  %3563 = vmatprep.subr.bf16.mxu1 %v5352_v5  ;;  %v5416_v36 = vld [vmem:[%s7560_s5 + $0x640] ss:$16 sps:$4 sm:$0xff]   ;;  %v5419_v5 = vld [vmem:[%s7560_s5 + $0x648] ss:$16 sps:$4 sm:$0xff]  }
 0x428   :  { %v2161_v37 = vunpack.c.l.b16 %v1850_v46  ;;  %3727 = vmatprep.subr.bf16.mxu0 %v5355_v53  ;;  %v5422_v53 = vld [vmem:[%s7560_s5 + $0x660] ss:$16 sps:$4 sm:$0xff]   ;;  %v5425_v7 = vld [vmem:[%s7560_s5 + $0x668] ss:$16 sps:$4 sm:$0xff]   ;;  %v5430_v46 = vld [vmem:[%s7560_s5 + $0x684] ss:$16 sps:$4 sm:$0xff]  }
 0x429   :  { %v6972_v54 = vsel %vm2162_vm3, %v2160_v49, %v2152_v2  ;;  %v5428_v2 = vld [vmem:[%s7560_s5 + $0x680] ss:$16 sps:$4 sm:$0xff]   ;;  %v5431_v49 = vld [vmem:[%s7560_s5 + $0x688] ss:$16 sps:$4 sm:$0xff]  }
 0x42a   :  { %v6975_v45 = vsel %vm2162_vm3, %v2161_v37, %v2153_v32  ;;  %3564 = vmatpush1.bf16.msra.mxu1 %v5350_v47  ;;  %v5433_v47 = vld [vmem:[%s7560_s5 + $0x68c] ss:$16 sps:$4 sm:$0xff]   ;;  %v5434_v32 = vld [vmem:[%s7560_s5 + $0x6a0] ss:$16 sps:$4 sm:$0xff]   ;;  %v5437_v37 = vld [vmem:[%s7560_s5 + $0x6a8] ss:$16 sps:$4 sm:$0xff]  }
 0x42b   :  { %3728 = vmatpush1.bf16.msra.mxu0 %v5353_v62  ;;  %3565 = vmatprep.subr.bf16.mxu1 %v5358_v8  ;;  %v2178_v9 = vpack.c.b16 %v6975_v45, %v6975_v45  ;;  %v5436_v62 = vld [vmem:[%s7560_s5 + $0x6a4] ss:$16 sps:$4 sm:$0xff]   ;;  %v5439_v8 = vld [vmem:[%s7560_s5 + $0x6ac] ss:$16 sps:$4 sm:$0xff]  }
 0x42c   :  { %3729 = vmatprep.subr.bf16.mxu0 %v5361_v50  ;;  %v5442_v50 = vld [vmem:[%s7560_s5 + $0x6c4] ss:$16 sps:$4 sm:$0xff]   ;;  %v5445_v45 = vld [vmem:[%s7560_s5 + $0x6cc] ss:$16 sps:$4 sm:$0xff]  }
 0x42e   :  { %3566 = vmatpush1.bf16.msra.mxu1 %v5356_v16  ;;  %v5440_v16 = vld [vmem:[%s7560_s5 + $0x6c0] ss:$16 sps:$4 sm:$0xff]  }
 0x42f   :  { %3730 = vmatpush1.bf16.msra.mxu0 %v5359_v3  ;;  %3567 = vmatprep.subr.bf16.mxu1 %v5364_v63  ;;  %v5443_v3 = vld [vmem:[%s7560_s5 + $0x6c8] ss:$16 sps:$4 sm:$0xff]   ;;  %v5448_v63 = vld [vmem:[%s7560_s5 + $0x6e4] ss:$16 sps:$4 sm:$0xff]  }
 0x430   :  { %3731 = vmatprep.subr.bf16.mxu0 %v5367_v19  ;;  %v5451_v19 = vld [vmem:[%s7560_s5 + $0x6ec] ss:$16 sps:$4 sm:$0xff]  }
 0x432   :  { %3568 = vmatpush1.bf16.msra.mxu1 %v5362_v28  ;;  %v5446_v28 = vld [vmem:[%s7560_s5 + $0x6e0] ss:$16 sps:$4 sm:$0xff]  }
 0x433   :  { %3732 = vmatpush1.bf16.msra.mxu0 %v5365_v17  ;;  %3569 = vmatprep.subr.bf16.mxu1 %v5370_v55  ;;  %v5449_v17 = vld [vmem:[%s7560_s5 + $0x6e8] ss:$16 sps:$4 sm:$0xff]   ;;  %v5454_v55 = vld [vmem:[%s7560_s5 + $0x704] ss:$16 sps:$4 sm:$0xff]  }
 0x434   :  { %3733 = vmatprep.subr.bf16.mxu0 %v5373_v21  ;;  %v5457_v21 = vld [vmem:[%s7560_s5 + $0x70c] ss:$16 sps:$4 sm:$0xff]  }
 0x436   :  { %3570 = vmatpush1.bf16.msra.mxu1 %v5368_v12  ;;  %v5452_v12 = vld [vmem:[%s7560_s5 + $0x700] ss:$16 sps:$4 sm:$0xff]  }
 0x437   :  { %3734 = vmatpush1.bf16.msra.mxu0 %v5371_v23  ;;  %3571 = vmatprep.subr.bf16.mxu1 %v5376_v6  ;;  %v5455_v23 = vld [vmem:[%s7560_s5 + $0x708] ss:$16 sps:$4 sm:$0xff]   ;;  %v5460_v6 = vld [vmem:[%s7560_s5 + $0x724] ss:$16 sps:$4 sm:$0xff]  }
 0x438   :  { %3735 = vmatprep.subr.bf16.mxu0 %v5379_v61  ;;  %v5463_v61 = vld [vmem:[%s7560_s5 + $0x72c] ss:$16 sps:$4 sm:$0xff]  }
 0x43a   :  { %3572 = vmatpush1.bf16.msra.mxu1 %v5374_v26  ;;  %v5458_v26 = vld [vmem:[%s7560_s5 + $0x720] ss:$16 sps:$4 sm:$0xff]  }
 0x43b   :  { %3736 = vmatpush1.bf16.msra.mxu0 %v5377_v18  ;;  %3573 = vmatprep.subr.bf16.mxu1 %v5382_v58  ;;  %v5461_v18 = vld [vmem:[%s7560_s5 + $0x728] ss:$16 sps:$4 sm:$0xff]   ;;  %v5466_v58 = vld [vmem:[%s7560_s5 + $0x744] ss:$16 sps:$4 sm:$0xff]  }
 0x43c   :  { %3737 = vmatprep.subr.bf16.mxu0 %v5385_v56  ;;  %v5469_v56 = vld [vmem:[%s7560_s5 + $0x74c] ss:$16 sps:$4 sm:$0xff]  }
 0x43e   :  { %3574 = vmatpush1.bf16.msra.mxu1 %v5380_v24  ;;  %v5464_v24 = vld [vmem:[%s7560_s5 + $0x740] ss:$16 sps:$4 sm:$0xff]  }
 0x43f   :  { %3738 = vmatpush1.bf16.msra.mxu0 %v5383_v27  ;;  %3575 = vmatprep.subr.bf16.mxu1 %v5388_v20  ;;  %v5467_v27 = vld [vmem:[%s7560_s5 + $0x748] ss:$16 sps:$4 sm:$0xff]   ;;  %v5472_v20 = vld [vmem:[%s7560_s5 + $0x764] ss:$16 sps:$4 sm:$0xff]  }
 0x440   :  { %3739 = vmatprep.subr.bf16.mxu0 %v5391_v35  ;;  %v5475_v35 = vld [vmem:[%s7560_s5 + $0x76c] ss:$16 sps:$4 sm:$0xff]  }
 0x442   :  { %3576 = vmatpush1.bf16.msra.mxu1 %v5386_v15  ;;  %v5470_v15 = vld [vmem:[%s7560_s5 + $0x760] ss:$16 sps:$4 sm:$0xff]  }
 0x443   :  { %3740 = vmatpush1.bf16.msra.mxu0 %v5389_v25  ;;  %3577 = vmatprep.subr.bf16.mxu1 %v5394_v30  ;;  %v5473_v25 = vld [vmem:[%s7560_s5 + $0x768] ss:$16 sps:$4 sm:$0xff]   ;;  %v5478_v30 = vld [vmem:[%s7560_s5 + $0x784] ss:$16 sps:$4 sm:$0xff]  }
 0x444   :  { %3741 = vmatprep.subr.bf16.mxu0 %v5397_v38  ;;  %v5481_v38 = vld [vmem:[%s7560_s5 + $0x78c] ss:$16 sps:$4 sm:$0xff]  }
 0x446   :  { %3578 = vmatpush1.bf16.msra.mxu1 %v5392_v39  ;;  %v5476_v39 = vld [vmem:[%s7560_s5 + $0x780] ss:$16 sps:$4 sm:$0xff]  }
 0x447   :  { %3742 = vmatpush1.bf16.msra.mxu0 %v5395_v41  ;;  %3579 = vmatprep.subr.bf16.mxu1 %v5400_v57  ;;  %v5479_v41 = vld [vmem:[%s7560_s5 + $0x788] ss:$16 sps:$4 sm:$0xff]   ;;  %v5484_v57 = vld [vmem:[%s7560_s5 + $0x7a4] ss:$16 sps:$4 sm:$0xff]  }
 0x448   :  { %3743 = vmatprep.subr.bf16.mxu0 %v5403_v44  ;;  %v5487_v44 = vld [vmem:[%s7560_s5 + $0x7ac] ss:$16 sps:$4 sm:$0xff]  }
 0x44a   :  { %3580 = vmatpush1.bf16.msra.mxu1 %v5398_v31  ;;  %v5482_v31 = vld [vmem:[%s7560_s5 + $0x7a0] ss:$16 sps:$4 sm:$0xff]  }
 0x44b   :  { %3744 = vmatpush1.bf16.msra.mxu0 %v5401_v48  ;;  %3590 = vmatprep.subr.bf16.mxu1 %v5406_v59  ;;  %v5485_v48 = vld [vmem:[%s7560_s5 + $0x7a8] ss:$16 sps:$4 sm:$0xff]   ;;  %v5490_v59 = vld [vmem:[%s7560_s5 + $0x7c4] ss:$16 sps:$4 sm:$0xff]  }
 0x44c   :  { %3754 = vmatprep.subr.bf16.mxu0 %v5409_v60  ;;  %v5493_v60 = vld [vmem:[%s7560_s5 + $0x7cc] ss:$16 sps:$4 sm:$0xff]  }
 0x44d   :  { %3582 = vmatmul.mubr.bf16.vlgmr.msra.gmra.mrb[64].mxu1 %v2175_v51 }
 0x44e   :  { %3746 = vmatmul.mubr.bf16.vlgmr.msra.gmra.mrb[112].mxu0 %v2175_v51  ;;  %3591 = vmatpush1.bf16.msra.mxu1 %v5404_v11  ;;  %v5488_v11 = vld [vmem:[%s7560_s5 + $0x7c0] ss:$16 sps:$4 sm:$0xff]   ;;  %v5491_v51 = vld [vmem:[%s7560_s5 + $0x7c8] ss:$16 sps:$4 sm:$0xff]  }
 0x44f   :  { %3622 = vmatprep.mubr.bf16.mxu1 %v2178_v9  ;;  %3755 = vmatpush1.bf16.msra.mxu0 %v5407_v4  ;;  %v5496_v4 = vld [vmem:[%s7560_s5 + $0x7e4] ss:$16 sps:$4 sm:$0xff]  }
 0x450   :  { %3786 = vmatprep.mubr.bf16.mxu0 %v2178_v9  ;;  %3592 = vmatprep.subr.bf16.mxu1 %v5412_v52  ;;  %v5499_v52 = vld [vmem:[%s7560_s5 + $0x7ec] ss:$16 sps:$4 sm:$0xff]   ;;  %v5494_v9 = vld [vmem:[%s7560_s5 + $0x7e0] ss:$16 sps:$4 sm:$0xff]  }
 0x451   :  { %3756 = vmatprep.subr.bf16.mxu0 %v5415_v43  ;;  %v5497_v43 = vld [vmem:[%s7560_s5 + $0x7e8] ss:$16 sps:$4 sm:$0xff]  }
 0x452   :  { %3593 = vmatpush1.bf16.msra.mxu1 %v5410_v10  ;;  %v5502_v10 = vld [vmem:[%s7561_s6 + $0x4] ss:$8 sps:$4 sm:$0xff]  }
 0x453   :  { %3757 = vmatpush1.bf16.msra.mxu0 %v5413_v42  ;;  %3594 = vmatprep.subr.bf16.mxu1 %v5418_v22  ;;  %v5500_v42 = vld [vmem:[%s7561_s6] ss:$8 sps:$4 sm:$0xff]   ;;  %v2177_v22 = vpack.c.b16 %v6972_v54, %v6972_v54 }
 0x454   :  { %3758 = vmatprep.subr.bf16.mxu0 %v5421_v1  ;;  %v5505_v1 = vld [vmem:[%s7561_s6 + $0x14] ss:$8 sps:$4 sm:$0xff]   ;;  %v5506_v54 = vld [vmem:[%s7561_s6 + $0x20] ss:$8 sps:$4 sm:$0xff]  }
 0x456   :  { %3595 = vmatpush1.bf16.msra.mxu1 %v5416_v36  ;;  %v5503_v36 = vld [vmem:[%s7561_s6 + $0x10] ss:$8 sps:$4 sm:$0xff]  }
 0x457   :  { %3759 = vmatpush1.bf16.msra.mxu0 %v5419_v5  ;;  %3596 = vmatprep.subr.bf16.mxu1 %v5424_v0  ;;  %v5508_v5 = vld [vmem:[%s7561_s6 + $0x24] ss:$8 sps:$4 sm:$0xff]   ;;  %v5511_v0 = vld [vmem:[%s7561_s6 + $0x34] ss:$8 sps:$4 sm:$0xff]  }
 0x458   :  { %3760 = vmatprep.subr.bf16.mxu0 %v5427_v14  ;;  %v5509_v14 = vld [vmem:[%s7561_s6 + $0x30] ss:$8 sps:$4 sm:$0xff]  }
 0x45a   :  { %3597 = vmatpush1.bf16.msra.mxu1 %v5422_v53  ;;  %v5514_v53 = vld [vmem:[%s7561_s6 + $0x44] ss:$8 sps:$4 sm:$0xff]  }
 0x45b   :  { %3761 = vmatpush1.bf16.msra.mxu0 %v5425_v7  ;;  %3598 = vmatprep.subr.bf16.mxu1 %v5430_v46  ;;  %v5512_v7 = vld [vmem:[%s7561_s6 + $0x40] ss:$8 sps:$4 sm:$0xff]   ;;  %v5517_v46 = vld [vmem:[%s7561_s6 + $0x54] ss:$8 sps:$4 sm:$0xff]  }
 0x45c   :  { %3762 = vmatprep.subr.bf16.mxu0 %v5433_v47  ;;  %v5515_v47 = vld [vmem:[%s7561_s6 + $0x50] ss:$8 sps:$4 sm:$0xff]  }
 0x45e   :  { %3599 = vmatpush1.bf16.msra.mxu1 %v5428_v2  ;;  %v5520_v2 = vld [vmem:[%s7561_s6 + $0x64] ss:$8 sps:$4 sm:$0xff]  }
 0x45f   :  { %3763 = vmatpush1.bf16.msra.mxu0 %v5431_v49  ;;  %3600 = vmatprep.subr.bf16.mxu1 %v5436_v62  ;;  %v5518_v49 = vld [vmem:[%s7561_s6 + $0x60] ss:$8 sps:$4 sm:$0xff]   ;;  %v5523_v62 = vld [vmem:[%s7561_s6 + $0x74] ss:$8 sps:$4 sm:$0xff]  }
 0x460   :  { %3764 = vmatprep.subr.bf16.mxu0 %v5439_v8  ;;  %v5521_v8 = vld [vmem:[%s7561_s6 + $0x70] ss:$8 sps:$4 sm:$0xff]  }
 0x462   :  { %3601 = vmatpush1.bf16.msra.mxu1 %v5434_v32  ;;  %v5526_v32 = vld [vmem:[%s7561_s6 + $0x84] ss:$8 sps:$4 sm:$0xff]  }
 0x463   :  { %3765 = vmatpush1.bf16.msra.mxu0 %v5437_v37  ;;  %3602 = vmatprep.subr.bf16.mxu1 %v5442_v50  ;;  %v5524_v37 = vld [vmem:[%s7561_s6 + $0x80] ss:$8 sps:$4 sm:$0xff]   ;;  %v5529_v50 = vld [vmem:[%s7561_s6 + $0x94] ss:$8 sps:$4 sm:$0xff]  }
 0x464   :  { %3766 = vmatprep.subr.bf16.mxu0 %v5445_v45  ;;  %v5527_v45 = vld [vmem:[%s7561_s6 + $0x90] ss:$8 sps:$4 sm:$0xff]  }
 0x466   :  { %3603 = vmatpush1.bf16.msra.mxu1 %v5440_v16  ;;  %v5532_v16 = vld [vmem:[%s7561_s6 + $0xa4] ss:$8 sps:$4 sm:$0xff]  }
 0x467   :  { %3767 = vmatpush1.bf16.msra.mxu0 %v5443_v3  ;;  %3604 = vmatprep.subr.bf16.mxu1 %v5448_v63  ;;  %v5530_v3 = vld [vmem:[%s7561_s6 + $0xa0] ss:$8 sps:$4 sm:$0xff]   ;;  %v5535_v63 = vld [vmem:[%s7561_s6 + $0xb4] ss:$8 sps:$4 sm:$0xff]  }
 0x468   :  { %3768 = vmatprep.subr.bf16.mxu0 %v5451_v19  ;;  %v5533_v19 = vld [vmem:[%s7561_s6 + $0xb0] ss:$8 sps:$4 sm:$0xff]  }
 0x46a   :  { %3605 = vmatpush1.bf16.msra.mxu1 %v5446_v28  ;;  %v5538_v28 = vld [vmem:[%s7561_s6 + $0xc4] ss:$8 sps:$4 sm:$0xff]  }
 0x46b   :  { %3769 = vmatpush1.bf16.msra.mxu0 %v5449_v17  ;;  %3606 = vmatprep.subr.bf16.mxu1 %v5454_v55  ;;  %v5536_v17 = vld [vmem:[%s7561_s6 + $0xc0] ss:$8 sps:$4 sm:$0xff]   ;;  %v5541_v55 = vld [vmem:[%s7561_s6 + $0xd4] ss:$8 sps:$4 sm:$0xff]  }
 0x46c   :  { %3770 = vmatprep.subr.bf16.mxu0 %v5457_v21  ;;  %v5539_v21 = vld [vmem:[%s7561_s6 + $0xd0] ss:$8 sps:$4 sm:$0xff]  }
 0x46e   :  { %3607 = vmatpush1.bf16.msra.mxu1 %v5452_v12  ;;  %v5542_v12 = vld [vmem:[%s7561_s6 + $0xe0] ss:$8 sps:$4 sm:$0xff]  }
 0x46f   :  { %3771 = vmatpush1.bf16.msra.mxu0 %v5455_v23  ;;  %3608 = vmatprep.subr.bf16.mxu1 %v5460_v6  ;;  %v5544_v23 = vld [vmem:[%s7561_s6 + $0xe4] ss:$8 sps:$4 sm:$0xff]   ;;  %v5547_v6 = vld [vmem:[%s7561_s6 + $0xf4] ss:$8 sps:$4 sm:$0xff]  }
 0x470   :  { %3772 = vmatprep.subr.bf16.mxu0 %v5463_v61  ;;  %v5545_v61 = vld [vmem:[%s7561_s6 + $0xf0] ss:$8 sps:$4 sm:$0xff]  }
 0x472   :  { %3609 = vmatpush1.bf16.msra.mxu1 %v5458_v26  ;;  %v5550_v26 = vld [vmem:[%s7561_s6 + $0x104] ss:$8 sps:$4 sm:$0xff]  }
 0x473   :  { %3773 = vmatpush1.bf16.msra.mxu0 %v5461_v18  ;;  %3610 = vmatprep.subr.bf16.mxu1 %v5466_v58  ;;  %v5596_v18 = vld [vmem:[%s7562_s7 + $0x40] sm:$0xff]  }
 0x474   :  { %3774 = vmatprep.subr.bf16.mxu0 %v5469_v56  ;;  %v5597_v58 = vld [vmem:[%s7562_s7] sm:$0xff]   ;;  %v5598_v56 = vld [vmem:[%s7562_s7 + $0x48] sm:$0xff]  }
 0x476   :  { %3611 = vmatpush1.bf16.msra.mxu1 %v5464_v24  ;;  %v5599_v24 = vld [vmem:[%s7562_s7 + $0x8] sm:$0xff]  }
 0x477   :  { %3775 = vmatpush1.bf16.msra.mxu0 %v5467_v27  ;;  %3612 = vmatprep.subr.bf16.mxu1 %v5472_v20  ;;  %v5600_v27 = vld [vmem:[%s7562_s7 + $0x50] sm:$0xff]  }
 0x478   :  { %3776 = vmatprep.subr.bf16.mxu0 %v5475_v35  ;;  %v5601_v20 = vld [vmem:[%s7562_s7 + $0x10] sm:$0xff]   ;;  %v5602_v35 = vld [vmem:[%s7562_s7 + $0x58] sm:$0xff]  }
 0x47a   :  { %3613 = vmatpush1.bf16.msra.mxu1 %v5470_v15  ;;  %v5603_v15 = vld [vmem:[%s7562_s7 + $0x18] sm:$0xff]  }
 0x47b   :  { %3777 = vmatpush1.bf16.msra.mxu0 %v5473_v25  ;;  %3614 = vmatprep.subr.bf16.mxu1 %v5478_v30  ;;  %v5604_v25 = vld [vmem:[%s7562_s7 + $0x60] sm:$0xff]  }
 0x47c   :  { %3778 = vmatprep.subr.bf16.mxu0 %v5481_v38  ;;  %v5605_v30 = vld [vmem:[%s7562_s7 + $0x20] sm:$0xff]   ;;  %v5606_v38 = vld [vmem:[%s7562_s7 + $0x68] sm:$0xff]  }
 0x47e   :  { %3615 = vmatpush1.bf16.msra.mxu1 %v5476_v39  ;;  %v5607_v39 = vld [vmem:[%s7562_s7 + $0x28] sm:$0xff]  }
 0x47f   :  { %3779 = vmatpush1.bf16.msra.mxu0 %v5479_v41  ;;  %3616 = vmatprep.subr.bf16.mxu1 %v5484_v57  ;;  %v7403_v41 = vld [vmem:[%s7563_s8 + $0x4] ss:$8 sm:$0xf] }
 0x480   :  { %3780 = vmatprep.subr.bf16.mxu0 %v5487_v44  ;;  %v2113_v57 = vrot.slane %v7403_v41, %v6382_v13  ;;  %v2117_v44 = vrot.slane %v7403_v41, %v6385_v34 }
 0x482   :  { %3617 = vmatpush1.bf16.msra.mxu1 %v5482_v31  ;;  %v2125_v31 = vrot.slane %v7403_v41, %v653_v33  ;;  %v5548_v33 = vld [vmem:[%s7561_s6 + $0x100] ss:$8 sps:$4 sm:$0xff]  }
 0x483   :  { %3781 = vmatpush1.bf16.msra.mxu0 %v5485_v48  ;;  %3618 = vmatprep.subr.bf16.mxu1 %v5490_v59 }
 0x484   :  { %3782 = vmatprep.subr.bf16.mxu0 %v5493_v60 }
 0x486   :  { %3619 = vmatpush1.bf16.msra.mxu1 %v5488_v11 }
 0x487   :  { %3783 = vmatpush1.bf16.msra.mxu0 %v5491_v51  ;;  %3620 = vmatprep.subr.bf16.mxu1 %v5496_v4 }
 0x488   :  { %3784 = vmatprep.subr.bf16.mxu0 %v5499_v52 }
 0x48a   :  { %3621 = vmatpush1.bf16.msra.mxu1 %v5494_v9 }
 0x48b   :  { %3785 = vmatpush1.bf16.msra.mxu0 %v5497_v43  ;;  %4200 = vmatprep.subr.bf16.mxu1 %v5502_v10 }
 0x48c   :  { %4966 = vmatprep.subr.bf16.mxu0 %v5596_v18  ;;  %v2121_v18 = vrot.slane %v7403_v41, %v649_v40 }
 0x48d   :  { %3623 = vmatmul.mubr.bf16.vlgmr.msra.gmra.mrb[64].mxu1 %v2177_v22 }
 0x48e   :  { %3787 = vmatmul.mubr.bf16.vlgmr.msra.gmra.mrb[112].mxu0 %v2177_v22  ;;  %4201 = vmatpush1.bf16.msra.mxu1 %v5500_v42 }
 0x48f   :  { %4202 = vmatprep.subr.bf16.mxu1 %v5505_v1  ;;  %4967 = vmatpush3.bf16.msra.mxu0 %v5597_v58  ;;  %v5592_v58 = vld [vmem:[%s7561_s6 + $0x1e4] ss:$8 sps:$4 sm:$0xff]  }
 0x490   :  { %4968 = vmatprep.subr.bf16.mxu0 %v5598_v56  ;;  %v5590_v56 = vld [vmem:[%s7561_s6 + $0x1e0] ss:$8 sps:$4 sm:$0xff]  }
 0x492   :  { %4203 = vmatpush1.bf16.msra.mxu1 %v5503_v36 }
 0x493   :  { %4204 = vmatprep.subr.bf16.mxu1 %v5508_v5  ;;  %4969 = vmatpush3.bf16.msra.mxu0 %v5599_v24 }
 0x494   :  { %4970 = vmatprep.subr.bf16.mxu0 %v5600_v27  ;;  %v5595_v27 = vld [vmem:[%s7561_s6 + $0x1f4] ss:$8 sps:$4 sm:$0xff]  }
 0x496   :  { %4205 = vmatpush1.bf16.msra.mxu1 %v5506_v54 }
 0x497   :  { %4206 = vmatprep.subr.bf16.mxu1 %v5511_v0  ;;  %4971 = vmatpush3.bf16.msra.mxu0 %v5601_v20  ;;  %v5553_v0 = vld [vmem:[%s7561_s6 + $0x114] ss:$8 sps:$4 sm:$0xff]  }
 0x498   :  { %4972 = vmatprep.subr.bf16.mxu0 %v5602_v35  ;;  %v5608_v35 = vld [vmem:[%s7562_s7 + $0x70] sm:$0xff]  }
 0x49a   :  { %4207 = vmatpush1.bf16.msra.mxu1 %v5509_v14 }
 0x49b   :  { %4208 = vmatprep.subr.bf16.mxu1 %v5514_v53  ;;  %4973 = vmatpush3.bf16.msra.mxu0 %v5603_v15  ;;  %v5551_v53 = vld [vmem:[%s7561_s6 + $0x110] ss:$8 sps:$4 sm:$0xff]  }
 0x49c   :  { %4974 = vmatprep.subr.bf16.mxu0 %v5604_v25  ;;  %v5609_v15 = vld [vmem:[%s7562_s7 + $0x30] sm:$0xff]   ;;  %v5610_v25 = vld [vmem:[%s7562_s7 + $0x78] sm:$0xff]  }
 0x49e   :  { %4209 = vmatpush1.bf16.msra.mxu1 %v5512_v7  ;;  %v5556_v7 = vld [vmem:[%s7561_s6 + $0x124] ss:$8 sps:$4 sm:$0xff]  }
 0x49f   :  { %4210 = vmatprep.subr.bf16.mxu1 %v5517_v46  ;;  %4975 = vmatpush3.bf16.msra.mxu0 %v5605_v30  ;;  %v5554_v46 = vld [vmem:[%s7561_s6 + $0x120] ss:$8 sps:$4 sm:$0xff]   ;;  %v5611_v30 = vld [vmem:[%s7562_s7 + $0x38] sm:$0xff]   ;;  %s5661_s7 = smov [#allocation4]  }
 0x4a0   :  { %4976 = vmatprep.subr.bf16.mxu0 %v5606_v38  ;;  %v4851_v38 = vld [vmem:[%s7563_s8 + $0x5] ss:$8 sm:$0x3]  ;;  %s4484_s28 = sshll.u32 %s5661_s7, 4  ;;  %s4485_s28 = int_to_ptr.vmem [resolvable:$true] %s4484_s28 }
 0x4a1   :  { %v3877_v41 = vrot.slane %v4851_v38, %v6385_v34  ;;  %s5612_s29 = scalar_lea.vmem %s4485_s28, 64  ;;  %p5617_p1 = scmp.lt.s32.totalorder %s4485_s28, %s4485_s28 }
 0x4a2   :  { %4211 = vmatpush1.bf16.msra.mxu1 %v5515_v47  ;;  %v5559_v47 = vld [vmem:[%s7561_s6 + $0x134] ss:$8 sps:$4 sm:$0xff]   ;;  %p5613_p0 = scmp.ne.s32.totalorder %s4485_s28, %s5612_s29  ;;  %p5618_p2 = scmp.lt.s32.totalorder %s5612_s29, %s5612_s29 }
 0x4a3   :  { %4212 = vmatprep.subr.bf16.mxu1 %v5520_v2  ;;  %4977 = vmatpush3.bf16.msra.mxu0 %v5607_v39  ;;  %v5557_v2 = vld [vmem:[%s7561_s6 + $0x130] ss:$8 sps:$4 sm:$0xff]   ;;  %v3873_v39 = vrot.slane %v4851_v38, %v6382_v13 }
 0x4a4   :  { %4978 = vmatprep.subr.bf16.mxu0 %v5608_v35  ;;  %p5619_p3 = por %p5618_p2, %p5617_p1 }
 0x4a6   :  { %4213 = vmatpush1.bf16.msra.mxu1 %v5518_v49  ;;  %v5562_v49 = vld [vmem:[%s7561_s6 + $0x144] ss:$8 sps:$4 sm:$0xff]   ;;  %p5620_p4 = pnand %p5619_p3, %p5613_p0 }
 0x4a7   :  { %4214 = vmatprep.subr.bf16.mxu1 %v5523_v62  ;;  %v5560_v62 = vld [vmem:[%s7561_s6 + $0x140] ss:$8 sps:$4 sm:$0xff]   ;;  %4979 = vmatpush3.bf16.msra.mxu0 %v5609_v15 }
 0x4a8   :  { %4980 = vmatprep.subr.bf16.mxu0 %v5610_v25 }
 0x4aa   :  { %4215 = vmatpush1.bf16.msra.mxu1 %v5521_v8  ;;  %v5565_v8 = vld [vmem:[%s7561_s6 + $0x154] ss:$8 sps:$4 sm:$0xff]  }
 0x4ab   :  { %4216 = vmatprep.subr.bf16.mxu1 %v5526_v32  ;;  %v5563_v32 = vld [vmem:[%s7561_s6 + $0x150] ss:$8 sps:$4 sm:$0xff]   ;;  %4981 = vmatpush3.bf16.msra.mxu0 %v5611_v30 }
 0x4ae   :  { %4217 = vmatpush1.bf16.msra.mxu1 %v5524_v37  ;;  %v5568_v37 = vld [vmem:[%s7561_s6 + $0x164] ss:$8 sps:$4 sm:$0xff]  }
 0x4af   :  { %4218 = vmatprep.subr.bf16.mxu1 %v5529_v50  ;;  %v5566_v50 = vld [vmem:[%s7561_s6 + $0x160] ss:$8 sps:$4 sm:$0xff]  }
 0x4b2   :  { %4219 = vmatpush1.bf16.msra.mxu1 %v5527_v45  ;;  %v5571_v45 = vld [vmem:[%s7561_s6 + $0x174] ss:$8 sps:$4 sm:$0xff]  }
 0x4b3   :  { %4220 = vmatprep.subr.bf16.mxu1 %v5532_v16  ;;  %v5569_v16 = vld [vmem:[%s7561_s6 + $0x170] ss:$8 sps:$4 sm:$0xff]  }
 0x4b6   :  { %4221 = vmatpush1.bf16.msra.mxu1 %v5530_v3  ;;  %v5574_v3 = vld [vmem:[%s7561_s6 + $0x184] ss:$8 sps:$4 sm:$0xff]  }
 0x4b7   :  { %4222 = vmatprep.subr.bf16.mxu1 %v5535_v63  ;;  %v5572_v63 = vld [vmem:[%s7561_s6 + $0x180] ss:$8 sps:$4 sm:$0xff]  }
 0x4ba   :  { %4223 = vmatpush1.bf16.msra.mxu1 %v5533_v19  ;;  %v5577_v19 = vld [vmem:[%s7561_s6 + $0x194] ss:$8 sps:$4 sm:$0xff]  }
 0x4bb   :  { %4224 = vmatprep.subr.bf16.mxu1 %v5538_v28  ;;  %v5575_v28 = vld [vmem:[%s7561_s6 + $0x190] ss:$8 sps:$4 sm:$0xff]  }
 0x4be   :  { %4225 = vmatpush1.bf16.msra.mxu1 %v5536_v17  ;;  %v5580_v17 = vld [vmem:[%s7561_s6 + $0x1a4] ss:$8 sps:$4 sm:$0xff]  }
 0x4bf   :  { %4226 = vmatprep.subr.bf16.mxu1 %v5541_v55  ;;  %v5578_v55 = vld [vmem:[%s7561_s6 + $0x1a0] ss:$8 sps:$4 sm:$0xff]  }
 0x4c2   :  { %4227 = vmatpush1.bf16.msra.mxu1 %v5539_v21  ;;  %v5583_v21 = vld [vmem:[%s7561_s6 + $0x1b4] ss:$8 sps:$4 sm:$0xff]  }
 0x4c3   :  { %4228 = vmatprep.subr.bf16.mxu1 %v5544_v23  ;;  %v5586_v23 = vld [vmem:[%s7561_s6 + $0x1c4] ss:$8 sps:$4 sm:$0xff]  }
 0x4c6   :  { %4229 = vmatpush1.bf16.msra.mxu1 %v5542_v12  ;;  %v5581_v12 = vld [vmem:[%s7561_s6 + $0x1b0] ss:$8 sps:$4 sm:$0xff]  }
 0x4c7   :  { %4230 = vmatprep.subr.bf16.mxu1 %v5547_v6  ;;  %v5584_v6 = vld [vmem:[%s7561_s6 + $0x1c0] ss:$8 sps:$4 sm:$0xff]  }
 0x4ca   :  { %4231 = vmatpush1.bf16.msra.mxu1 %v5545_v61  ;;  %v5589_v61 = vld [vmem:[%s7561_s6 + $0x1d4] ss:$8 sps:$4 sm:$0xff]  }
 0x4cb   :  { %4241 = vmatprep.subr.bf16.mxu1 %v5550_v26  ;;  %v5587_v26 = vld [vmem:[%s7561_s6 + $0x1d0] ss:$8 sps:$4 sm:$0xff]  }
 0x560   :  { %v3624_v48 = vpop.f32.mrb[64].mxu1 }
 0x561   :  { %v5070_v59 = vadd.f32 %v3624_v48, %v2113_v57  ;;  %v7412_v60 = vpop.f32.mrb[112].mxu0  ;;  %v3626_v11 = vpop.f32.mrb[65].mxu1 }
 0x562   :  { %v5071_v51 = vadd.f32 %v3626_v11, %v2117_v44  ;;  %v3790_v4 = vpop.f32.mrb[113].mxu0  ;;  %v3628_v52 = vpop.f32.mrb[66].mxu1  ;;  %v5072_v24 = vadd.f32 %v7412_v60, %v2121_v18 }
 0x563   :  { %v3795_v9 = vmax.f32 %v5070_v59, 0.0  ;;  %v5073_v43 = vadd.f32 %v3790_v4, %v2125_v31  ;;  %v3792_v10 = vpop.f32.mrb[114].mxu0  ;;  %v3629_v42 = vpop.f32.mrb[67].mxu1 }
 0x564   :  { %v3796_v22 = vmax.f32 %v5071_v51, 0.0  ;;  %v3793_v1 = vpop.f32.mrb[115].mxu0  ;;  %v3797_v40 = vmax.f32 %v5072_v24, 0.0 }
 0x565   :  { %v3798_v36 = vmax.f32 %v5073_v43, 0.0  ;;  %v3799_v54 = vpack.c.bf16 %v3795_v9, %v3795_v9 }
 0x566   :  { %v3800_v5 = vpack.c.bf16 %v3796_v22, %v3796_v22  ;;  %v3801_v20 = vpack.c.bf16 %v3797_v40, %v3797_v40 }
 0x567   :  { %v3802_v14 = vpack.c.bf16 %v3798_v36, %v3798_v36 }
 0x568   :  { %4232 = vmatprep.mubr.bf16.mxu1 %v3800_v5 }
 0x569   :  { %4233 = vmatmul.mubr.bf16.vlgmr.msra.gmra.mrb[68].mxu1 %v3799_v54 }
 0x56a   :  { %4242 = vmatpush1.bf16.msra.mxu1 %v5548_v33  ;;  %4273 = vmatprep.mubr.bf16.mxu1 %v3802_v14 }
 0x56b   :  { %4243 = vmatprep.subr.bf16.mxu1 %v5553_v0 }
 0x56e   :  { %4244 = vmatpush1.bf16.msra.mxu1 %v5551_v53 }
 0x56f   :  { %4245 = vmatprep.subr.bf16.mxu1 %v5556_v7 }
 0x572   :  { %4246 = vmatpush1.bf16.msra.mxu1 %v5554_v46 }
 0x573   :  { %4247 = vmatprep.subr.bf16.mxu1 %v5559_v47 }
 0x576   :  { %4248 = vmatpush1.bf16.msra.mxu1 %v5557_v2 }
 0x577   :  { %4249 = vmatprep.subr.bf16.mxu1 %v5562_v49 }
 0x57a   :  { %4250 = vmatpush1.bf16.msra.mxu1 %v5560_v62 }
 0x57b   :  { %4251 = vmatprep.subr.bf16.mxu1 %v5565_v8 }
 0x57e   :  { %4252 = vmatpush1.bf16.msra.mxu1 %v5563_v32 }
 0x57f   :  { %4253 = vmatprep.subr.bf16.mxu1 %v5568_v37 }
 0x582   :  { %4254 = vmatpush1.bf16.msra.mxu1 %v5566_v50 }
 0x583   :  { %4255 = vmatprep.subr.bf16.mxu1 %v5571_v45 }
 0x586   :  { %4256 = vmatpush1.bf16.msra.mxu1 %v5569_v16 }
 0x587   :  { %4257 = vmatprep.subr.bf16.mxu1 %v5574_v3 }
 0x58a   :  { %4258 = vmatpush1.bf16.msra.mxu1 %v5572_v63 }
 0x58b   :  { %4259 = vmatprep.subr.bf16.mxu1 %v5577_v19 }
 0x58e   :  { %4260 = vmatpush1.bf16.msra.mxu1 %v5575_v28 }
 0x58f   :  { %4261 = vmatprep.subr.bf16.mxu1 %v5580_v17 }
 0x592   :  { %4262 = vmatpush1.bf16.msra.mxu1 %v5578_v55 }
 0x593   :  { %4263 = vmatprep.subr.bf16.mxu1 %v5583_v21 }
 0x596   :  { %4264 = vmatpush1.bf16.msra.mxu1 %v5581_v12 }
 0x597   :  { %4265 = vmatprep.subr.bf16.mxu1 %v5586_v23 }
 0x59a   :  { %4266 = vmatpush1.bf16.msra.mxu1 %v5584_v6 }
 0x59b   :  { %4267 = vmatprep.subr.bf16.mxu1 %v5589_v61 }
 0x59e   :  { %4268 = vmatpush1.bf16.msra.mxu1 %v5587_v26 }
 0x59f   :  { %4269 = vmatprep.subr.bf16.mxu1 %v5592_v58 }
 0x5a2   :  { %4270 = vmatpush1.bf16.msra.mxu1 %v5590_v56 }
 0x5a3   :  { %4271 = vmatprep.subr.bf16.mxu1 %v5595_v27 }
 0x5a6   :  { %4272 = vmatpush1.bf16.msra.mxu1 %v5593_v29 }
 0x5a9   :  { %4274 = vmatmul.mubr.bf16.vlgmr.msra.gmra.mrb[68].mxu1 %v3801_v20 }
 0x67c   :  { %v4275_v57 = vpop.f32.mrb[68].mxu1 }
 0x67d   :  { %v5074_v44 = vadd.f32 %v4275_v57, %v3873_v39  ;;  %v4277_v31 = vpop.f32.mrb[69].mxu1 }
 0x67e   :  { %v5075_v48 = vadd.f32 %v4277_v31, %v3877_v41  ;;  %v4279_v59 = vpop.f32.mrb[70].mxu1 }
 0x67f   :  { %v4282_v60 = vmax.f32 %v5074_v44, 0.0  ;;  %v4280_v11 = vpop.f32.mrb[71].mxu1 }
 0x680   :  { %v4283_v51 = vmax.f32 %v5075_v48, 0.0 }
 0x681   :  { %v4296_v9 = vpack.c.bf16 %v4282_v60, %v4282_v60 }
 0x682   :  { %v4297_v4 = vpack.c.bf16 %v4283_v51, %v4283_v51  ;;  %v4286_v52 = vcombine.low %v4282_v60, %v4283_v51 }
 0x684   :  { %4459 = vmatprep.mubr.bf16.mxu0 %v4297_v4  ;;  %4916 = vst.sshfl [vmem:[#allocation4] sm:$0x33 pattern:$0x76325410] %v4286_v52 }
 0x685   :  { %4460 = vmatmul.mubr.bf16.vlgmr.msra.gmra.mrb[116].mxu0 %v4296_v9 }
 0x686   :  { %5623 = shalt.err (!%p5620_p4)
}
 0x687   :  { %s5624_s11 = scalar_lea.hbm %s7565_s10, 64 }
 0x688   :  { %p5625_p5 = scmp.ne.s32.totalorder %s7565_s10, %s5624_s11  ;;  %p5628_p6 = scmp.lt.u32.totalorder %s5624_s11, %s7565_s10 }
 0x68a   :  { %p5630_p7 = pnand %p5628_p6, %p5625_p5 }
 0x68c   :  { %5633 = shalt.err (!%p5630_p7)
}
 0x68d   :  { %4487 = dma.vmem_to_hbm [thread:$0]  %s4485_s28, 64, %s7565_s10, [#allocation5]   ;;  %v4330_v43 = vld [vmem:[%s7563_s8 + $0x6] ss:$0 sm:$0xff] }
 0x68e   :  { %s5662_s18 = smov [#allocation2]  }
 0x68f   :  { %s4474_s19 = sshll.u32 %s5662_s18, 4  ;;  %s4475_s19 = int_to_ptr.vmem [resolvable:$true] %s4474_s19 }
 0x690   :  { %s5634_s20 = scalar_lea.vmem %s4475_s19, 32  ;;  %p5639_p9 = scmp.lt.s32.totalorder %s4475_s19, %s4475_s19 }
 0x691   :  { %p5635_p8 = scmp.ne.s32.totalorder %s4475_s19, %s5634_s20  ;;  %p5640_p10 = scmp.lt.s32.totalorder %s5634_s20, %s5634_s20 }
 0x693   :  { %p5641_p11 = por %p5640_p10, %p5639_p9 }
 0x695   :  { %p5642_p12 = pnand %p5641_p11, %p5635_p8 }
 0x758   :  { %v4982_v13 = vpop.f32.mrb[116].mxu0 }
 0x759   :  { %v4983_v34 = vpop.f32.mrb[117].mxu0 }
 0x75a   :  { %v4984_v10 = vadd.f32 %v4983_v34, %v4982_v13  ;;  %v4985_v42 = vpop.f32.mrb[118].mxu0 }
 0x75b   :  { %v4986_v22 = vpop.f32.mrb[119].mxu0 }
 0x75c   :  { %v4462_v1 = vadd.f32 %v4984_v10, %v4330_v43 }
 0x75e   :  { %4467 = vst [vmem:[#allocation2] sm:$0x3] %v4462_v1 }
 0x75f   :  { %5645 = shalt.err (!%p5642_p12)
}
 0x760   :  { %s5646_s22 = scalar_lea.hbm %s7564_s9, 32 }
 0x761   :  { %p5647_p13 = scmp.ne.s32.totalorder %s7564_s9, %s5646_s22  ;;  %p5650_p0 = scmp.lt.u32.totalorder %s5646_s22, %s7564_s9 }
 0x763   :  { %p5652_p1 = pnand %p5650_p0, %p5647_p13 }
 0x765   :  { %5655 = shalt.err (!%p5652_p1)
}
 0x766   :  { %4477 = dma.vmem_to_hbm [thread:$0]  %s4475_s19, 32, %s7564_s9, [#allocation3]  }
 0x767   :  { %5656 = dma.done.wait [#allocation3], 32  }
 0x768   :  { %5657 = vsyncadd [#allocation3], 4294967264 }
 0x769   :  { %5658 = dma.done.wait [#allocation5], 64  }
 0x76a   :  { %5659 = vsyncadd [#allocation5], 4294967232 }
 0x76b   :  { %4494 = vsyncpa [#allocation3], 1 }
 0x76c   :  { %4495 = vsyncpa [#allocation5], 1 }

</bundles_post_ra>
